<compile_context>
chip_gen: v7x
topology: tpu7x:2x2x1
jax: 0.10.0
libtpu: 0.0.40
codegen_flags: <defaults>
</compile_context>

<pallas_src>
import math
import numpy as np
import jax
import jax.numpy as jnp
from jax.experimental import pallas as pl
from jax.experimental.pallas import tpu as pltpu


# ----------------------- K-weighting (BS.1770) filter setup -----------------------
def _biquad_high_shelf(fs):
    G, Q, fc = 3.999843853973347, 0.7071752369554196, 1681.974450955533
    A = 10.0 ** (G / 40.0)
    w0 = 2.0 * np.pi * fc / fs
    alpha = np.sin(w0) / (2.0 * Q)
    b0 = A * ((A + 1) + (A - 1) * np.cos(w0) + 2 * np.sqrt(A) * alpha)
    b1 = -2 * A * ((A - 1) + (A + 1) * np.cos(w0))
    b2 = A * ((A + 1) + (A - 1) * np.cos(w0) - 2 * np.sqrt(A) * alpha)
    a0 = (A + 1) - (A - 1) * np.cos(w0) + 2 * np.sqrt(A) * alpha
    a1 = 2 * ((A - 1) - (A + 1) * np.cos(w0))
    a2 = (A + 1) - (A - 1) * np.cos(w0) - 2 * np.sqrt(A) * alpha
    return np.array([b0, b1, b2]) / a0, np.array([a0, a1, a2]) / a0


def _biquad_high_pass(fs):
    Q, fc = 0.5003270373238773, 38.13547087602444
    w0 = 2.0 * np.pi * fc / fs
    alpha = np.sin(w0) / (2.0 * Q)
    b = np.array([(1 + np.cos(w0)) / 2, -(1 + np.cos(w0)), (1 + np.cos(w0)) / 2])
    a = np.array([1 + alpha, -2 * np.cos(w0), 1 - alpha])
    return b / a[0], a / a[0]


def _lfilter(b, a, x):
    y = np.zeros_like(x, dtype=np.float64)
    for n in range(len(x)):
        acc = b[0] * x[n]
        if n >= 1:
            acc += b[1] * x[n - 1] - a[1] * y[n - 1]
        if n >= 2:
            acc += b[2] * x[n - 2] - a[2] * y[n - 2]
        y[n] = acc
    return y


def k_weighting_fir(fs, n_taps):
    """Truncated impulse response of the K-weighting biquad cascade."""
    # TODO(synk): the reference Meter uses a recursive IIR filter; a sequential
    # recurrence has no clean Pallas equivalent, so we use the truncated-FIR
    # approximation of the same cascade (as the Meter's FIR/GPU path does).
    impulse = np.zeros(n_taps, dtype=np.float64)
    impulse[0] = 1.0
    b_hs, a_hs = _biquad_high_shelf(fs)
    b_hp, a_hp = _biquad_high_pass(fs)
    return _lfilter(b_hp, a_hp, _lfilter(b_hs, a_hs, impulse))


def _make_fir_weights(h, tile_t):
    """Split banded FIR-as-matmul weights.

    y_tile_s = x_tile_s @ W_cur + x_tile_{s-1} @ W_prev   (causal, zero init state)
    with W_cur[m, t] = h[t - m] (t >= m) and W_prev[m, t] = h[t + TT - m].
    Requires K <= TT + 1 so one tile of history suffices.
    """
    TT, K = tile_t, len(h)
    assert K <= TT + 1
    h_full = np.zeros(2 * TT, dtype=np.float64)
    h_full[:K] = h
    m = np.arange(TT)[:, None]          # input-sample index within a tile
    t = np.arange(TT)[None, :]          # output-sample index within a tile
    d_cur = t - m
    w_cur = np.where(d_cur >= 0, h_full[np.clip(d_cur, 0, 2 * TT - 1)], 0.0)
    w_prev = h_full[t + TT - m]
    return w_cur.astype(np.float32), w_prev.astype(np.float32)


def _make_group_reduce(tile_t, group):
    """0/1 matrix (TT, TT//group) summing each GROUP consecutive lanes."""
    ngrp = tile_t // group
    q = np.arange(tile_t) // group
    return (q[:, None] == np.arange(ngrp)[None, :]).astype(np.float32)


# --------------------------------- Pallas kernels ---------------------------------
def _make_loudness_kernel(BC, TT, n_sub, chunk, total_t):
    """Fused K-weighting FIR + GROUP-sample energy-partials kernel."""

    def kernel(x_ref, hist_ref, wcur_ref, wprev_ref, r_ref, e_ref, cur_ref, prv_ref):
        g = pl.program_id(0)

        # One-tile FIR history: previous chunk's last tile (zeros for chunk 0).
        @pl.when(g == 0)
        def _():
            prv_ref[0:BC, :] = jnp.zeros((BC, TT), jnp.bfloat16)

        @pl.when(g > 0)
        def _():
            prv_ref[0:BC, :] = hist_ref[...].astype(jnp.bfloat16)

        # Restack the chunk into the MXU-friendly (n_sub*BC, TT) layout.
        # Sub-tile s becomes row-block s of the "current" LHS and row-block s+1
        # of the "previous" LHS, so the two FIR matmuls need no shift/copy.
        # The ragged signal tail (no jnp.pad in the wrapper) is zero-masked here.
        col = jax.lax.broadcasted_iota(jnp.int32, (BC, TT), 1)
        limit = total_t - g * chunk                     # valid samples in this chunk
        for s in range(n_sub):
            xt = x_ref[:, s * TT:(s + 1) * TT]
            xt = jnp.where(col < (limit - s * TT), xt, 0.0).astype(jnp.bfloat16)
            cur_ref[s * BC:(s + 1) * BC, :] = xt
            if s + 1 < n_sub:
                prv_ref[(s + 1) * BC:(s + 2) * BC, :] = xt

        # K-weighting FIR: two stacked bf16 matmuls, f32 accumulation.
        y = jnp.dot(cur_ref[...], wcur_ref[...], preferred_element_type=jnp.float32)
        y = y + jnp.dot(prv_ref[...], wprev_ref[...], preferred_element_type=jnp.float32)
        y2 = (y * y).astype(jnp.bfloat16)               # square in f32 (VPU), store bf16

        # GROUP-sample energy partials: tiny lane-group reduction on the MXU.
        e_ref[...] = jnp.dot(y2, r_ref[...], preferred_element_type=jnp.float32)

    return kernel


def _apply_gain_kernel(g_ref, wav_ref, out_ref):
    out_ref[...] = (wav_ref[...] * g_ref[...]).astype(out_ref.dtype)


# ----------------------------------- module ---------------------------------------
class AudioLoudnessNormalizePallas:
    GAIN_FACTOR = float(np.log(10.0) / 20.0)
    G_WEIGHTS = np.array([1.0, 1.0, 1.0, 1.41, 1.41], dtype=np.float64)

    def __init__(self, target_loudness=0.0, sr=24000, n_taps=512, tile_t=512):
        assert n_taps <= tile_t + 1
        self.target_loudness = float(target_loudness)
        self.sr = int(sr)
        self.n_taps = int(n_taps)
        self.tile_t = int(tile_t)
        self.block_n = int(0.400 * sr)                  # 400 ms gating block
        self.step_n = int(0.400 * sr * 0.25)            # 75% overlap
        # GROUP-sample partials align with both tile and gating-block boundaries.
        self.group = math.gcd(math.gcd(self.step_n, self.block_n), self.tile_t)
        self.n_grp = self.tile_t // self.group
        self._h = k_weighting_fir(sr, n_taps)           # deterministic "parameters"
        w_cur, w_prev = _make_fir_weights(self._h, self.tile_t)
        self._Wcur = jnp.asarray(w_cur, dtype=jnp.bfloat16)
        self._Wprev = jnp.asarray(w_prev, dtype=jnp.bfloat16)
        self._R = jnp.asarray(_make_group_reduce(self.tile_t, self.group),
                              dtype=jnp.bfloat16)

    # ------------------------- hot path: block energies ---------------------------
    def _block_energies(self, wav):
        B, C, T = wav.shape
        TT, GROUP, NGRP = self.tile_t, self.group, self.n_grp
        NG, STEP = self.block_n, self.step_n
        assert T >= NG, "need at least one 400 ms gating block"
        NB = (T - NG) // STEP + 1
        BC = B * C

        def _rup(a, b):
            return -(-a // b) * b

        n_tiles = pl.cdiv(T, TT)
        need = 8 // math.gcd(BC, 8)                     # keep M = n_sub*BC % 8 == 0
        n_sub = max(need, min(_rup(max(1, 256 // BC), need), _rup(n_tiles, need)))
        M = n_sub * BC                                  # stacked MXU rows (~256)
        CHUNK = n_sub * TT
        n_steps = pl.cdiv(n_tiles, n_sub)

        x = wav.reshape(BC, T).astype(jnp.float32)

        flops = int(n_steps * (4 * M * TT * TT + 2 * M * TT + 2 * M * TT * NGRP))
        bytes_accessed = int(BC * T * 4 + n_steps * BC * TT * 4
                             + 2 * TT * TT * 2 + TT * NGRP * 2
                             + n_steps * M * NGRP * 4)

        kernel = _make_loudness_kernel(BC, TT, n_sub, CHUNK, T)
        e_stack = pl.pallas_call(
            kernel,
            out_shape=jax.ShapeDtypeStruct((n_steps * M, NGRP), jnp.float32),
            grid=(n_steps,),
            in_specs=[
                pl.BlockSpec((BC, CHUNK), lambda g: (0, g)),               # signal chunk
                pl.BlockSpec((BC, TT),                                     # FIR history tile
                             lambda g: (0, jnp.maximum(g * n_sub - 1, 0))),
                pl.BlockSpec((TT, TT), lambda g: (0, 0)),                  # W_cur (constant)
                pl.BlockSpec((TT, TT), lambda g: (0, 0)),                  # W_prev (constant)
                pl.BlockSpec((TT, NGRP), lambda g: (0, 0)),                # group-sum matrix
            ],
            out_specs=pl.BlockSpec((M, NGRP), lambda g: (g, 0)),
            scratch_shapes=[
                pltpu.VMEM((M, TT), jnp.bfloat16),      # stacked current tiles
                pltpu.VMEM((M, TT), jnp.bfloat16),      # stacked previous tiles
            ],
            compiler_params=pltpu.CompilerParams(
                dimension_semantics=("parallel",)),     # no carry -> megacore-safe
            cost_estimate=pl.CostEstimate(
                flops=flops, transcendentals=0, bytes_accessed=bytes_accessed),
        )(x, x, self._Wcur, self._Wprev, self._R)

        # (n_steps*M, NGRP) stacked -> (BC, n_groups) GROUP-sample energies.
        e = (e_stack.reshape(n_steps, n_sub, BC, NGRP)
             .transpose(2, 0, 1, 3).reshape(BC, n_steps * n_sub * NGRP))

        # 400 ms gating-block energies from the tiny partials (plain JAX).
        sg, nbg = STEP // GROUP, NG // GROUP
        idx = np.arange(NB)[:, None] * sg + np.arange(nbg)[None, :]
        z = e[:, idx].sum(axis=-1) / jnp.float32(NG)
        return z.reshape(B, C, NB)

    # ------------------ tiny per-batch gating / log10 math (plain JAX) ------------
    def _integrated_loudness(self, wav):
        B, C, T = wav.shape
        z = self._block_energies(wav)                          # (B, C, NB)
        Gw = jnp.asarray(self.G_WEIGHTS[:C], jnp.float32)      # (C,)
        Gz = jnp.einsum("c,bcj->bj", Gw, z)                    # (B, NB)
        tiny = jnp.float32(1e-30)
        l = -0.691 + 10.0 * jnp.log10(jnp.maximum(Gz, tiny))
        mask_a = l > -70.0                                     # absolute gate
        cnt_a = jnp.maximum(jnp.sum(mask_a, axis=1), 1).astype(jnp.float32)
        z_a = jnp.sum(z * mask_a[:, None, :].astype(z.dtype), axis=2) / cnt_a[:, None]
        gamma_r = (-0.691 + 10.0 * jnp.log10(
            jnp.maximum(jnp.sum(Gw[None, :] * z_a, axis=1), tiny)) - 10.0)
        mask = mask_a & (l > gamma_r[:, None])                 # relative gate
        cnt = jnp.maximum(jnp.sum(mask, axis=1), 1).astype(jnp.float32)
        z_g = jnp.sum(z * mask[:, None, :].astype(z.dtype), axis=2) / cnt[:, None]
        lufs = -0.691 + 10.0 * jnp.log10(
            jnp.maximum(jnp.sum(Gw[None, :] * z_g, axis=1), tiny))
        return lufs                                            # (B,)

    # ----------------------------------- forward ----------------------------------
    def __call__(self, wav):
        B, C, T = wav.shape
        BC = B * C
        loudness = self._integrated_loudness(wav)
        gain = jnp.exp((self.target_loudness - loudness) * self.GAIN_FACTOR)
        gain_rows = jnp.repeat(gain.astype(jnp.float32), C).reshape(BC, 1)

        wav2 = wav.reshape(BC, T)                 # lane-dense time tiles
        tt2 = min(8 * 1024, 128 * pl.cdiv(T, 128))
        out = pl.pallas_call(
            _apply_gain_kernel,
            out_shape=jax.ShapeDtypeStruct((BC, T), wav.dtype),
            grid=(pl.cdiv(T, tt2),),
            in_specs=[
                pl.BlockSpec((BC, 1), lambda t: (0, 0)),
                pl.BlockSpec((BC, tt2), lambda t: (0, t)),
            ],
            out_specs=pl.BlockSpec((BC, tt2), lambda t: (0, t)),
            compiler_params=pltpu.CompilerParams(
                dimension_semantics=("parallel",)),            # megacore on v7x
        )(gain_rows, wav2)
        return out.reshape(B, C, T)


# ------------------------------- numpy reference ----------------------------------
def _reference_forward(wav_np, module):
    h = module._h
    B, C, T = wav_np.shape
    NG, STEP = module.block_n, module.step_n
    NB = (T - NG) // STEP + 1
    Gw = module.G_WEIGHTS[:C]
    x = wav_np.astype(np.float64)
    y = np.zeros((B, C, T), np.float64)
    for b in range(B):
        for c in range(C):
            y[b, c] = np.convolve(x[b, c], h)[:T]
    z = np.zeros((B, C, NB), np.float64)
    for j in range(NB):
        z[:, :, j] = (y[:, :, j * STEP:j * STEP + NG] ** 2).sum(-1) / NG
    l = -0.691 + 10 * np.log10((Gw[None, :, None] * z).sum(1))
    mask_a = l > -70.0
    cnt_a = np.maximum(mask_a.sum(-1), 1)
    z_a = (z * mask_a[:, None, :]).sum(-1) / cnt_a[:, None]
    gamma_r = -0.691 + 10 * np.log10((Gw[None] * z_a).sum(-1)) - 10.0
    mask = mask_a & (l > gamma_r[:, None])
    cnt = np.maximum(mask.sum(-1), 1)
    z_g = (z * mask[:, None, :]).sum(-1) / cnt[:, None]
    lufs = -0.691 + 10 * np.log10((Gw[None] * z_g).sum(-1))
    gain = np.exp((module.target_loudness - lufs) * module.GAIN_FACTOR)
    return (wav_np.astype(np.float64) * gain[:, None, None]).astype(np.float32)


if __name__ == "__main__":
    B, C, sr = 2, 2, 24000
    T = sr  # 1 second of audio -> 7 overlapping 400 ms gating blocks
    key = jax.random.PRNGKey(0)
    wav = 0.1 * jax.random.normal(key, (B, C, T), dtype=jnp.float32)

    module = AudioLoudnessNormalizePallas(target_loudness=0.0, sr=sr)
    out = module(wav)
    out = jax.block_until_ready(out)

    ref = _reference_forward(np.asarray(wav), module)
    assert out.shape == (B, C, T) and out.dtype == jnp.float32
    assert np.allclose(np.asarray(out), ref, rtol=2e-2, atol=2e-3), "mismatch vs reference"
    print("KERNEL_OK")
</pallas_src>

<mosaic_0001>
module attributes {stable_mosaic.version = 11 : i64} {
  func.func @kernel(%arg0: i32, %arg1: memref<4x24576xf32, #tpu.memory_space<vmem>>, %arg2: memref<4x512xf32, #tpu.memory_space<vmem>>, %arg3: memref<512x512xbf16, #tpu.memory_space<vmem>>, %arg4: memref<512x512xbf16, #tpu.memory_space<vmem>>, %arg5: memref<512x16xbf16, #tpu.memory_space<vmem>>, %arg6: memref<192x16xf32, #tpu.memory_space<vmem>>, %arg7: memref<192x512xbf16, #tpu.memory_space<vmem>>, %arg8: memref<192x512xbf16, #tpu.memory_space<vmem>>) attributes {dimension_semantics = [#tpu.dimension_semantics<parallel>], iteration_bounds = array<i64: 1>, scalar_prefetch = 0 : i64, scratch_operands = 2 : i64, tpu.core_type = #tpu.core_type<tc>, window_params = [{transform_indices = @transform_0, window_bounds = array<i64: 4, 24576>}, {transform_indices = @transform_1, window_bounds = array<i64: 4, 512>}, {pipeline_mode = #tpu.pipeline_mode<synchronous>, transform_indices = @transform_2, window_bounds = array<i64: 512, 512>}, {pipeline_mode = #tpu.pipeline_mode<synchronous>, transform_indices = @transform_3, window_bounds = array<i64: 512, 512>}, {pipeline_mode = #tpu.pipeline_mode<synchronous>, transform_indices = @transform_4, window_bounds = array<i64: 512, 16>}, {transform_indices = @transform_5, window_bounds = array<i64: 192, 16>}]} {
    %c0_i32 = arith.constant 0 : i32
    %0 = arith.cmpi eq, %arg0, %c0_i32 : i32
    %1 = arith.extui %0 : i1 to i32
    %c0_i32_0 = arith.constant 0 : i32
    %2 = arith.cmpi ne, %1, %c0_i32_0 : i32
    scf.if %2 {
      %cst_257 = arith.constant 0.000000e+00 : bf16
      %452 = vector.broadcast %cst_257 : bf16 to vector<4x512xbf16>
      %c0_258 = arith.constant 0 : index
      %c0_259 = arith.constant 0 : index
      %453 = vector.load %arg8[%c0_258, %c0_259] : memref<192x512xbf16, #tpu.memory_space<vmem>>, vector<4x512xbf16>
      tpu.vector_store %arg8[%c0_258, %c0_259], %452 {strides = array<i32>} : memref<192x512xbf16, #tpu.memory_space<vmem>>, vector<4x512xbf16>,
    } else {
    }
    %c0_i32_1 = arith.constant 0 : i32
    %3 = arith.cmpi sgt, %arg0, %c0_i32_1 : i32
    %4 = arith.extui %3 : i1 to i32
    %c0_i32_2 = arith.constant 0 : i32
    %5 = arith.cmpi ne, %4, %c0_i32_2 : i32
    scf.if %5 {
      %c0_257 = arith.constant 0 : index
      %c0_258 = arith.constant 0 : index
      %452 = vector.load %arg2[%c0_257, %c0_258] : memref<4x512xf32, #tpu.memory_space<vmem>>, vector<4x512xf32>
      %453 = arith.truncf %452 : vector<4x512xf32> to vector<4x512xbf16>
      %c0_259 = arith.constant 0 : index
      %c0_260 = arith.constant 0 : index
      %454 = vector.load %arg8[%c0_259, %c0_260] : memref<192x512xbf16, #tpu.memory_space<vmem>>, vector<4x512xbf16>
      tpu.vector_store %arg8[%c0_259, %c0_260], %453 {strides = array<i32>} : memref<192x512xbf16, #tpu.memory_space<vmem>>, vector<4x512xbf16>,
    } else {
    }
    %6 = tpu.iota {dimensions = array<i32: 1>} : vector<4x512xi32>
    %c24576_i32 = arith.constant 24576 : i32
    %7 = arith.muli %arg0, %c24576_i32 : i32
    %c24000_i32 = arith.constant 24000 : i32
    %8 = arith.subi %c24000_i32, %7 : i32
    %c0 = arith.constant 0 : index
    %c0_3 = arith.constant 0 : index
    %9 = vector.load %arg1[%c0, %c0_3] : memref<4x24576xf32, #tpu.memory_space<vmem>>, vector<4x512xf32>
    %c0_i32_4 = arith.constant 0 : i32
    %10 = arith.subi %8, %c0_i32_4 : i32
    %11 = vector.broadcast %10 : i32 to vector<4x512xi32>
    %12 = arith.cmpi slt, %6, %11 : vector<4x512xi32>
    %cst = arith.constant 0.000000e+00 : f32
    %13 = vector.broadcast %cst : f32 to vector<4x512xf32>
    %14 = arith.select %12, %9, %13 : vector<4x512xi1>, vector<4x512xf32>
    %15 = arith.truncf %14 : vector<4x512xf32> to vector<4x512xbf16>
    %c0_5 = arith.constant 0 : index
    %c0_6 = arith.constant 0 : index
    %16 = vector.load %arg7[%c0_5, %c0_6] : memref<192x512xbf16, #tpu.memory_space<vmem>>, vector<4x512xbf16>
    tpu.vector_store %arg7[%c0_5, %c0_6], %15 {strides = array<i32>} : memref<192x512xbf16, #tpu.memory_space<vmem>>, vector<4x512xbf16>,
    %c4 = arith.constant 4 : index
    %c0_7 = arith.constant 0 : index
    %17 = vector.load %arg8[%c4, %c0_7] : memref<192x512xbf16, #tpu.memory_space<vmem>>, vector<4x512xbf16>
    tpu.vector_store %arg8[%c4, %c0_7], %15 {strides = array<i32>} : memref<192x512xbf16, #tpu.memory_space<vmem>>, vector<4x512xbf16>,
    %c0_8 = arith.constant 0 : index
    %c512 = arith.constant 512 : index
    %18 = vector.load %arg1[%c0_8, %c512] : memref<4x24576xf32, #tpu.memory_space<vmem>>, vector<4x512xf32>
    %c512_i32 = arith.constant 512 : i32
    %19 = arith.subi %8, %c512_i32 : i32
    %20 = vector.broadcast %19 : i32 to vector<4x512xi32>
    %21 = arith.cmpi slt, %6, %20 : vector<4x512xi32>
    %cst_9 = arith.constant 0.000000e+00 : f32
    %22 = vector.broadcast %cst_9 : f32 to vector<4x512xf32>
    %23 = arith.select %21, %18, %22 : vector<4x512xi1>, vector<4x512xf32>
    %24 = arith.truncf %23 : vector<4x512xf32> to vector<4x512xbf16>
    %c4_10 = arith.constant 4 : index
    %c0_11 = arith.constant 0 : index
    %25 = vector.load %arg7[%c4_10, %c0_11] : memref<192x512xbf16, #tpu.memory_space<vmem>>, vector<4x512xbf16>
    tpu.vector_store %arg7[%c4_10, %c0_11], %24 {strides = array<i32>} : memref<192x512xbf16, #tpu.memory_space<vmem>>, vector<4x512xbf16>,
    %c8 = arith.constant 8 : index
    %c0_12 = arith.constant 0 : index
    %26 = vector.load %arg8[%c8, %c0_12] : memref<192x512xbf16, #tpu.memory_space<vmem>>, vector<4x512xbf16>
    tpu.vector_store %arg8[%c8, %c0_12], %24 {strides = array<i32>} : memref<192x512xbf16, #tpu.memory_space<vmem>>, vector<4x512xbf16>,
    %c0_13 = arith.constant 0 : index
    %c1024 = arith.constant 1024 : index
    %27 = vector.load %arg1[%c0_13, %c1024] : memref<4x24576xf32, #tpu.memory_space<vmem>>, vector<4x512xf32>
    %c1024_i32 = arith.constant 1024 : i32
    %28 = arith.subi %8, %c1024_i32 : i32
    %29 = vector.broadcast %28 : i32 to vector<4x512xi32>
    %30 = arith.cmpi slt, %6, %29 : vector<4x512xi32>
    %cst_14 = arith.constant 0.000000e+00 : f32
    %31 = vector.broadcast %cst_14 : f32 to vector<4x512xf32>
    %32 = arith.select %30, %27, %31 : vector<4x512xi1>, vector<4x512xf32>
    %33 = arith.truncf %32 : vector<4x512xf32> to vector<4x512xbf16>
    %c8_15 = arith.constant 8 : index
    %c0_16 = arith.constant 0 : index
    %34 = vector.load %arg7[%c8_15, %c0_16] : memref<192x512xbf16, #tpu.memory_space<vmem>>, vector<4x512xbf16>
    tpu.vector_store %arg7[%c8_15, %c0_16], %33 {strides = array<i32>} : memref<192x512xbf16, #tpu.memory_space<vmem>>, vector<4x512xbf16>,
    %c12 = arith.constant 12 : index
    %c0_17 = arith.constant 0 : index
    %35 = vector.load %arg8[%c12, %c0_17] : memref<192x512xbf16, #tpu.memory_space<vmem>>, vector<4x512xbf16>
    tpu.vector_store %arg8[%c12, %c0_17], %33 {strides = array<i32>} : memref<192x512xbf16, #tpu.memory_space<vmem>>, vector<4x512xbf16>,
    %c0_18 = arith.constant 0 : index
    %c1536 = arith.constant 1536 : index
    %36 = vector.load %arg1[%c0_18, %c1536] : memref<4x24576xf32, #tpu.memory_space<vmem>>, vector<4x512xf32>
    %c1536_i32 = arith.constant 1536 : i32
    %37 = arith.subi %8, %c1536_i32 : i32
    %38 = vector.broadcast %37 : i32 to vector<4x512xi32>
    %39 = arith.cmpi slt, %6, %38 : vector<4x512xi32>
    %cst_19 = arith.constant 0.000000e+00 : f32
    %40 = vector.broadcast %cst_19 : f32 to vector<4x512xf32>
    %41 = arith.select %39, %36, %40 : vector<4x512xi1>, vector<4x512xf32>
    %42 = arith.truncf %41 : vector<4x512xf32> to vector<4x512xbf16>
    %c12_20 = arith.constant 12 : index
    %c0_21 = arith.constant 0 : index
    %43 = vector.load %arg7[%c12_20, %c0_21] : memref<192x512xbf16, #tpu.memory_space<vmem>>, vector<4x512xbf16>
    tpu.vector_store %arg7[%c12_20, %c0_21], %42 {strides = array<i32>} : memref<192x512xbf16, #tpu.memory_space<vmem>>, vector<4x512xbf16>,
    %c16 = arith.constant 16 : index
    %c0_22 = arith.constant 0 : index
    %44 = vector.load %arg8[%c16, %c0_22] : memref<192x512xbf16, #tpu.memory_space<vmem>>, vector<4x512xbf16>
    tpu.vector_store %arg8[%c16, %c0_22], %42 {strides = array<i32>} : memref<192x512xbf16, #tpu.memory_space<vmem>>, vector<4x512xbf16>,
    %c0_23 = arith.constant 0 : index
    %c2048 = arith.constant 2048 : index
    %45 = vector.load %arg1[%c0_23, %c2048] : memref<4x24576xf32, #tpu.memory_space<vmem>>, vector<4x512xf32>
    %c2048_i32 = arith.constant 2048 : i32
    %46 = arith.subi %8, %c2048_i32 : i32
    %47 = vector.broadcast %46 : i32 to vector<4x512xi32>
    %48 = arith.cmpi slt, %6, %47 : vector<4x512xi32>
    %cst_24 = arith.constant 0.000000e+00 : f32
    %49 = vector.broadcast %cst_24 : f32 to vector<4x512xf32>
    %50 = arith.select %48, %45, %49 : vector<4x512xi1>, vector<4x512xf32>
    %51 = arith.truncf %50 : vector<4x512xf32> to vector<4x512xbf16>
    %c16_25 = arith.constant 16 : index
    %c0_26 = arith.constant 0 : index
    %52 = vector.load %arg7[%c16_25, %c0_26] : memref<192x512xbf16, #tpu.memory_space<vmem>>, vector<4x512xbf16>
    tpu.vector_store %arg7[%c16_25, %c0_26], %51 {strides = array<i32>} : memref<192x512xbf16, #tpu.memory_space<vmem>>, vector<4x512xbf16>,
    %c20 = arith.constant 20 : index
    %c0_27 = arith.constant 0 : index
    %53 = vector.load %arg8[%c20, %c0_27] : memref<192x512xbf16, #tpu.memory_space<vmem>>, vector<4x512xbf16>
    tpu.vector_store %arg8[%c20, %c0_27], %51 {strides = array<i32>} : memref<192x512xbf16, #tpu.memory_space<vmem>>, vector<4x512xbf16>,
    %c0_28 = arith.constant 0 : index
    %c2560 = arith.constant 2560 : index
    %54 = vector.load %arg1[%c0_28, %c2560] : memref<4x24576xf32, #tpu.memory_space<vmem>>, vector<4x512xf32>
    %c2560_i32 = arith.constant 2560 : i32
    %55 = arith.subi %8, %c2560_i32 : i32
    %56 = vector.broadcast %55 : i32 to vector<4x512xi32>
    %57 = arith.cmpi slt, %6, %56 : vector<4x512xi32>
    %cst_29 = arith.constant 0.000000e+00 : f32
    %58 = vector.broadcast %cst_29 : f32 to vector<4x512xf32>
    %59 = arith.select %57, %54, %58 : vector<4x512xi1>, vector<4x512xf32>
    %60 = arith.truncf %59 : vector<4x512xf32> to vector<4x512xbf16>
    %c20_30 = arith.constant 20 : index
    %c0_31 = arith.constant 0 : index
    %61 = vector.load %arg7[%c20_30, %c0_31] : memref<192x512xbf16, #tpu.memory_space<vmem>>, vector<4x512xbf16>
    tpu.vector_store %arg7[%c20_30, %c0_31], %60 {strides = array<i32>} : memref<192x512xbf16, #tpu.memory_space<vmem>>, vector<4x512xbf16>,
    %c24 = arith.constant 24 : index
    %c0_32 = arith.constant 0 : index
    %62 = vector.load %arg8[%c24, %c0_32] : memref<192x512xbf16, #tpu.memory_space<vmem>>, vector<4x512xbf16>
    tpu.vector_store %arg8[%c24, %c0_32], %60 {strides = array<i32>} : memref<192x512xbf16, #tpu.memory_space<vmem>>, vector<4x512xbf16>,
    %c0_33 = arith.constant 0 : index
    %c3072 = arith.constant 3072 : index
    %63 = vector.load %arg1[%c0_33, %c3072] : memref<4x24576xf32, #tpu.memory_space<vmem>>, vector<4x512xf32>
    %c3072_i32 = arith.constant 3072 : i32
    %64 = arith.subi %8, %c3072_i32 : i32
    %65 = vector.broadcast %64 : i32 to vector<4x512xi32>
    %66 = arith.cmpi slt, %6, %65 : vector<4x512xi32>
    %cst_34 = arith.constant 0.000000e+00 : f32
    %67 = vector.broadcast %cst_34 : f32 to vector<4x512xf32>
    %68 = arith.select %66, %63, %67 : vector<4x512xi1>, vector<4x512xf32>
    %69 = arith.truncf %68 : vector<4x512xf32> to vector<4x512xbf16>
    %c24_35 = arith.constant 24 : index
    %c0_36 = arith.constant 0 : index
    %70 = vector.load %arg7[%c24_35, %c0_36] : memref<192x512xbf16, #tpu.memory_space<vmem>>, vector<4x512xbf16>
    tpu.vector_store %arg7[%c24_35, %c0_36], %69 {strides = array<i32>} : memref<192x512xbf16, #tpu.memory_space<vmem>>, vector<4x512xbf16>,
    %c28 = arith.constant 28 : index
    %c0_37 = arith.constant 0 : index
    %71 = vector.load %arg8[%c28, %c0_37] : memref<192x512xbf16, #tpu.memory_space<vmem>>, vector<4x512xbf16>
    tpu.vector_store %arg8[%c28, %c0_37], %69 {strides = array<i32>} : memref<192x512xbf16, #tpu.memory_space<vmem>>, vector<4x512xbf16>,
    %c0_38 = arith.constant 0 : index
    %c3584 = arith.constant 3584 : index
    %72 = vector.load %arg1[%c0_38, %c3584] : memref<4x24576xf32, #tpu.memory_space<vmem>>, vector<4x512xf32>
    %c3584_i32 = arith.constant 3584 : i32
    %73 = arith.subi %8, %c3584_i32 : i32
    %74 = vector.broadcast %73 : i32 to vector<4x512xi32>
    %75 = arith.cmpi slt, %6, %74 : vector<4x512xi32>
    %cst_39 = arith.constant 0.000000e+00 : f32
    %76 = vector.broadcast %cst_39 : f32 to vector<4x512xf32>
    %77 = arith.select %75, %72, %76 : vector<4x512xi1>, vector<4x512xf32>
    %78 = arith.truncf %77 : vector<4x512xf32> to vector<4x512xbf16>
    %c28_40 = arith.constant 28 : index
    %c0_41 = arith.constant 0 : index
    %79 = vector.load %arg7[%c28_40, %c0_41] : memref<192x512xbf16, #tpu.memory_space<vmem>>, vector<4x512xbf16>
    tpu.vector_store %arg7[%c28_40, %c0_41], %78 {strides = array<i32>} : memref<192x512xbf16, #tpu.memory_space<vmem>>, vector<4x512xbf16>,
    %c32 = arith.constant 32 : index
    %c0_42 = arith.constant 0 : index
    %80 = vector.load %arg8[%c32, %c0_42] : memref<192x512xbf16, #tpu.memory_space<vmem>>, vector<4x512xbf16>
    tpu.vector_store %arg8[%c32, %c0_42], %78 {strides = array<i32>} : memref<192x512xbf16, #tpu.memory_space<vmem>>, vector<4x512xbf16>,
    %c0_43 = arith.constant 0 : index
    %c4096 = arith.constant 4096 : index
    %81 = vector.load %arg1[%c0_43, %c4096] : memref<4x24576xf32, #tpu.memory_space<vmem>>, vector<4x512xf32>
    %c4096_i32 = arith.constant 4096 : i32
    %82 = arith.subi %8, %c4096_i32 : i32
    %83 = vector.broadcast %82 : i32 to vector<4x512xi32>
    %84 = arith.cmpi slt, %6, %83 : vector<4x512xi32>
    %cst_44 = arith.constant 0.000000e+00 : f32
    %85 = vector.broadcast %cst_44 : f32 to vector<4x512xf32>
    %86 = arith.select %84, %81, %85 : vector<4x512xi1>, vector<4x512xf32>
    %87 = arith.truncf %86 : vector<4x512xf32> to vector<4x512xbf16>
    %c32_45 = arith.constant 32 : index
    %c0_46 = arith.constant 0 : index
    %88 = vector.load %arg7[%c32_45, %c0_46] : memref<192x512xbf16, #tpu.memory_space<vmem>>, vector<4x512xbf16>
    tpu.vector_store %arg7[%c32_45, %c0_46], %87 {strides = array<i32>} : memref<192x512xbf16, #tpu.memory_space<vmem>>, vector<4x512xbf16>,
    %c36 = arith.constant 36 : index
    %c0_47 = arith.constant 0 : index
    %89 = vector.load %arg8[%c36, %c0_47] : memref<192x512xbf16, #tpu.memory_space<vmem>>, vector<4x512xbf16>
    tpu.vector_store %arg8[%c36, %c0_47], %87 {strides = array<i32>} : memref<192x512xbf16, #tpu.memory_space<vmem>>, vector<4x512xbf16>,
    %c0_48 = arith.constant 0 : index
    %c4608 = arith.constant 4608 : index
    %90 = vector.load %arg1[%c0_48, %c4608] : memref<4x24576xf32, #tpu.memory_space<vmem>>, vector<4x512xf32>
    %c4608_i32 = arith.constant 4608 : i32
    %91 = arith.subi %8, %c4608_i32 : i32
    %92 = vector.broadcast %91 : i32 to vector<4x512xi32>
    %93 = arith.cmpi slt, %6, %92 : vector<4x512xi32>
    %cst_49 = arith.constant 0.000000e+00 : f32
    %94 = vector.broadcast %cst_49 : f32 to vector<4x512xf32>
    %95 = arith.select %93, %90, %94 : vector<4x512xi1>, vector<4x512xf32>
    %96 = arith.truncf %95 : vector<4x512xf32> to vector<4x512xbf16>
    %c36_50 = arith.constant 36 : index
    %c0_51 = arith.constant 0 : index
    %97 = vector.load %arg7[%c36_50, %c0_51] : memref<192x512xbf16, #tpu.memory_space<vmem>>, vector<4x512xbf16>
    tpu.vector_store %arg7[%c36_50, %c0_51], %96 {strides = array<i32>} : memref<192x512xbf16, #tpu.memory_space<vmem>>, vector<4x512xbf16>,
    %c40 = arith.constant 40 : index
    %c0_52 = arith.constant 0 : index
    %98 = vector.load %arg8[%c40, %c0_52] : memref<192x512xbf16, #tpu.memory_space<vmem>>, vector<4x512xbf16>
    tpu.vector_store %arg8[%c40, %c0_52], %96 {strides = array<i32>} : memref<192x512xbf16, #tpu.memory_space<vmem>>, vector<4x512xbf16>,
    %c0_53 = arith.constant 0 : index
    %c5120 = arith.constant 5120 : index
    %99 = vector.load %arg1[%c0_53, %c5120] : memref<4x24576xf32, #tpu.memory_space<vmem>>, vector<4x512xf32>
    %c5120_i32 = arith.constant 5120 : i32
    %100 = arith.subi %8, %c5120_i32 : i32
    %101 = vector.broadcast %100 : i32 to vector<4x512xi32>
    %102 = arith.cmpi slt, %6, %101 : vector<4x512xi32>
    %cst_54 = arith.constant 0.000000e+00 : f32
    %103 = vector.broadcast %cst_54 : f32 to vector<4x512xf32>
    %104 = arith.select %102, %99, %103 : vector<4x512xi1>, vector<4x512xf32>
    %105 = arith.truncf %104 : vector<4x512xf32> to vector<4x512xbf16>
    %c40_55 = arith.constant 40 : index
    %c0_56 = arith.constant 0 : index
    %106 = vector.load %arg7[%c40_55, %c0_56] : memref<192x512xbf16, #tpu.memory_space<vmem>>, vector<4x512xbf16>
    tpu.vector_store %arg7[%c40_55, %c0_56], %105 {strides = array<i32>} : memref<192x512xbf16, #tpu.memory_space<vmem>>, vector<4x512xbf16>,
    %c44 = arith.constant 44 : index
    %c0_57 = arith.constant 0 : index
    %107 = vector.load %arg8[%c44, %c0_57] : memref<192x512xbf16, #tpu.memory_space<vmem>>, vector<4x512xbf16>
    tpu.vector_store %arg8[%c44, %c0_57], %105 {strides = array<i32>} : memref<192x512xbf16, #tpu.memory_space<vmem>>, vector<4x512xbf16>,
    %c0_58 = arith.constant 0 : index
    %c5632 = arith.constant 5632 : index
    %108 = vector.load %arg1[%c0_58, %c5632] : memref<4x24576xf32, #tpu.memory_space<vmem>>, vector<4x512xf32>
    %c5632_i32 = arith.constant 5632 : i32
    %109 = arith.subi %8, %c5632_i32 : i32
    %110 = vector.broadcast %109 : i32 to vector<4x512xi32>
    %111 = arith.cmpi slt, %6, %110 : vector<4x512xi32>
    %cst_59 = arith.constant 0.000000e+00 : f32
    %112 = vector.broadcast %cst_59 : f32 to vector<4x512xf32>
    %113 = arith.select %111, %108, %112 : vector<4x512xi1>, vector<4x512xf32>
    %114 = arith.truncf %113 : vector<4x512xf32> to vector<4x512xbf16>
    %c44_60 = arith.constant 44 : index
    %c0_61 = arith.constant 0 : index
    %115 = vector.load %arg7[%c44_60, %c0_61] : memref<192x512xbf16, #tpu.memory_space<vmem>>, vector<4x512xbf16>
    tpu.vector_store %arg7[%c44_60, %c0_61], %114 {strides = array<i32>} : memref<192x512xbf16, #tpu.memory_space<vmem>>, vector<4x512xbf16>,
    %c48 = arith.constant 48 : index
    %c0_62 = arith.constant 0 : index
    %116 = vector.load %arg8[%c48, %c0_62] : memref<192x512xbf16, #tpu.memory_space<vmem>>, vector<4x512xbf16>
    tpu.vector_store %arg8[%c48, %c0_62], %114 {strides = array<i32>} : memref<192x512xbf16, #tpu.memory_space<vmem>>, vector<4x512xbf16>,
    %c0_63 = arith.constant 0 : index
    %c6144 = arith.constant 6144 : index
    %117 = vector.load %arg1[%c0_63, %c6144] : memref<4x24576xf32, #tpu.memory_space<vmem>>, vector<4x512xf32>
    %c6144_i32 = arith.constant 6144 : i32
    %118 = arith.subi %8, %c6144_i32 : i32
    %119 = vector.broadcast %118 : i32 to vector<4x512xi32>
    %120 = arith.cmpi slt, %6, %119 : vector<4x512xi32>
    %cst_64 = arith.constant 0.000000e+00 : f32
    %121 = vector.broadcast %cst_64 : f32 to vector<4x512xf32>
    %122 = arith.select %120, %117, %121 : vector<4x512xi1>, vector<4x512xf32>
    %123 = arith.truncf %122 : vector<4x512xf32> to vector<4x512xbf16>
    %c48_65 = arith.constant 48 : index
    %c0_66 = arith.constant 0 : index
    %124 = vector.load %arg7[%c48_65, %c0_66] : memref<192x512xbf16, #tpu.memory_space<vmem>>, vector<4x512xbf16>
    tpu.vector_store %arg7[%c48_65, %c0_66], %123 {strides = array<i32>} : memref<192x512xbf16, #tpu.memory_space<vmem>>, vector<4x512xbf16>,
    %c52 = arith.constant 52 : index
    %c0_67 = arith.constant 0 : index
    %125 = vector.load %arg8[%c52, %c0_67] : memref<192x512xbf16, #tpu.memory_space<vmem>>, vector<4x512xbf16>
    tpu.vector_store %arg8[%c52, %c0_67], %123 {strides = array<i32>} : memref<192x512xbf16, #tpu.memory_space<vmem>>, vector<4x512xbf16>,
    %c0_68 = arith.constant 0 : index
    %c6656 = arith.constant 6656 : index
    %126 = vector.load %arg1[%c0_68, %c6656] : memref<4x24576xf32, #tpu.memory_space<vmem>>, vector<4x512xf32>
    %c6656_i32 = arith.constant 6656 : i32
    %127 = arith.subi %8, %c6656_i32 : i32
    %128 = vector.broadcast %127 : i32 to vector<4x512xi32>
    %129 = arith.cmpi slt, %6, %128 : vector<4x512xi32>
    %cst_69 = arith.constant 0.000000e+00 : f32
    %130 = vector.broadcast %cst_69 : f32 to vector<4x512xf32>
    %131 = arith.select %129, %126, %130 : vector<4x512xi1>, vector<4x512xf32>
    %132 = arith.truncf %131 : vector<4x512xf32> to vector<4x512xbf16>
    %c52_70 = arith.constant 52 : index
    %c0_71 = arith.constant 0 : index
    %133 = vector.load %arg7[%c52_70, %c0_71] : memref<192x512xbf16, #tpu.memory_space<vmem>>, vector<4x512xbf16>
    tpu.vector_store %arg7[%c52_70, %c0_71], %132 {strides = array<i32>} : memref<192x512xbf16, #tpu.memory_space<vmem>>, vector<4x512xbf16>,
    %c56 = arith.constant 56 : index
    %c0_72 = arith.constant 0 : index
    %134 = vector.load %arg8[%c56, %c0_72] : memref<192x512xbf16, #tpu.memory_space<vmem>>, vector<4x512xbf16>
    tpu.vector_store %arg8[%c56, %c0_72], %132 {strides = array<i32>} : memref<192x512xbf16, #tpu.memory_space<vmem>>, vector<4x512xbf16>,
    %c0_73 = arith.constant 0 : index
    %c7168 = arith.constant 7168 : index
    %135 = vector.load %arg1[%c0_73, %c7168] : memref<4x24576xf32, #tpu.memory_space<vmem>>, vector<4x512xf32>
    %c7168_i32 = arith.constant 7168 : i32
    %136 = arith.subi %8, %c7168_i32 : i32
    %137 = vector.broadcast %136 : i32 to vector<4x512xi32>
    %138 = arith.cmpi slt, %6, %137 : vector<4x512xi32>
    %cst_74 = arith.constant 0.000000e+00 : f32
    %139 = vector.broadcast %cst_74 : f32 to vector<4x512xf32>
    %140 = arith.select %138, %135, %139 : vector<4x512xi1>, vector<4x512xf32>
    %141 = arith.truncf %140 : vector<4x512xf32> to vector<4x512xbf16>
    %c56_75 = arith.constant 56 : index
    %c0_76 = arith.constant 0 : index
    %142 = vector.load %arg7[%c56_75, %c0_76] : memref<192x512xbf16, #tpu.memory_space<vmem>>, vector<4x512xbf16>
    tpu.vector_store %arg7[%c56_75, %c0_76], %141 {strides = array<i32>} : memref<192x512xbf16, #tpu.memory_space<vmem>>, vector<4x512xbf16>,
    %c60 = arith.constant 60 : index
    %c0_77 = arith.constant 0 : index
    %143 = vector.load %arg8[%c60, %c0_77] : memref<192x512xbf16, #tpu.memory_space<vmem>>, vector<4x512xbf16>
    tpu.vector_store %arg8[%c60, %c0_77], %141 {strides = array<i32>} : memref<192x512xbf16, #tpu.memory_space<vmem>>, vector<4x512xbf16>,
    %c0_78 = arith.constant 0 : index
    %c7680 = arith.constant 7680 : index
    %144 = vector.load %arg1[%c0_78, %c7680] : memref<4x24576xf32, #tpu.memory_space<vmem>>, vector<4x512xf32>
    %c7680_i32 = arith.constant 7680 : i32
    %145 = arith.subi %8, %c7680_i32 : i32
    %146 = vector.broadcast %145 : i32 to vector<4x512xi32>
    %147 = arith.cmpi slt, %6, %146 : vector<4x512xi32>
    %cst_79 = arith.constant 0.000000e+00 : f32
    %148 = vector.broadcast %cst_79 : f32 to vector<4x512xf32>
    %149 = arith.select %147, %144, %148 : vector<4x512xi1>, vector<4x512xf32>
    %150 = arith.truncf %149 : vector<4x512xf32> to vector<4x512xbf16>
    %c60_80 = arith.constant 60 : index
    %c0_81 = arith.constant 0 : index
    %151 = vector.load %arg7[%c60_80, %c0_81] : memref<192x512xbf16, #tpu.memory_space<vmem>>, vector<4x512xbf16>
    tpu.vector_store %arg7[%c60_80, %c0_81], %150 {strides = array<i32>} : memref<192x512xbf16, #tpu.memory_space<vmem>>, vector<4x512xbf16>,
    %c64 = arith.constant 64 : index
    %c0_82 = arith.constant 0 : index
    %152 = vector.load %arg8[%c64, %c0_82] : memref<192x512xbf16, #tpu.memory_space<vmem>>, vector<4x512xbf16>
    tpu.vector_store %arg8[%c64, %c0_82], %150 {strides = array<i32>} : memref<192x512xbf16, #tpu.memory_space<vmem>>, vector<4x512xbf16>,
    %c0_83 = arith.constant 0 : index
    %c8192 = arith.constant 8192 : index
    %153 = vector.load %arg1[%c0_83, %c8192] : memref<4x24576xf32, #tpu.memory_space<vmem>>, vector<4x512xf32>
    %c8192_i32 = arith.constant 8192 : i32
    %154 = arith.subi %8, %c8192_i32 : i32
    %155 = vector.broadcast %154 : i32 to vector<4x512xi32>
    %156 = arith.cmpi slt, %6, %155 : vector<4x512xi32>
    %cst_84 = arith.constant 0.000000e+00 : f32
    %157 = vector.broadcast %cst_84 : f32 to vector<4x512xf32>
    %158 = arith.select %156, %153, %157 : vector<4x512xi1>, vector<4x512xf32>
    %159 = arith.truncf %158 : vector<4x512xf32> to vector<4x512xbf16>
    %c64_85 = arith.constant 64 : index
    %c0_86 = arith.constant 0 : index
    %160 = vector.load %arg7[%c64_85, %c0_86] : memref<192x512xbf16, #tpu.memory_space<vmem>>, vector<4x512xbf16>
    tpu.vector_store %arg7[%c64_85, %c0_86], %159 {strides = array<i32>} : memref<192x512xbf16, #tpu.memory_space<vmem>>, vector<4x512xbf16>,
    %c68 = arith.constant 68 : index
    %c0_87 = arith.constant 0 : index
    %161 = vector.load %arg8[%c68, %c0_87] : memref<192x512xbf16, #tpu.memory_space<vmem>>, vector<4x512xbf16>
    tpu.vector_store %arg8[%c68, %c0_87], %159 {strides = array<i32>} : memref<192x512xbf16, #tpu.memory_space<vmem>>, vector<4x512xbf16>,
    %c0_88 = arith.constant 0 : index
    %c8704 = arith.constant 8704 : index
    %162 = vector.load %arg1[%c0_88, %c8704] : memref<4x24576xf32, #tpu.memory_space<vmem>>, vector<4x512xf32>
    %c8704_i32 = arith.constant 8704 : i32
    %163 = arith.subi %8, %c8704_i32 : i32
    %164 = vector.broadcast %163 : i32 to vector<4x512xi32>
    %165 = arith.cmpi slt, %6, %164 : vector<4x512xi32>
    %cst_89 = arith.constant 0.000000e+00 : f32
    %166 = vector.broadcast %cst_89 : f32 to vector<4x512xf32>
    %167 = arith.select %165, %162, %166 : vector<4x512xi1>, vector<4x512xf32>
    %168 = arith.truncf %167 : vector<4x512xf32> to vector<4x512xbf16>
    %c68_90 = arith.constant 68 : index
    %c0_91 = arith.constant 0 : index
    %169 = vector.load %arg7[%c68_90, %c0_91] : memref<192x512xbf16, #tpu.memory_space<vmem>>, vector<4x512xbf16>
    tpu.vector_store %arg7[%c68_90, %c0_91], %168 {strides = array<i32>} : memref<192x512xbf16, #tpu.memory_space<vmem>>, vector<4x512xbf16>,
    %c72 = arith.constant 72 : index
    %c0_92 = arith.constant 0 : index
    %170 = vector.load %arg8[%c72, %c0_92] : memref<192x512xbf16, #tpu.memory_space<vmem>>, vector<4x512xbf16>
    tpu.vector_store %arg8[%c72, %c0_92], %168 {strides = array<i32>} : memref<192x512xbf16, #tpu.memory_space<vmem>>, vector<4x512xbf16>,
    %c0_93 = arith.constant 0 : index
    %c9216 = arith.constant 9216 : index
    %171 = vector.load %arg1[%c0_93, %c9216] : memref<4x24576xf32, #tpu.memory_space<vmem>>, vector<4x512xf32>
    %c9216_i32 = arith.constant 9216 : i32
    %172 = arith.subi %8, %c9216_i32 : i32
    %173 = vector.broadcast %172 : i32 to vector<4x512xi32>
    %174 = arith.cmpi slt, %6, %173 : vector<4x512xi32>
    %cst_94 = arith.constant 0.000000e+00 : f32
    %175 = vector.broadcast %cst_94 : f32 to vector<4x512xf32>
    %176 = arith.select %174, %171, %175 : vector<4x512xi1>, vector<4x512xf32>
    %177 = arith.truncf %176 : vector<4x512xf32> to vector<4x512xbf16>
    %c72_95 = arith.constant 72 : index
    %c0_96 = arith.constant 0 : index
    %178 = vector.load %arg7[%c72_95, %c0_96] : memref<192x512xbf16, #tpu.memory_space<vmem>>, vector<4x512xbf16>
    tpu.vector_store %arg7[%c72_95, %c0_96], %177 {strides = array<i32>} : memref<192x512xbf16, #tpu.memory_space<vmem>>, vector<4x512xbf16>,
    %c76 = arith.constant 76 : index
    %c0_97 = arith.constant 0 : index
    %179 = vector.load %arg8[%c76, %c0_97] : memref<192x512xbf16, #tpu.memory_space<vmem>>, vector<4x512xbf16>
    tpu.vector_store %arg8[%c76, %c0_97], %177 {strides = array<i32>} : memref<192x512xbf16, #tpu.memory_space<vmem>>, vector<4x512xbf16>,
    %c0_98 = arith.constant 0 : index
    %c9728 = arith.constant 9728 : index
    %180 = vector.load %arg1[%c0_98, %c9728] : memref<4x24576xf32, #tpu.memory_space<vmem>>, vector<4x512xf32>
    %c9728_i32 = arith.constant 9728 : i32
    %181 = arith.subi %8, %c9728_i32 : i32
    %182 = vector.broadcast %181 : i32 to vector<4x512xi32>
    %183 = arith.cmpi slt, %6, %182 : vector<4x512xi32>
    %cst_99 = arith.constant 0.000000e+00 : f32
    %184 = vector.broadcast %cst_99 : f32 to vector<4x512xf32>
    %185 = arith.select %183, %180, %184 : vector<4x512xi1>, vector<4x512xf32>
    %186 = arith.truncf %185 : vector<4x512xf32> to vector<4x512xbf16>
    %c76_100 = arith.constant 76 : index
    %c0_101 = arith.constant 0 : index
    %187 = vector.load %arg7[%c76_100, %c0_101] : memref<192x512xbf16, #tpu.memory_space<vmem>>, vector<4x512xbf16>
    tpu.vector_store %arg7[%c76_100, %c0_101], %186 {strides = array<i32>} : memref<192x512xbf16, #tpu.memory_space<vmem>>, vector<4x512xbf16>,
    %c80 = arith.constant 80 : index
    %c0_102 = arith.constant 0 : index
    %188 = vector.load %arg8[%c80, %c0_102] : memref<192x512xbf16, #tpu.memory_space<vmem>>, vector<4x512xbf16>
    tpu.vector_store %arg8[%c80, %c0_102], %186 {strides = array<i32>} : memref<192x512xbf16, #tpu.memory_space<vmem>>, vector<4x512xbf16>,
    %c0_103 = arith.constant 0 : index
    %c10240 = arith.constant 10240 : index
    %189 = vector.load %arg1[%c0_103, %c10240] : memref<4x24576xf32, #tpu.memory_space<vmem>>, vector<4x512xf32>
    %c10240_i32 = arith.constant 10240 : i32
    %190 = arith.subi %8, %c10240_i32 : i32
    %191 = vector.broadcast %190 : i32 to vector<4x512xi32>
    %192 = arith.cmpi slt, %6, %191 : vector<4x512xi32>
    %cst_104 = arith.constant 0.000000e+00 : f32
    %193 = vector.broadcast %cst_104 : f32 to vector<4x512xf32>
    %194 = arith.select %192, %189, %193 : vector<4x512xi1>, vector<4x512xf32>
    %195 = arith.truncf %194 : vector<4x512xf32> to vector<4x512xbf16>
    %c80_105 = arith.constant 80 : index
    %c0_106 = arith.constant 0 : index
    %196 = vector.load %arg7[%c80_105, %c0_106] : memref<192x512xbf16, #tpu.memory_space<vmem>>, vector<4x512xbf16>
    tpu.vector_store %arg7[%c80_105, %c0_106], %195 {strides = array<i32>} : memref<192x512xbf16, #tpu.memory_space<vmem>>, vector<4x512xbf16>,
    %c84 = arith.constant 84 : index
    %c0_107 = arith.constant 0 : index
    %197 = vector.load %arg8[%c84, %c0_107] : memref<192x512xbf16, #tpu.memory_space<vmem>>, vector<4x512xbf16>
    tpu.vector_store %arg8[%c84, %c0_107], %195 {strides = array<i32>} : memref<192x512xbf16, #tpu.memory_space<vmem>>, vector<4x512xbf16>,
    %c0_108 = arith.constant 0 : index
    %c10752 = arith.constant 10752 : index
    %198 = vector.load %arg1[%c0_108, %c10752] : memref<4x24576xf32, #tpu.memory_space<vmem>>, vector<4x512xf32>
    %c10752_i32 = arith.constant 10752 : i32
    %199 = arith.subi %8, %c10752_i32 : i32
    %200 = vector.broadcast %199 : i32 to vector<4x512xi32>
    %201 = arith.cmpi slt, %6, %200 : vector<4x512xi32>
    %cst_109 = arith.constant 0.000000e+00 : f32
    %202 = vector.broadcast %cst_109 : f32 to vector<4x512xf32>
    %203 = arith.select %201, %198, %202 : vector<4x512xi1>, vector<4x512xf32>
    %204 = arith.truncf %203 : vector<4x512xf32> to vector<4x512xbf16>
    %c84_110 = arith.constant 84 : index
    %c0_111 = arith.constant 0 : index
    %205 = vector.load %arg7[%c84_110, %c0_111] : memref<192x512xbf16, #tpu.memory_space<vmem>>, vector<4x512xbf16>
    tpu.vector_store %arg7[%c84_110, %c0_111], %204 {strides = array<i32>} : memref<192x512xbf16, #tpu.memory_space<vmem>>, vector<4x512xbf16>,
    %c88 = arith.constant 88 : index
    %c0_112 = arith.constant 0 : index
    %206 = vector.load %arg8[%c88, %c0_112] : memref<192x512xbf16, #tpu.memory_space<vmem>>, vector<4x512xbf16>
    tpu.vector_store %arg8[%c88, %c0_112], %204 {strides = array<i32>} : memref<192x512xbf16, #tpu.memory_space<vmem>>, vector<4x512xbf16>,
    %c0_113 = arith.constant 0 : index
    %c11264 = arith.constant 11264 : index
    %207 = vector.load %arg1[%c0_113, %c11264] : memref<4x24576xf32, #tpu.memory_space<vmem>>, vector<4x512xf32>
    %c11264_i32 = arith.constant 11264 : i32
    %208 = arith.subi %8, %c11264_i32 : i32
    %209 = vector.broadcast %208 : i32 to vector<4x512xi32>
    %210 = arith.cmpi slt, %6, %209 : vector<4x512xi32>
    %cst_114 = arith.constant 0.000000e+00 : f32
    %211 = vector.broadcast %cst_114 : f32 to vector<4x512xf32>
    %212 = arith.select %210, %207, %211 : vector<4x512xi1>, vector<4x512xf32>
    %213 = arith.truncf %212 : vector<4x512xf32> to vector<4x512xbf16>
    %c88_115 = arith.constant 88 : index
    %c0_116 = arith.constant 0 : index
    %214 = vector.load %arg7[%c88_115, %c0_116] : memref<192x512xbf16, #tpu.memory_space<vmem>>, vector<4x512xbf16>
    tpu.vector_store %arg7[%c88_115, %c0_116], %213 {strides = array<i32>} : memref<192x512xbf16, #tpu.memory_space<vmem>>, vector<4x512xbf16>,
    %c92 = arith.constant 92 : index
    %c0_117 = arith.constant 0 : index
    %215 = vector.load %arg8[%c92, %c0_117] : memref<192x512xbf16, #tpu.memory_space<vmem>>, vector<4x512xbf16>
    tpu.vector_store %arg8[%c92, %c0_117], %213 {strides = array<i32>} : memref<192x512xbf16, #tpu.memory_space<vmem>>, vector<4x512xbf16>,
    %c0_118 = arith.constant 0 : index
    %c11776 = arith.constant 11776 : index
    %216 = vector.load %arg1[%c0_118, %c11776] : memref<4x24576xf32, #tpu.memory_space<vmem>>, vector<4x512xf32>
    %c11776_i32 = arith.constant 11776 : i32
    %217 = arith.subi %8, %c11776_i32 : i32
    %218 = vector.broadcast %217 : i32 to vector<4x512xi32>
    %219 = arith.cmpi slt, %6, %218 : vector<4x512xi32>
    %cst_119 = arith.constant 0.000000e+00 : f32
    %220 = vector.broadcast %cst_119 : f32 to vector<4x512xf32>
    %221 = arith.select %219, %216, %220 : vector<4x512xi1>, vector<4x512xf32>
    %222 = arith.truncf %221 : vector<4x512xf32> to vector<4x512xbf16>
    %c92_120 = arith.constant 92 : index
    %c0_121 = arith.constant 0 : index
    %223 = vector.load %arg7[%c92_120, %c0_121] : memref<192x512xbf16, #tpu.memory_space<vmem>>, vector<4x512xbf16>
    tpu.vector_store %arg7[%c92_120, %c0_121], %222 {strides = array<i32>} : memref<192x512xbf16, #tpu.memory_space<vmem>>, vector<4x512xbf16>,
    %c96 = arith.constant 96 : index
    %c0_122 = arith.constant 0 : index
    %224 = vector.load %arg8[%c96, %c0_122] : memref<192x512xbf16, #tpu.memory_space<vmem>>, vector<4x512xbf16>
    tpu.vector_store %arg8[%c96, %c0_122], %222 {strides = array<i32>} : memref<192x512xbf16, #tpu.memory_space<vmem>>, vector<4x512xbf16>,
    %c0_123 = arith.constant 0 : index
    %c12288 = arith.constant 12288 : index
    %225 = vector.load %arg1[%c0_123, %c12288] : memref<4x24576xf32, #tpu.memory_space<vmem>>, vector<4x512xf32>
    %c12288_i32 = arith.constant 12288 : i32
    %226 = arith.subi %8, %c12288_i32 : i32
    %227 = vector.broadcast %226 : i32 to vector<4x512xi32>
    %228 = arith.cmpi slt, %6, %227 : vector<4x512xi32>
    %cst_124 = arith.constant 0.000000e+00 : f32
    %229 = vector.broadcast %cst_124 : f32 to vector<4x512xf32>
    %230 = arith.select %228, %225, %229 : vector<4x512xi1>, vector<4x512xf32>
    %231 = arith.truncf %230 : vector<4x512xf32> to vector<4x512xbf16>
    %c96_125 = arith.constant 96 : index
    %c0_126 = arith.constant 0 : index
    %232 = vector.load %arg7[%c96_125, %c0_126] : memref<192x512xbf16, #tpu.memory_space<vmem>>, vector<4x512xbf16>
    tpu.vector_store %arg7[%c96_125, %c0_126], %231 {strides = array<i32>} : memref<192x512xbf16, #tpu.memory_space<vmem>>, vector<4x512xbf16>,
    %c100 = arith.constant 100 : index
    %c0_127 = arith.constant 0 : index
    %233 = vector.load %arg8[%c100, %c0_127] : memref<192x512xbf16, #tpu.memory_space<vmem>>, vector<4x512xbf16>
    tpu.vector_store %arg8[%c100, %c0_127], %231 {strides = array<i32>} : memref<192x512xbf16, #tpu.memory_space<vmem>>, vector<4x512xbf16>,
    %c0_128 = arith.constant 0 : index
    %c12800 = arith.constant 12800 : index
    %234 = vector.load %arg1[%c0_128, %c12800] : memref<4x24576xf32, #tpu.memory_space<vmem>>, vector<4x512xf32>
    %c12800_i32 = arith.constant 12800 : i32
    %235 = arith.subi %8, %c12800_i32 : i32
    %236 = vector.broadcast %235 : i32 to vector<4x512xi32>
    %237 = arith.cmpi slt, %6, %236 : vector<4x512xi32>
    %cst_129 = arith.constant 0.000000e+00 : f32
    %238 = vector.broadcast %cst_129 : f32 to vector<4x512xf32>
    %239 = arith.select %237, %234, %238 : vector<4x512xi1>, vector<4x512xf32>
    %240 = arith.truncf %239 : vector<4x512xf32> to vector<4x512xbf16>
    %c100_130 = arith.constant 100 : index
    %c0_131 = arith.constant 0 : index
    %241 = vector.load %arg7[%c100_130, %c0_131] : memref<192x512xbf16, #tpu.memory_space<vmem>>, vector<4x512xbf16>
    tpu.vector_store %arg7[%c100_130, %c0_131], %240 {strides = array<i32>} : memref<192x512xbf16, #tpu.memory_space<vmem>>, vector<4x512xbf16>,
    %c104 = arith.constant 104 : index
    %c0_132 = arith.constant 0 : index
    %242 = vector.load %arg8[%c104, %c0_132] : memref<192x512xbf16, #tpu.memory_space<vmem>>, vector<4x512xbf16>
    tpu.vector_store %arg8[%c104, %c0_132], %240 {strides = array<i32>} : memref<192x512xbf16, #tpu.memory_space<vmem>>, vector<4x512xbf16>,
    %c0_133 = arith.constant 0 : index
    %c13312 = arith.constant 13312 : index
    %243 = vector.load %arg1[%c0_133, %c13312] : memref<4x24576xf32, #tpu.memory_space<vmem>>, vector<4x512xf32>
    %c13312_i32 = arith.constant 13312 : i32
    %244 = arith.subi %8, %c13312_i32 : i32
    %245 = vector.broadcast %244 : i32 to vector<4x512xi32>
    %246 = arith.cmpi slt, %6, %245 : vector<4x512xi32>
    %cst_134 = arith.constant 0.000000e+00 : f32
    %247 = vector.broadcast %cst_134 : f32 to vector<4x512xf32>
    %248 = arith.select %246, %243, %247 : vector<4x512xi1>, vector<4x512xf32>
    %249 = arith.truncf %248 : vector<4x512xf32> to vector<4x512xbf16>
    %c104_135 = arith.constant 104 : index
    %c0_136 = arith.constant 0 : index
    %250 = vector.load %arg7[%c104_135, %c0_136] : memref<192x512xbf16, #tpu.memory_space<vmem>>, vector<4x512xbf16>
    tpu.vector_store %arg7[%c104_135, %c0_136], %249 {strides = array<i32>} : memref<192x512xbf16, #tpu.memory_space<vmem>>, vector<4x512xbf16>,
    %c108 = arith.constant 108 : index
    %c0_137 = arith.constant 0 : index
    %251 = vector.load %arg8[%c108, %c0_137] : memref<192x512xbf16, #tpu.memory_space<vmem>>, vector<4x512xbf16>
    tpu.vector_store %arg8[%c108, %c0_137], %249 {strides = array<i32>} : memref<192x512xbf16, #tpu.memory_space<vmem>>, vector<4x512xbf16>,
    %c0_138 = arith.constant 0 : index
    %c13824 = arith.constant 13824 : index
    %252 = vector.load %arg1[%c0_138, %c13824] : memref<4x24576xf32, #tpu.memory_space<vmem>>, vector<4x512xf32>
    %c13824_i32 = arith.constant 13824 : i32
    %253 = arith.subi %8, %c13824_i32 : i32
    %254 = vector.broadcast %253 : i32 to vector<4x512xi32>
    %255 = arith.cmpi slt, %6, %254 : vector<4x512xi32>
    %cst_139 = arith.constant 0.000000e+00 : f32
    %256 = vector.broadcast %cst_139 : f32 to vector<4x512xf32>
    %257 = arith.select %255, %252, %256 : vector<4x512xi1>, vector<4x512xf32>
    %258 = arith.truncf %257 : vector<4x512xf32> to vector<4x512xbf16>
    %c108_140 = arith.constant 108 : index
    %c0_141 = arith.constant 0 : index
    %259 = vector.load %arg7[%c108_140, %c0_141] : memref<192x512xbf16, #tpu.memory_space<vmem>>, vector<4x512xbf16>
    tpu.vector_store %arg7[%c108_140, %c0_141], %258 {strides = array<i32>} : memref<192x512xbf16, #tpu.memory_space<vmem>>, vector<4x512xbf16>,
    %c112 = arith.constant 112 : index
    %c0_142 = arith.constant 0 : index
    %260 = vector.load %arg8[%c112, %c0_142] : memref<192x512xbf16, #tpu.memory_space<vmem>>, vector<4x512xbf16>
    tpu.vector_store %arg8[%c112, %c0_142], %258 {strides = array<i32>} : memref<192x512xbf16, #tpu.memory_space<vmem>>, vector<4x512xbf16>,
    %c0_143 = arith.constant 0 : index
    %c14336 = arith.constant 14336 : index
    %261 = vector.load %arg1[%c0_143, %c14336] : memref<4x24576xf32, #tpu.memory_space<vmem>>, vector<4x512xf32>
    %c14336_i32 = arith.constant 14336 : i32
    %262 = arith.subi %8, %c14336_i32 : i32
    %263 = vector.broadcast %262 : i32 to vector<4x512xi32>
    %264 = arith.cmpi slt, %6, %263 : vector<4x512xi32>
    %cst_144 = arith.constant 0.000000e+00 : f32
    %265 = vector.broadcast %cst_144 : f32 to vector<4x512xf32>
    %266 = arith.select %264, %261, %265 : vector<4x512xi1>, vector<4x512xf32>
    %267 = arith.truncf %266 : vector<4x512xf32> to vector<4x512xbf16>
    %c112_145 = arith.constant 112 : index
    %c0_146 = arith.constant 0 : index
    %268 = vector.load %arg7[%c112_145, %c0_146] : memref<192x512xbf16, #tpu.memory_space<vmem>>, vector<4x512xbf16>
    tpu.vector_store %arg7[%c112_145, %c0_146], %267 {strides = array<i32>} : memref<192x512xbf16, #tpu.memory_space<vmem>>, vector<4x512xbf16>,
    %c116 = arith.constant 116 : index
    %c0_147 = arith.constant 0 : index
    %269 = vector.load %arg8[%c116, %c0_147] : memref<192x512xbf16, #tpu.memory_space<vmem>>, vector<4x512xbf16>
    tpu.vector_store %arg8[%c116, %c0_147], %267 {strides = array<i32>} : memref<192x512xbf16, #tpu.memory_space<vmem>>, vector<4x512xbf16>,
    %c0_148 = arith.constant 0 : index
    %c14848 = arith.constant 14848 : index
    %270 = vector.load %arg1[%c0_148, %c14848] : memref<4x24576xf32, #tpu.memory_space<vmem>>, vector<4x512xf32>
    %c14848_i32 = arith.constant 14848 : i32
    %271 = arith.subi %8, %c14848_i32 : i32
    %272 = vector.broadcast %271 : i32 to vector<4x512xi32>
    %273 = arith.cmpi slt, %6, %272 : vector<4x512xi32>
    %cst_149 = arith.constant 0.000000e+00 : f32
    %274 = vector.broadcast %cst_149 : f32 to vector<4x512xf32>
    %275 = arith.select %273, %270, %274 : vector<4x512xi1>, vector<4x512xf32>
    %276 = arith.truncf %275 : vector<4x512xf32> to vector<4x512xbf16>
    %c116_150 = arith.constant 116 : index
    %c0_151 = arith.constant 0 : index
    %277 = vector.load %arg7[%c116_150, %c0_151] : memref<192x512xbf16, #tpu.memory_space<vmem>>, vector<4x512xbf16>
    tpu.vector_store %arg7[%c116_150, %c0_151], %276 {strides = array<i32>} : memref<192x512xbf16, #tpu.memory_space<vmem>>, vector<4x512xbf16>,
    %c120 = arith.constant 120 : index
    %c0_152 = arith.constant 0 : index
    %278 = vector.load %arg8[%c120, %c0_152] : memref<192x512xbf16, #tpu.memory_space<vmem>>, vector<4x512xbf16>
    tpu.vector_store %arg8[%c120, %c0_152], %276 {strides = array<i32>} : memref<192x512xbf16, #tpu.memory_space<vmem>>, vector<4x512xbf16>,
    %c0_153 = arith.constant 0 : index
    %c15360 = arith.constant 15360 : index
    %279 = vector.load %arg1[%c0_153, %c15360] : memref<4x24576xf32, #tpu.memory_space<vmem>>, vector<4x512xf32>
    %c15360_i32 = arith.constant 15360 : i32
    %280 = arith.subi %8, %c15360_i32 : i32
    %281 = vector.broadcast %280 : i32 to vector<4x512xi32>
    %282 = arith.cmpi slt, %6, %281 : vector<4x512xi32>
    %cst_154 = arith.constant 0.000000e+00 : f32
    %283 = vector.broadcast %cst_154 : f32 to vector<4x512xf32>
    %284 = arith.select %282, %279, %283 : vector<4x512xi1>, vector<4x512xf32>
    %285 = arith.truncf %284 : vector<4x512xf32> to vector<4x512xbf16>
    %c120_155 = arith.constant 120 : index
    %c0_156 = arith.constant 0 : index
    %286 = vector.load %arg7[%c120_155, %c0_156] : memref<192x512xbf16, #tpu.memory_space<vmem>>, vector<4x512xbf16>
    tpu.vector_store %arg7[%c120_155, %c0_156], %285 {strides = array<i32>} : memref<192x512xbf16, #tpu.memory_space<vmem>>, vector<4x512xbf16>,
    %c124 = arith.constant 124 : index
    %c0_157 = arith.constant 0 : index
    %287 = vector.load %arg8[%c124, %c0_157] : memref<192x512xbf16, #tpu.memory_space<vmem>>, vector<4x512xbf16>
    tpu.vector_store %arg8[%c124, %c0_157], %285 {strides = array<i32>} : memref<192x512xbf16, #tpu.memory_space<vmem>>, vector<4x512xbf16>,
    %c0_158 = arith.constant 0 : index
    %c15872 = arith.constant 15872 : index
    %288 = vector.load %arg1[%c0_158, %c15872] : memref<4x24576xf32, #tpu.memory_space<vmem>>, vector<4x512xf32>
    %c15872_i32 = arith.constant 15872 : i32
    %289 = arith.subi %8, %c15872_i32 : i32
    %290 = vector.broadcast %289 : i32 to vector<4x512xi32>
    %291 = arith.cmpi slt, %6, %290 : vector<4x512xi32>
    %cst_159 = arith.constant 0.000000e+00 : f32
    %292 = vector.broadcast %cst_159 : f32 to vector<4x512xf32>
    %293 = arith.select %291, %288, %292 : vector<4x512xi1>, vector<4x512xf32>
    %294 = arith.truncf %293 : vector<4x512xf32> to vector<4x512xbf16>
    %c124_160 = arith.constant 124 : index
    %c0_161 = arith.constant 0 : index
    %295 = vector.load %arg7[%c124_160, %c0_161] : memref<192x512xbf16, #tpu.memory_space<vmem>>, vector<4x512xbf16>
    tpu.vector_store %arg7[%c124_160, %c0_161], %294 {strides = array<i32>} : memref<192x512xbf16, #tpu.memory_space<vmem>>, vector<4x512xbf16>,
    %c128 = arith.constant 128 : index
    %c0_162 = arith.constant 0 : index
    %296 = vector.load %arg8[%c128, %c0_162] : memref<192x512xbf16, #tpu.memory_space<vmem>>, vector<4x512xbf16>
    tpu.vector_store %arg8[%c128, %c0_162], %294 {strides = array<i32>} : memref<192x512xbf16, #tpu.memory_space<vmem>>, vector<4x512xbf16>,
    %c0_163 = arith.constant 0 : index
    %c16384 = arith.constant 16384 : index
    %297 = vector.load %arg1[%c0_163, %c16384] : memref<4x24576xf32, #tpu.memory_space<vmem>>, vector<4x512xf32>
    %c16384_i32 = arith.constant 16384 : i32
    %298 = arith.subi %8, %c16384_i32 : i32
    %299 = vector.broadcast %298 : i32 to vector<4x512xi32>
    %300 = arith.cmpi slt, %6, %299 : vector<4x512xi32>
    %cst_164 = arith.constant 0.000000e+00 : f32
    %301 = vector.broadcast %cst_164 : f32 to vector<4x512xf32>
    %302 = arith.select %300, %297, %301 : vector<4x512xi1>, vector<4x512xf32>
    %303 = arith.truncf %302 : vector<4x512xf32> to vector<4x512xbf16>
    %c128_165 = arith.constant 128 : index
    %c0_166 = arith.constant 0 : index
    %304 = vector.load %arg7[%c128_165, %c0_166] : memref<192x512xbf16, #tpu.memory_space<vmem>>, vector<4x512xbf16>
    tpu.vector_store %arg7[%c128_165, %c0_166], %303 {strides = array<i32>} : memref<192x512xbf16, #tpu.memory_space<vmem>>, vector<4x512xbf16>,
    %c132 = arith.constant 132 : index
    %c0_167 = arith.constant 0 : index
    %305 = vector.load %arg8[%c132, %c0_167] : memref<192x512xbf16, #tpu.memory_space<vmem>>, vector<4x512xbf16>
    tpu.vector_store %arg8[%c132, %c0_167], %303 {strides = array<i32>} : memref<192x512xbf16, #tpu.memory_space<vmem>>, vector<4x512xbf16>,
    %c0_168 = arith.constant 0 : index
    %c16896 = arith.constant 16896 : index
    %306 = vector.load %arg1[%c0_168, %c16896] : memref<4x24576xf32, #tpu.memory_space<vmem>>, vector<4x512xf32>
    %c16896_i32 = arith.constant 16896 : i32
    %307 = arith.subi %8, %c16896_i32 : i32
    %308 = vector.broadcast %307 : i32 to vector<4x512xi32>
    %309 = arith.cmpi slt, %6, %308 : vector<4x512xi32>
    %cst_169 = arith.constant 0.000000e+00 : f32
    %310 = vector.broadcast %cst_169 : f32 to vector<4x512xf32>
    %311 = arith.select %309, %306, %310 : vector<4x512xi1>, vector<4x512xf32>
    %312 = arith.truncf %311 : vector<4x512xf32> to vector<4x512xbf16>
    %c132_170 = arith.constant 132 : index
    %c0_171 = arith.constant 0 : index
    %313 = vector.load %arg7[%c132_170, %c0_171] : memref<192x512xbf16, #tpu.memory_space<vmem>>, vector<4x512xbf16>
    tpu.vector_store %arg7[%c132_170, %c0_171], %312 {strides = array<i32>} : memref<192x512xbf16, #tpu.memory_space<vmem>>, vector<4x512xbf16>,
    %c136 = arith.constant 136 : index
    %c0_172 = arith.constant 0 : index
    %314 = vector.load %arg8[%c136, %c0_172] : memref<192x512xbf16, #tpu.memory_space<vmem>>, vector<4x512xbf16>
    tpu.vector_store %arg8[%c136, %c0_172], %312 {strides = array<i32>} : memref<192x512xbf16, #tpu.memory_space<vmem>>, vector<4x512xbf16>,
    %c0_173 = arith.constant 0 : index
    %c17408 = arith.constant 17408 : index
    %315 = vector.load %arg1[%c0_173, %c17408] : memref<4x24576xf32, #tpu.memory_space<vmem>>, vector<4x512xf32>
    %c17408_i32 = arith.constant 17408 : i32
    %316 = arith.subi %8, %c17408_i32 : i32
    %317 = vector.broadcast %316 : i32 to vector<4x512xi32>
    %318 = arith.cmpi slt, %6, %317 : vector<4x512xi32>
    %cst_174 = arith.constant 0.000000e+00 : f32
    %319 = vector.broadcast %cst_174 : f32 to vector<4x512xf32>
    %320 = arith.select %318, %315, %319 : vector<4x512xi1>, vector<4x512xf32>
    %321 = arith.truncf %320 : vector<4x512xf32> to vector<4x512xbf16>
    %c136_175 = arith.constant 136 : index
    %c0_176 = arith.constant 0 : index
    %322 = vector.load %arg7[%c136_175, %c0_176] : memref<192x512xbf16, #tpu.memory_space<vmem>>, vector<4x512xbf16>
    tpu.vector_store %arg7[%c136_175, %c0_176], %321 {strides = array<i32>} : memref<192x512xbf16, #tpu.memory_space<vmem>>, vector<4x512xbf16>,
    %c140 = arith.constant 140 : index
    %c0_177 = arith.constant 0 : index
    %323 = vector.load %arg8[%c140, %c0_177] : memref<192x512xbf16, #tpu.memory_space<vmem>>, vector<4x512xbf16>
    tpu.vector_store %arg8[%c140, %c0_177], %321 {strides = array<i32>} : memref<192x512xbf16, #tpu.memory_space<vmem>>, vector<4x512xbf16>,
    %c0_178 = arith.constant 0 : index
    %c17920 = arith.constant 17920 : index
    %324 = vector.load %arg1[%c0_178, %c17920] : memref<4x24576xf32, #tpu.memory_space<vmem>>, vector<4x512xf32>
    %c17920_i32 = arith.constant 17920 : i32
    %325 = arith.subi %8, %c17920_i32 : i32
    %326 = vector.broadcast %325 : i32 to vector<4x512xi32>
    %327 = arith.cmpi slt, %6, %326 : vector<4x512xi32>
    %cst_179 = arith.constant 0.000000e+00 : f32
    %328 = vector.broadcast %cst_179 : f32 to vector<4x512xf32>
    %329 = arith.select %327, %324, %328 : vector<4x512xi1>, vector<4x512xf32>
    %330 = arith.truncf %329 : vector<4x512xf32> to vector<4x512xbf16>
    %c140_180 = arith.constant 140 : index
    %c0_181 = arith.constant 0 : index
    %331 = vector.load %arg7[%c140_180, %c0_181] : memref<192x512xbf16, #tpu.memory_space<vmem>>, vector<4x512xbf16>
    tpu.vector_store %arg7[%c140_180, %c0_181], %330 {strides = array<i32>} : memref<192x512xbf16, #tpu.memory_space<vmem>>, vector<4x512xbf16>,
    %c144 = arith.constant 144 : index
    %c0_182 = arith.constant 0 : index
    %332 = vector.load %arg8[%c144, %c0_182] : memref<192x512xbf16, #tpu.memory_space<vmem>>, vector<4x512xbf16>
    tpu.vector_store %arg8[%c144, %c0_182], %330 {strides = array<i32>} : memref<192x512xbf16, #tpu.memory_space<vmem>>, vector<4x512xbf16>,
    %c0_183 = arith.constant 0 : index
    %c18432 = arith.constant 18432 : index
    %333 = vector.load %arg1[%c0_183, %c18432] : memref<4x24576xf32, #tpu.memory_space<vmem>>, vector<4x512xf32>
    %c18432_i32 = arith.constant 18432 : i32
    %334 = arith.subi %8, %c18432_i32 : i32
    %335 = vector.broadcast %334 : i32 to vector<4x512xi32>
    %336 = arith.cmpi slt, %6, %335 : vector<4x512xi32>
    %cst_184 = arith.constant 0.000000e+00 : f32
    %337 = vector.broadcast %cst_184 : f32 to vector<4x512xf32>
    %338 = arith.select %336, %333, %337 : vector<4x512xi1>, vector<4x512xf32>
    %339 = arith.truncf %338 : vector<4x512xf32> to vector<4x512xbf16>
    %c144_185 = arith.constant 144 : index
    %c0_186 = arith.constant 0 : index
    %340 = vector.load %arg7[%c144_185, %c0_186] : memref<192x512xbf16, #tpu.memory_space<vmem>>, vector<4x512xbf16>
    tpu.vector_store %arg7[%c144_185, %c0_186], %339 {strides = array<i32>} : memref<192x512xbf16, #tpu.memory_space<vmem>>, vector<4x512xbf16>,
    %c148 = arith.constant 148 : index
    %c0_187 = arith.constant 0 : index
    %341 = vector.load %arg8[%c148, %c0_187] : memref<192x512xbf16, #tpu.memory_space<vmem>>, vector<4x512xbf16>
    tpu.vector_store %arg8[%c148, %c0_187], %339 {strides = array<i32>} : memref<192x512xbf16, #tpu.memory_space<vmem>>, vector<4x512xbf16>,
    %c0_188 = arith.constant 0 : index
    %c18944 = arith.constant 18944 : index
    %342 = vector.load %arg1[%c0_188, %c18944] : memref<4x24576xf32, #tpu.memory_space<vmem>>, vector<4x512xf32>
    %c18944_i32 = arith.constant 18944 : i32
    %343 = arith.subi %8, %c18944_i32 : i32
    %344 = vector.broadcast %343 : i32 to vector<4x512xi32>
    %345 = arith.cmpi slt, %6, %344 : vector<4x512xi32>
    %cst_189 = arith.constant 0.000000e+00 : f32
    %346 = vector.broadcast %cst_189 : f32 to vector<4x512xf32>
    %347 = arith.select %345, %342, %346 : vector<4x512xi1>, vector<4x512xf32>
    %348 = arith.truncf %347 : vector<4x512xf32> to vector<4x512xbf16>
    %c148_190 = arith.constant 148 : index
    %c0_191 = arith.constant 0 : index
    %349 = vector.load %arg7[%c148_190, %c0_191] : memref<192x512xbf16, #tpu.memory_space<vmem>>, vector<4x512xbf16>
    tpu.vector_store %arg7[%c148_190, %c0_191], %348 {strides = array<i32>} : memref<192x512xbf16, #tpu.memory_space<vmem>>, vector<4x512xbf16>,
    %c152 = arith.constant 152 : index
    %c0_192 = arith.constant 0 : index
    %350 = vector.load %arg8[%c152, %c0_192] : memref<192x512xbf16, #tpu.memory_space<vmem>>, vector<4x512xbf16>
    tpu.vector_store %arg8[%c152, %c0_192], %348 {strides = array<i32>} : memref<192x512xbf16, #tpu.memory_space<vmem>>, vector<4x512xbf16>,
    %c0_193 = arith.constant 0 : index
    %c19456 = arith.constant 19456 : index
    %351 = vector.load %arg1[%c0_193, %c19456] : memref<4x24576xf32, #tpu.memory_space<vmem>>, vector<4x512xf32>
    %c19456_i32 = arith.constant 19456 : i32
    %352 = arith.subi %8, %c19456_i32 : i32
    %353 = vector.broadcast %352 : i32 to vector<4x512xi32>
    %354 = arith.cmpi slt, %6, %353 : vector<4x512xi32>
    %cst_194 = arith.constant 0.000000e+00 : f32
    %355 = vector.broadcast %cst_194 : f32 to vector<4x512xf32>
    %356 = arith.select %354, %351, %355 : vector<4x512xi1>, vector<4x512xf32>
    %357 = arith.truncf %356 : vector<4x512xf32> to vector<4x512xbf16>
    %c152_195 = arith.constant 152 : index
    %c0_196 = arith.constant 0 : index
    %358 = vector.load %arg7[%c152_195, %c0_196] : memref<192x512xbf16, #tpu.memory_space<vmem>>, vector<4x512xbf16>
    tpu.vector_store %arg7[%c152_195, %c0_196], %357 {strides = array<i32>} : memref<192x512xbf16, #tpu.memory_space<vmem>>, vector<4x512xbf16>,
    %c156 = arith.constant 156 : index
    %c0_197 = arith.constant 0 : index
    %359 = vector.load %arg8[%c156, %c0_197] : memref<192x512xbf16, #tpu.memory_space<vmem>>, vector<4x512xbf16>
    tpu.vector_store %arg8[%c156, %c0_197], %357 {strides = array<i32>} : memref<192x512xbf16, #tpu.memory_space<vmem>>, vector<4x512xbf16>,
    %c0_198 = arith.constant 0 : index
    %c19968 = arith.constant 19968 : index
    %360 = vector.load %arg1[%c0_198, %c19968] : memref<4x24576xf32, #tpu.memory_space<vmem>>, vector<4x512xf32>
    %c19968_i32 = arith.constant 19968 : i32
    %361 = arith.subi %8, %c19968_i32 : i32
    %362 = vector.broadcast %361 : i32 to vector<4x512xi32>
    %363 = arith.cmpi slt, %6, %362 : vector<4x512xi32>
    %cst_199 = arith.constant 0.000000e+00 : f32
    %364 = vector.broadcast %cst_199 : f32 to vector<4x512xf32>
    %365 = arith.select %363, %360, %364 : vector<4x512xi1>, vector<4x512xf32>
    %366 = arith.truncf %365 : vector<4x512xf32> to vector<4x512xbf16>
    %c156_200 = arith.constant 156 : index
    %c0_201 = arith.constant 0 : index
    %367 = vector.load %arg7[%c156_200, %c0_201] : memref<192x512xbf16, #tpu.memory_space<vmem>>, vector<4x512xbf16>
    tpu.vector_store %arg7[%c156_200, %c0_201], %366 {strides = array<i32>} : memref<192x512xbf16, #tpu.memory_space<vmem>>, vector<4x512xbf16>,
    %c160 = arith.constant 160 : index
    %c0_202 = arith.constant 0 : index
    %368 = vector.load %arg8[%c160, %c0_202] : memref<192x512xbf16, #tpu.memory_space<vmem>>, vector<4x512xbf16>
    tpu.vector_store %arg8[%c160, %c0_202], %366 {strides = array<i32>} : memref<192x512xbf16, #tpu.memory_space<vmem>>, vector<4x512xbf16>,
    %c0_203 = arith.constant 0 : index
    %c20480 = arith.constant 20480 : index
    %369 = vector.load %arg1[%c0_203, %c20480] : memref<4x24576xf32, #tpu.memory_space<vmem>>, vector<4x512xf32>
    %c20480_i32 = arith.constant 20480 : i32
    %370 = arith.subi %8, %c20480_i32 : i32
    %371 = vector.broadcast %370 : i32 to vector<4x512xi32>
    %372 = arith.cmpi slt, %6, %371 : vector<4x512xi32>
    %cst_204 = arith.constant 0.000000e+00 : f32
    %373 = vector.broadcast %cst_204 : f32 to vector<4x512xf32>
    %374 = arith.select %372, %369, %373 : vector<4x512xi1>, vector<4x512xf32>
    %375 = arith.truncf %374 : vector<4x512xf32> to vector<4x512xbf16>
    %c160_205 = arith.constant 160 : index
    %c0_206 = arith.constant 0 : index
    %376 = vector.load %arg7[%c160_205, %c0_206] : memref<192x512xbf16, #tpu.memory_space<vmem>>, vector<4x512xbf16>
    tpu.vector_store %arg7[%c160_205, %c0_206], %375 {strides = array<i32>} : memref<192x512xbf16, #tpu.memory_space<vmem>>, vector<4x512xbf16>,
    %c164 = arith.constant 164 : index
    %c0_207 = arith.constant 0 : index
    %377 = vector.load %arg8[%c164, %c0_207] : memref<192x512xbf16, #tpu.memory_space<vmem>>, vector<4x512xbf16>
    tpu.vector_store %arg8[%c164, %c0_207], %375 {strides = array<i32>} : memref<192x512xbf16, #tpu.memory_space<vmem>>, vector<4x512xbf16>,
    %c0_208 = arith.constant 0 : index
    %c20992 = arith.constant 20992 : index
    %378 = vector.load %arg1[%c0_208, %c20992] : memref<4x24576xf32, #tpu.memory_space<vmem>>, vector<4x512xf32>
    %c20992_i32 = arith.constant 20992 : i32
    %379 = arith.subi %8, %c20992_i32 : i32
    %380 = vector.broadcast %379 : i32 to vector<4x512xi32>
    %381 = arith.cmpi slt, %6, %380 : vector<4x512xi32>
    %cst_209 = arith.constant 0.000000e+00 : f32
    %382 = vector.broadcast %cst_209 : f32 to vector<4x512xf32>
    %383 = arith.select %381, %378, %382 : vector<4x512xi1>, vector<4x512xf32>
    %384 = arith.truncf %383 : vector<4x512xf32> to vector<4x512xbf16>
    %c164_210 = arith.constant 164 : index
    %c0_211 = arith.constant 0 : index
    %385 = vector.load %arg7[%c164_210, %c0_211] : memref<192x512xbf16, #tpu.memory_space<vmem>>, vector<4x512xbf16>
    tpu.vector_store %arg7[%c164_210, %c0_211], %384 {strides = array<i32>} : memref<192x512xbf16, #tpu.memory_space<vmem>>, vector<4x512xbf16>,
    %c168 = arith.constant 168 : index
    %c0_212 = arith.constant 0 : index
    %386 = vector.load %arg8[%c168, %c0_212] : memref<192x512xbf16, #tpu.memory_space<vmem>>, vector<4x512xbf16>
    tpu.vector_store %arg8[%c168, %c0_212], %384 {strides = array<i32>} : memref<192x512xbf16, #tpu.memory_space<vmem>>, vector<4x512xbf16>,
    %c0_213 = arith.constant 0 : index
    %c21504 = arith.constant 21504 : index
    %387 = vector.load %arg1[%c0_213, %c21504] : memref<4x24576xf32, #tpu.memory_space<vmem>>, vector<4x512xf32>
    %c21504_i32 = arith.constant 21504 : i32
    %388 = arith.subi %8, %c21504_i32 : i32
    %389 = vector.broadcast %388 : i32 to vector<4x512xi32>
    %390 = arith.cmpi slt, %6, %389 : vector<4x512xi32>
    %cst_214 = arith.constant 0.000000e+00 : f32
    %391 = vector.broadcast %cst_214 : f32 to vector<4x512xf32>
    %392 = arith.select %390, %387, %391 : vector<4x512xi1>, vector<4x512xf32>
    %393 = arith.truncf %392 : vector<4x512xf32> to vector<4x512xbf16>
    %c168_215 = arith.constant 168 : index
    %c0_216 = arith.constant 0 : index
    %394 = vector.load %arg7[%c168_215, %c0_216] : memref<192x512xbf16, #tpu.memory_space<vmem>>, vector<4x512xbf16>
    tpu.vector_store %arg7[%c168_215, %c0_216], %393 {strides = array<i32>} : memref<192x512xbf16, #tpu.memory_space<vmem>>, vector<4x512xbf16>,
    %c172 = arith.constant 172 : index
    %c0_217 = arith.constant 0 : index
    %395 = vector.load %arg8[%c172, %c0_217] : memref<192x512xbf16, #tpu.memory_space<vmem>>, vector<4x512xbf16>
    tpu.vector_store %arg8[%c172, %c0_217], %393 {strides = array<i32>} : memref<192x512xbf16, #tpu.memory_space<vmem>>, vector<4x512xbf16>,
    %c0_218 = arith.constant 0 : index
    %c22016 = arith.constant 22016 : index
    %396 = vector.load %arg1[%c0_218, %c22016] : memref<4x24576xf32, #tpu.memory_space<vmem>>, vector<4x512xf32>
    %c22016_i32 = arith.constant 22016 : i32
    %397 = arith.subi %8, %c22016_i32 : i32
    %398 = vector.broadcast %397 : i32 to vector<4x512xi32>
    %399 = arith.cmpi slt, %6, %398 : vector<4x512xi32>
    %cst_219 = arith.constant 0.000000e+00 : f32
    %400 = vector.broadcast %cst_219 : f32 to vector<4x512xf32>
    %401 = arith.select %399, %396, %400 : vector<4x512xi1>, vector<4x512xf32>
    %402 = arith.truncf %401 : vector<4x512xf32> to vector<4x512xbf16>
    %c172_220 = arith.constant 172 : index
    %c0_221 = arith.constant 0 : index
    %403 = vector.load %arg7[%c172_220, %c0_221] : memref<192x512xbf16, #tpu.memory_space<vmem>>, vector<4x512xbf16>
    tpu.vector_store %arg7[%c172_220, %c0_221], %402 {strides = array<i32>} : memref<192x512xbf16, #tpu.memory_space<vmem>>, vector<4x512xbf16>,
    %c176 = arith.constant 176 : index
    %c0_222 = arith.constant 0 : index
    %404 = vector.load %arg8[%c176, %c0_222] : memref<192x512xbf16, #tpu.memory_space<vmem>>, vector<4x512xbf16>
    tpu.vector_store %arg8[%c176, %c0_222], %402 {strides = array<i32>} : memref<192x512xbf16, #tpu.memory_space<vmem>>, vector<4x512xbf16>,
    %c0_223 = arith.constant 0 : index
    %c22528 = arith.constant 22528 : index
    %405 = vector.load %arg1[%c0_223, %c22528] : memref<4x24576xf32, #tpu.memory_space<vmem>>, vector<4x512xf32>
    %c22528_i32 = arith.constant 22528 : i32
    %406 = arith.subi %8, %c22528_i32 : i32
    %407 = vector.broadcast %406 : i32 to vector<4x512xi32>
    %408 = arith.cmpi slt, %6, %407 : vector<4x512xi32>
    %cst_224 = arith.constant 0.000000e+00 : f32
    %409 = vector.broadcast %cst_224 : f32 to vector<4x512xf32>
    %410 = arith.select %408, %405, %409 : vector<4x512xi1>, vector<4x512xf32>
    %411 = arith.truncf %410 : vector<4x512xf32> to vector<4x512xbf16>
    %c176_225 = arith.constant 176 : index
    %c0_226 = arith.constant 0 : index
    %412 = vector.load %arg7[%c176_225, %c0_226] : memref<192x512xbf16, #tpu.memory_space<vmem>>, vector<4x512xbf16>
    tpu.vector_store %arg7[%c176_225, %c0_226], %411 {strides = array<i32>} : memref<192x512xbf16, #tpu.memory_space<vmem>>, vector<4x512xbf16>,
    %c180 = arith.constant 180 : index
    %c0_227 = arith.constant 0 : index
    %413 = vector.load %arg8[%c180, %c0_227] : memref<192x512xbf16, #tpu.memory_space<vmem>>, vector<4x512xbf16>
    tpu.vector_store %arg8[%c180, %c0_227], %411 {strides = array<i32>} : memref<192x512xbf16, #tpu.memory_space<vmem>>, vector<4x512xbf16>,
    %c0_228 = arith.constant 0 : index
    %c23040 = arith.constant 23040 : index
    %414 = vector.load %arg1[%c0_228, %c23040] : memref<4x24576xf32, #tpu.memory_space<vmem>>, vector<4x512xf32>
    %c23040_i32 = arith.constant 23040 : i32
    %415 = arith.subi %8, %c23040_i32 : i32
    %416 = vector.broadcast %415 : i32 to vector<4x512xi32>
    %417 = arith.cmpi slt, %6, %416 : vector<4x512xi32>
    %cst_229 = arith.constant 0.000000e+00 : f32
    %418 = vector.broadcast %cst_229 : f32 to vector<4x512xf32>
    %419 = arith.select %417, %414, %418 : vector<4x512xi1>, vector<4x512xf32>
    %420 = arith.truncf %419 : vector<4x512xf32> to vector<4x512xbf16>
    %c180_230 = arith.constant 180 : index
    %c0_231 = arith.constant 0 : index
    %421 = vector.load %arg7[%c180_230, %c0_231] : memref<192x512xbf16, #tpu.memory_space<vmem>>, vector<4x512xbf16>
    tpu.vector_store %arg7[%c180_230, %c0_231], %420 {strides = array<i32>} : memref<192x512xbf16, #tpu.memory_space<vmem>>, vector<4x512xbf16>,
    %c184 = arith.constant 184 : index
    %c0_232 = arith.constant 0 : index
    %422 = vector.load %arg8[%c184, %c0_232] : memref<192x512xbf16, #tpu.memory_space<vmem>>, vector<4x512xbf16>
    tpu.vector_store %arg8[%c184, %c0_232], %420 {strides = array<i32>} : memref<192x512xbf16, #tpu.memory_space<vmem>>, vector<4x512xbf16>,
    %c0_233 = arith.constant 0 : index
    %c23552 = arith.constant 23552 : index
    %423 = vector.load %arg1[%c0_233, %c23552] : memref<4x24576xf32, #tpu.memory_space<vmem>>, vector<4x512xf32>
    %c23552_i32 = arith.constant 23552 : i32
    %424 = arith.subi %8, %c23552_i32 : i32
    %425 = vector.broadcast %424 : i32 to vector<4x512xi32>
    %426 = arith.cmpi slt, %6, %425 : vector<4x512xi32>
    %cst_234 = arith.constant 0.000000e+00 : f32
    %427 = vector.broadcast %cst_234 : f32 to vector<4x512xf32>
    %428 = arith.select %426, %423, %427 : vector<4x512xi1>, vector<4x512xf32>
    %429 = arith.truncf %428 : vector<4x512xf32> to vector<4x512xbf16>
    %c184_235 = arith.constant 184 : index
    %c0_236 = arith.constant 0 : index
    %430 = vector.load %arg7[%c184_235, %c0_236] : memref<192x512xbf16, #tpu.memory_space<vmem>>, vector<4x512xbf16>
    tpu.vector_store %arg7[%c184_235, %c0_236], %429 {strides = array<i32>} : memref<192x512xbf16, #tpu.memory_space<vmem>>, vector<4x512xbf16>,
    %c188 = arith.constant 188 : index
    %c0_237 = arith.constant 0 : index
    %431 = vector.load %arg8[%c188, %c0_237] : memref<192x512xbf16, #tpu.memory_space<vmem>>, vector<4x512xbf16>
    tpu.vector_store %arg8[%c188, %c0_237], %429 {strides = array<i32>} : memref<192x512xbf16, #tpu.memory_space<vmem>>, vector<4x512xbf16>,
    %c0_238 = arith.constant 0 : index
    %c24064 = arith.constant 24064 : index
    %432 = vector.load %arg1[%c0_238, %c24064] : memref<4x24576xf32, #tpu.memory_space<vmem>>, vector<4x512xf32>
    %c24064_i32 = arith.constant 24064 : i32
    %433 = arith.subi %8, %c24064_i32 : i32
    %434 = vector.broadcast %433 : i32 to vector<4x512xi32>
    %435 = arith.cmpi slt, %6, %434 : vector<4x512xi32>
    %cst_239 = arith.constant 0.000000e+00 : f32
    %436 = vector.broadcast %cst_239 : f32 to vector<4x512xf32>
    %437 = arith.select %435, %432, %436 : vector<4x512xi1>, vector<4x512xf32>
    %438 = arith.truncf %437 : vector<4x512xf32> to vector<4x512xbf16>
    %c188_240 = arith.constant 188 : index
    %c0_241 = arith.constant 0 : index
    %439 = vector.load %arg7[%c188_240, %c0_241] : memref<192x512xbf16, #tpu.memory_space<vmem>>, vector<4x512xbf16>
    tpu.vector_store %arg7[%c188_240, %c0_241], %438 {strides = array<i32>} : memref<192x512xbf16, #tpu.memory_space<vmem>>, vector<4x512xbf16>,
    %c0_242 = arith.constant 0 : index
    %c0_243 = arith.constant 0 : index
    %440 = vector.load %arg7[%c0_242, %c0_243] : memref<192x512xbf16, #tpu.memory_space<vmem>>, vector<192x512xbf16>
    %c0_244 = arith.constant 0 : index
    %c0_245 = arith.constant 0 : index
    %441 = vector.load %arg3[%c0_244, %c0_245] : memref<512x512xbf16, #tpu.memory_space<vmem>>, vector<512x512xbf16>
    %cst_246 = arith.constant dense<0.000000e+00> : vector<192x512xf32>
    %442 = tpu.matmul %440, %441, %cst_246 {dimension_numbers = #tpu.dot_dimension_numbers<[1], [0], [0], [1], [0, 0, 1, 1], [], []>} : vector<192x512xbf16>, vector<512x512xbf16>, vector<192x512xf32> -> vector<192x512xf32>
    %c0_247 = arith.constant 0 : index
    %c0_248 = arith.constant 0 : index
    %443 = vector.load %arg8[%c0_247, %c0_248] : memref<192x512xbf16, #tpu.memory_space<vmem>>, vector<192x512xbf16>
    %c0_249 = arith.constant 0 : index
    %c0_250 = arith.constant 0 : index
    %444 = vector.load %arg4[%c0_249, %c0_250] : memref<512x512xbf16, #tpu.memory_space<vmem>>, vector<512x512xbf16>
    %cst_251 = arith.constant dense<0.000000e+00> : vector<192x512xf32>
    %445 = tpu.matmul %443, %444, %cst_251 {dimension_numbers = #tpu.dot_dimension_numbers<[1], [0], [0], [1], [0, 0, 1, 1], [], []>} : vector<192x512xbf16>, vector<512x512xbf16>, vector<192x512xf32> -> vector<192x512xf32>
    %446 = arith.addf %442, %445 : vector<192x512xf32>
    %447 = arith.mulf %446, %446 : vector<192x512xf32>
    %448 = arith.truncf %447 : vector<192x512xf32> to vector<192x512xbf16>
    %c0_252 = arith.constant 0 : index
    %c0_253 = arith.constant 0 : index
    %449 = vector.load %arg5[%c0_252, %c0_253] : memref<512x16xbf16, #tpu.memory_space<vmem>>, vector<512x16xbf16>
    %cst_254 = arith.constant dense<0.000000e+00> : vector<192x16xf32>
    %450 = tpu.matmul %448, %449, %cst_254 {dimension_numbers = #tpu.dot_dimension_numbers<[1], [0], [0], [1], [0, 0, 1, 1], [], []>} : vector<192x512xbf16>, vector<512x16xbf16>, vector<192x16xf32> -> vector<192x16xf32>
    %c0_255 = arith.constant 0 : index
    %c0_256 = arith.constant 0 : index
    %451 = vector.load %arg6[%c0_255, %c0_256] : memref<192x16xf32, #tpu.memory_space<vmem>>, vector<192x16xf32>
    tpu.vector_store %arg6[%c0_255, %c0_256], %450 {strides = array<i32>} : memref<192x16xf32, #tpu.memory_space<vmem>>, vector<192x16xf32>,
    return
  }
  func.func @transform_0(%arg0: i32) -> (i32, i32) {
    %c0_i32 = arith.constant 0 : i32
    %c0_i32_0 = arith.constant 0 : i32
    return %c0_i32, %arg0 : i32, i32
  }
  func.func @transform_1(%arg0: i32) -> (i32, i32) {
    %c48_i32 = arith.constant 48 : i32
    %0 = arith.muli %arg0, %c48_i32 : i32
    %c1_i32 = arith.constant 1 : i32
    %1 = arith.subi %0, %c1_i32 : i32
    %c0_i32 = arith.constant 0 : i32
    %2 = arith.maxsi %1, %c0_i32 : i32
    %c0_i32_0 = arith.constant 0 : i32
    %c0_i32_1 = arith.constant 0 : i32
    return %c0_i32_0, %2 : i32, i32
  }
  func.func @transform_2(%arg0: i32) -> (i32, i32) {
    %c0_i32 = arith.constant 0 : i32
    %c0_i32_0 = arith.constant 0 : i32
    %c0_i32_1 = arith.constant 0 : i32
    return %c0_i32, %c0_i32_0 : i32, i32
  }
  func.func @transform_3(%arg0: i32) -> (i32, i32) {
    %c0_i32 = arith.constant 0 : i32
    %c0_i32_0 = arith.constant 0 : i32
    %c0_i32_1 = arith.constant 0 : i32
    return %c0_i32, %c0_i32_0 : i32, i32
  }
  func.func @transform_4(%arg0: i32) -> (i32, i32) {
    %c0_i32 = arith.constant 0 : i32
    %c0_i32_0 = arith.constant 0 : i32
    %c0_i32_1 = arith.constant 0 : i32
    return %c0_i32, %c0_i32_0 : i32, i32
  }
  func.func @transform_5(%arg0: i32) -> (i32, i32) {
    %c0_i32 = arith.constant 0 : i32
    %c0_i32_0 = arith.constant 0 : i32
    return %arg0, %c0_i32 : i32, i32
  }
}

</mosaic_0001>

<bundles_post_ra>
// kernel: tpu_custom_call.1
= control target key start
LH: loop header
LB: loop body
LE: loop exit
PB: predicated region body
PF: predicated region fallthrough
CT: control target
= control target key end

     0   :  { %10 = vsyncpa [#allocation5], 0  ;;  %s8083_s0 = inlined_call_operand.hbm [shape: f32[4,24000], index: 0, kind: input, shape index: {}]   ;;  %s8084_s1 = inlined_call_operand.hbm [shape: f32[4,24000], index: 1, kind: input, shape index: {}]   ;;  %s8085_s2 = inlined_call_operand.hbm [shape: bf16[512,512], index: 2, kind: input, shape index: {}]   ;;  %s8086_s3 = inlined_call_operand.hbm [shape: bf16[512,512], index: 3, kind: input, shape index: {}]   ;;  %s8087_s4 = inlined_call_operand.vmem [shape: bf16[512,16], index: 4, kind: input, shape index: {}]   ;;  %s8088_s5 = inlined_call_operand.vmem [shape: f32[192,16], index: 5, kind: output, shape index: {}]  }
   0x1   :  { %11 = vsyncpa [#allocation7], 0 }
   0x2   :  { %12 = vsyncpa [#allocation10], 0 }
   0x3   :  { %17 = vsyncadd [#allocation5], 256  ;;  %s7234_s18 = smov [#allocation6]   ;;  %s7235_s20 = smov [#allocation4]  }
   0x4   :  { %s36_s19 = sshll.u32 %s7234_s18, 4  ;;  %s19_s21 = sshll.u32 %s7235_s20, 4  ;;  %s37_s19 = int_to_ptr.vmem [resolvable:$true] %s36_s19  ;;  %s7272_s21 = int_to_ptr.vmem [resolvable:$true] %s19_s21 }
   0x5   :  { %s7140_s24 = scalar_lea.hbm %s8084_s1, 256  ;;  %s7142_s29 = scalar_lea.hbm %s8084_s1, 12032 }
   0x6   :  { %p7141_p0 = scmp.ne.s32.totalorder %s8084_s1, %s7140_s24  ;;  %p7143_p1 = scmp.lt.u32.totalorder %s7142_s29, %s7140_s24 }
   0x7   :  { %p7144_p2 = scmp.lt.u32.totalorder %s7140_s24, %s8084_s1 }
   0x9   :  { %p7145_p3 = por %p7144_p2, %p7143_p1 }
   0xb   :  { %p7146_p4 = pnand %p7145_p3, %p7141_p0 }
   0xd   :  { %7149 = shalt.err (!%p7146_p4)
}
   0xe   :  { %s7150_s7 = scalar_lea.vmem %s37_s19, 256  ;;  %p7155_p6 = scmp.lt.s32.totalorder %s37_s19, %s37_s19 }
   0xf   :  { %p7151_p5 = scmp.ne.s32.totalorder %s37_s19, %s7150_s7  ;;  %p7156_p7 = scmp.lt.s32.totalorder %s7150_s7, %s7150_s7 }
  0x11   :  { %p7157_p8 = por %p7156_p7, %p7155_p6 }
  0x13   :  { %p7158_p9 = pnand %p7157_p8, %p7151_p5 }
  0x15   :  { %7161 = shalt.err (!%p7158_p9)
}
  0x16   :  { %39 = dma.hbm_to_vmem [thread:$0]  %s8084_s1, 256, %s37_s19, [#allocation7]  }
  0x17   :  { %s7162_s12 = scalar_lea.hbm %s8083_s0, 12032 }
  0x18   :  { %p7163_p10 = scmp.ne.s32.totalorder %s8083_s0, %s7162_s12  ;;  %p7166_p11 = scmp.lt.u32.totalorder %s7162_s12, %s8083_s0 }
  0x1a   :  { %p7168_p12 = pnand %p7166_p11, %p7163_p10 }
  0x1c   :  { %7171 = shalt.err (!%p7168_p12)
}
  0x1d   :  { %s7172_s17 = scalar_lea.vmem %s7272_s21, 12032  ;;  %s7176_s1 = scalar_lea.vmem %s7272_s21, 12288 }
  0x1e   :  { %p7173_p13 = scmp.ne.s32.totalorder %s7272_s21, %s7172_s17  ;;  %p7177_p0 = scmp.lt.s32.totalorder %s7272_s21, %s7272_s21 }
  0x1f   :  { %p7178_p1 = scmp.lt.s32.totalorder %s7176_s1, %s7172_s17 }
  0x21   :  { %p7179_p2 = por %p7178_p1, %p7177_p0 }
  0x23   :  { %p7180_p3 = pnand %p7179_p2, %p7173_p13 }
  0x25   :  { %7183 = shalt.err (!%p7180_p3)
}
  0x26   :  { %22 = dma.hbm_to_vmem [thread:$0]  %s8083_s0, 12032, %s7272_s21, [#allocation5]  }
  0x27   :  { %s7236_s20 = smov [#allocation8]   ;;  %s7184_s25 = scalar_lea.hbm %s8085_s2, 16384 }
  0x28   :  { %s45_s22 = sshll.u32 %s7236_s20, 4  ;;  %p7185_p4 = scmp.ne.s32.totalorder %s8085_s2, %s7184_s25  ;;  %s46_s22 = int_to_ptr.vmem [resolvable:$true] %s45_s22 }
  0x29   :  { %p7188_p5 = scmp.lt.u32.totalorder %s7184_s25, %s8085_s2 }
  0x2b   :  { %p7190_p6 = pnand %p7188_p5, %p7185_p4 }
  0x2d   :  { %7193 = shalt.err (!%p7190_p6)
}
  0x2e   :  { %s7194_s30 = scalar_lea.vmem %s46_s22, 16384  ;;  %p7199_p8 = scmp.lt.s32.totalorder %s46_s22, %s46_s22 }
  0x2f   :  { %p7195_p7 = scmp.ne.s32.totalorder %s46_s22, %s7194_s30  ;;  %p7200_p9 = scmp.lt.s32.totalorder %s7194_s30, %s7194_s30 }
  0x31   :  { %p7201_p10 = por %p7200_p9, %p7199_p8 }
  0x33   :  { %p7202_p11 = pnand %p7201_p10, %p7195_p7 }
  0x35   :  { %7205 = shalt.err (!%p7202_p11)
}
  0x36   :  { %s7237_s0 = smov 256   ;;  %s7238_s21 = smov 16  }
  0x37   :  { %51 = dma.hbm_to_vmem [thread:$0]  %s8085_s2, 16384, %s46_s22, [#allocation7], %s7237_s0, %s7237_s0, %s7238_s21  }
  0x38   :  { %s7239_s8 = smov [#allocation9]   ;;  %s7206_s12 = scalar_lea.hbm %s8086_s3, 16384 }
  0x39   :  { %s57_s9 = sshll.u32 %s7239_s8, 4  ;;  %p7207_p12 = scmp.ne.s32.totalorder %s8086_s3, %s7206_s12  ;;  %s58_s9 = int_to_ptr.vmem [resolvable:$true] %s57_s9 }
  0x3a   :  { %p7210_p13 = scmp.lt.u32.totalorder %s7206_s12, %s8086_s3 }
  0x3c   :  { %p7212_p0 = pnand %p7210_p13, %p7207_p12 }
  0x3e   :  { %7215 = shalt.err (!%p7212_p0)
}
  0x3f   :  { %s7216_s17 = scalar_lea.vmem %s58_s9, 16384  ;;  %p7221_p2 = scmp.lt.s32.totalorder %s58_s9, %s58_s9 }
  0x40   :  { %p7217_p1 = scmp.ne.s32.totalorder %s58_s9, %s7216_s17  ;;  %p7222_p3 = scmp.lt.s32.totalorder %s7216_s17, %s7216_s17 }
  0x42   :  { %p7223_p4 = por %p7222_p3, %p7221_p2 }
  0x44   :  { %p7224_p5 = pnand %p7223_p4, %p7217_p1 }
  0x46   :  { %7227 = shalt.err (!%p7224_p5)
}
  0x47   :  { %63 = dma.hbm_to_vmem [thread:$0]  %s8086_s3, 16384, %s58_s9, [#allocation10], %s7237_s0, %s7237_s0, %s7238_s21  }
  0x48   :  { %7228 = dma.done.wait [#allocation5], 12288  }
  0x49   :  { %7229 = vsyncadd [#allocation5], 4294955008 }
  0x4a   :  { %7230 = dma.done.wait [#allocation7], 16640  }
  0x4b   :  { %7231 = vsyncadd [#allocation7], 4294950656 }
  0x4c   :  { %7232 = dma.done.wait [#allocation10], 16384  }
  0x4d   :  { %7233 = vsyncadd [#allocation10], 4294950912  ;;  %v7240_v0 = vmov 0   ;;  %v6630_v1 = vld [vmem:[#allocation9 + $0x4] ss:$16 sps:$4 sm:$0xff]   ;;  %vm5836_vm1 = vcmask 130048  }
  0x4e   :  { %89 = vst [vmem:[#allocation3 + $0x8] sm:$0x3] %v7240_v0  ;;  %88 = vst [vmem:[#allocation3] sm:$0x3] %v7240_v0  ;;  %v6632_v2 = vld [vmem:[#allocation9 + $0xc] ss:$16 sps:$4 sm:$0xff]   ;;  %3314 = vmatprep.subr.bf16.mxu0 %v6630_v1 }
  0x4f   :  { %90 = vst [vmem:[#allocation3 + $0x10] sm:$0x3] %v7240_v0  ;;  %91 = vst [vmem:[#allocation3 + $0x18] sm:$0x3] %v7240_v0  ;;  %v6634_v3 = vld [vmem:[#allocation9] ss:$16 sps:$4 sm:$0xff]   ;;  %3620 = vmatprep.subr.bf16.mxu1 %v6632_v2 }
  0x50   :  { %v6635_v4 = vld [vmem:[#allocation9 + $0x8] ss:$16 sps:$4 sm:$0xff]   ;;  %v6636_v5 = vld [vmem:[#allocation9 + $0x24] ss:$16 sps:$4 sm:$0xff]   ;;  %3315 = vmatpush1.bf16.msra.mxu0 %v6634_v3  ;;  %v6638_v6 = vld [vmem:[#allocation9 + $0x2c] ss:$16 sps:$4 sm:$0xff]  }
  0x51   :  { %3621 = vmatpush1.bf16.msra.mxu1 %v6635_v4  ;;  %v6640_v7 = vld [vmem:[#allocation9 + $0x20] ss:$16 sps:$4 sm:$0xff]   ;;  %3316 = vmatprep.subr.bf16.mxu0 %v6636_v5  ;;  %v6641_v8 = vld [vmem:[#allocation9 + $0x28] ss:$16 sps:$4 sm:$0xff]   ;;  %v6642_v9 = vld [vmem:[#allocation9 + $0x44] ss:$16 sps:$4 sm:$0xff]  }
  0x52   :  { %3622 = vmatprep.subr.bf16.mxu1 %v6638_v6  ;;  %v6644_v10 = vld [vmem:[#allocation9 + $0x4c] ss:$16 sps:$4 sm:$0xff]   ;;  %v6646_v11 = vld [vmem:[#allocation9 + $0x40] ss:$16 sps:$4 sm:$0xff]   ;;  %v6647_v12 = vld [vmem:[#allocation9 + $0x48] ss:$16 sps:$4 sm:$0xff]  }
  0x53   :  { %v6648_v13 = vld [vmem:[#allocation9 + $0x64] ss:$16 sps:$4 sm:$0xff]   ;;  %v6650_v14 = vld [vmem:[#allocation9 + $0x6c] ss:$16 sps:$4 sm:$0xff]   ;;  %v6652_v15 = vld [vmem:[#allocation9 + $0x60] ss:$16 sps:$4 sm:$0xff]  }
  0x54   :  { %3317 = vmatpush1.bf16.msra.mxu0 %v6640_v7  ;;  %v6653_v16 = vld [vmem:[#allocation9 + $0x68] ss:$16 sps:$4 sm:$0xff]   ;;  %v6654_v17 = vld [vmem:[#allocation9 + $0x84] ss:$16 sps:$4 sm:$0xff]   ;;  %v6656_v18 = vld [vmem:[#allocation9 + $0x8c] ss:$16 sps:$4 sm:$0xff]  }
  0x55   :  { %3623 = vmatpush1.bf16.msra.mxu1 %v6641_v8  ;;  %3318 = vmatprep.subr.bf16.mxu0 %v6642_v9  ;;  %v6658_v19 = vld [vmem:[#allocation9 + $0x80] ss:$16 sps:$4 sm:$0xff]   ;;  %v6659_v20 = vld [vmem:[#allocation9 + $0x88] ss:$16 sps:$4 sm:$0xff]   ;;  %v6660_v21 = vld [vmem:[#allocation9 + $0xa4] ss:$16 sps:$4 sm:$0xff]  }
  0x56   :  { %3624 = vmatprep.subr.bf16.mxu1 %v6644_v10  ;;  %v6662_v22 = vld [vmem:[#allocation9 + $0xac] ss:$16 sps:$4 sm:$0xff]   ;;  %v6664_v23 = vld [vmem:[#allocation9 + $0xa0] ss:$16 sps:$4 sm:$0xff]   ;;  %v6665_v24 = vld [vmem:[#allocation9 + $0xa8] ss:$16 sps:$4 sm:$0xff]  }
  0x57   :  { %v6666_v25 = vld [vmem:[#allocation9 + $0xc4] ss:$16 sps:$4 sm:$0xff]   ;;  %v6668_v26 = vld [vmem:[#allocation9 + $0xcc] ss:$16 sps:$4 sm:$0xff]   ;;  %v6670_v27 = vld [vmem:[#allocation9 + $0xc0] ss:$16 sps:$4 sm:$0xff]  }
  0x58   :  { %3319 = vmatpush1.bf16.msra.mxu0 %v6646_v11  ;;  %v6671_v28 = vld [vmem:[#allocation9 + $0xc8] ss:$16 sps:$4 sm:$0xff]   ;;  %v6672_v29 = vld [vmem:[#allocation9 + $0xe4] ss:$16 sps:$4 sm:$0xff]   ;;  %v6674_v30 = vld [vmem:[#allocation9 + $0xec] ss:$16 sps:$4 sm:$0xff]  }
  0x59   :  { %3625 = vmatpush1.bf16.msra.mxu1 %v6647_v12  ;;  %3320 = vmatprep.subr.bf16.mxu0 %v6648_v13  ;;  %v6676_v31 = vld [vmem:[#allocation9 + $0xe0] ss:$16 sps:$4 sm:$0xff]   ;;  %v6677_v32 = vld [vmem:[#allocation9 + $0xe8] ss:$16 sps:$4 sm:$0xff]   ;;  %v6678_v33 = vld [vmem:[#allocation9 + $0x104] ss:$16 sps:$4 sm:$0xff]  }
  0x5a   :  { %3626 = vmatprep.subr.bf16.mxu1 %v6650_v14  ;;  %v6680_v34 = vld [vmem:[#allocation9 + $0x10c] ss:$16 sps:$4 sm:$0xff]   ;;  %v6682_v35 = vld [vmem:[#allocation9 + $0x100] ss:$16 sps:$4 sm:$0xff]   ;;  %v6683_v36 = vld [vmem:[#allocation9 + $0x108] ss:$16 sps:$4 sm:$0xff]  }
  0x5b   :  { %v6684_v37 = vld [vmem:[#allocation9 + $0x124] ss:$16 sps:$4 sm:$0xff]   ;;  %v6686_v38 = vld [vmem:[#allocation9 + $0x12c] ss:$16 sps:$4 sm:$0xff]   ;;  %v6688_v39 = vld [vmem:[#allocation9 + $0x120] ss:$16 sps:$4 sm:$0xff]  }
  0x5c   :  { %3321 = vmatpush1.bf16.msra.mxu0 %v6652_v15  ;;  %v6689_v40 = vld [vmem:[#allocation9 + $0x128] ss:$16 sps:$4 sm:$0xff]   ;;  %v6690_v41 = vld [vmem:[#allocation9 + $0x144] ss:$16 sps:$4 sm:$0xff]   ;;  %v6692_v42 = vld [vmem:[#allocation9 + $0x14c] ss:$16 sps:$4 sm:$0xff]  }
  0x5d   :  { %3627 = vmatpush1.bf16.msra.mxu1 %v6653_v16  ;;  %3322 = vmatprep.subr.bf16.mxu0 %v6654_v17  ;;  %v6694_v43 = vld [vmem:[#allocation9 + $0x140] ss:$16 sps:$4 sm:$0xff]   ;;  %v6695_v44 = vld [vmem:[#allocation9 + $0x148] ss:$16 sps:$4 sm:$0xff]   ;;  %v6696_v45 = vld [vmem:[#allocation9 + $0x164] ss:$16 sps:$4 sm:$0xff]  }
  0x5e   :  { %3628 = vmatprep.subr.bf16.mxu1 %v6656_v18  ;;  %v6698_v46 = vld [vmem:[#allocation9 + $0x16c] ss:$16 sps:$4 sm:$0xff]   ;;  %v6700_v47 = vld [vmem:[#allocation9 + $0x160] ss:$16 sps:$4 sm:$0xff]   ;;  %v6701_v53 = vld [vmem:[#allocation9 + $0x168] ss:$16 sps:$4 sm:$0xff]  }
  0x5f   :  { %v119_v48 = vld [vmem:[#allocation4] sm:$0xff]  ;;  %v160_v50 = vld [vmem:[#allocation4 + $0x10] sm:$0xff]  ;;  %v6704_v58 = vld [vmem:[#allocation9 + $0x18c] ss:$16 sps:$4 sm:$0xff]  }
  0x60   :  { %3323 = vmatpush1.bf16.msra.mxu0 %v6658_v19  ;;  %v128_v49 = vcombine.high %v119_v48, %v119_v48  ;;  %v210_v51 = vld [vmem:[#allocation4 + $0x20] sm:$0xff]  ;;  %v136_v52 = vpack.c.bf16 %v119_v48, %v119_v48  ;;  %v170_v55 = vcombine.high %v160_v50, %v160_v50  ;;  %v7331_v57 = vpack.c.bf16 %v160_v50, %v160_v50  ;;  %v6707_v2 = vld [vmem:[#allocation9 + $0x188] ss:$16 sps:$4 sm:$0xff]   ;;  %v6710_v8 = vld [vmem:[#allocation9 + $0x1ac] ss:$16 sps:$4 sm:$0xff]  }
  0x61   :  { %3629 = vmatpush1.bf16.msra.mxu1 %v6659_v20  ;;  %3324 = vmatprep.subr.bf16.mxu0 %v6660_v21  ;;  %v6702_v54 = vld [vmem:[#allocation9 + $0x184] ss:$16 sps:$4 sm:$0xff]   ;;  %v220_v56 = vcombine.high %v210_v51, %v210_v51  ;;  %v7333_v61 = vpack.c.bf16 %v210_v51, %v210_v51  ;;  %v6706_v1 = vld [vmem:[#allocation9 + $0x180] ss:$16 sps:$4 sm:$0xff]   ;;  %v6713_v18 = vld [vmem:[#allocation9 + $0x1a8] ss:$16 sps:$4 sm:$0xff]  }
  0x62   :  { %3630 = vmatprep.subr.bf16.mxu1 %v6662_v22  ;;  %v137_v59 = vpack.c.bf16 %v128_v49, %v128_v49  ;;  %v148_v60 = vrot.slane %v136_v52, 6  ;;  %140 = vst [vmem:[#allocation2] sm:$0x3] %v136_v52  ;;  %v7335_v62 = vpack.c.bf16 %v170_v55, %v170_v55  ;;  %v198_v0 = vrot.slane %v7331_v57, 4  ;;  %v6708_v5 = vld [vmem:[#allocation9 + $0x1a4] ss:$16 sps:$4 sm:$0xff]  }
  0x63   :  { %v7337_v63 = vpack.c.bf16 %v220_v56, %v220_v56  ;;  %v248_v4 = vrot.slane %v7333_v61, 2  ;;  %v260_v9 = vld [vmem:[#allocation4 + $0x30] sm:$0xff]  ;;  %v302_v10 = vld [vmem:[#allocation4 + $0x40] sm:$0xff]  ;;  %v6722_v51 = vld [vmem:[#allocation9 + $0x1ec] ss:$16 sps:$4 sm:$0xff]  }
  0x64   :  { %3325 = vmatpush1.bf16.msra.mxu0 %v6664_v23  ;;  %v149_v3 = vrot.slane %v137_v59, 6  ;;  %141 = vst [vmem:[#allocation2 + $0x8] sm:$0x3] %v137_v59  ;;  %156 = vst [vmem:[#allocation3] sm:$0xc] %v148_v60  ;;  %v199_v6 = vrot.slane %v7335_v62, 4  ;;  %v270_v11 = vcombine.high %v260_v9, %v260_v9  ;;  %v312_v12 = vcombine.high %v302_v10, %v302_v10 }
  0x65   :  { %3631 = vmatpush1.bf16.msra.mxu1 %v6665_v24  ;;  %3326 = vmatprep.subr.bf16.mxu0 %v6666_v25  ;;  %v249_v7 = vrot.slane %v7337_v63, 2  ;;  %206 = vst [vmem:[#allocation3] sm:$0x30] %v198_v0  ;;  %256 = vst [vmem:[#allocation3] sm:$0xc0] %v248_v4  ;;  %v344_v13 = vld [vmem:[#allocation4 + $0x50] sm:$0xff]  ;;  %v278_v15 = vpack.c.bf16 %v260_v9, %v260_v9  ;;  %v320_v16 = vpack.c.bf16 %v302_v10, %v302_v10 }
  0x66   :  { %3632 = vmatprep.subr.bf16.mxu1 %v6668_v26  ;;  %157 = vst [vmem:[#allocation3 + $0x8] sm:$0xc] %v149_v3  ;;  %207 = vst [vmem:[#allocation3 + $0x8] sm:$0x30] %v199_v6  ;;  %v394_v14 = vld [vmem:[#allocation4 + $0x60] sm:$0xff]  ;;  %v354_v19 = vcombine.high %v344_v13, %v344_v13  ;;  %v7343_v21 = vpack.c.bf16 %v344_v13, %v344_v13  ;;  %v7347_v24 = vpack.c.bf16 %v270_v11, %v270_v11  ;;  %v628_v60 = vld [vmem:[#allocation4 + $0xb0] sm:$0xff] }
  0x67   :  { %257 = vst [vmem:[#allocation3 + $0x8] sm:$0xc0] %v249_v7  ;;  %v6712_v17 = vld [vmem:[#allocation9 + $0x1a0] ss:$16 sps:$4 sm:$0xff]   ;;  %v404_v20 = vcombine.high %v394_v14, %v394_v14  ;;  %v7345_v22 = vpack.c.bf16 %v394_v14, %v394_v14  ;;  %v6714_v23 = vld [vmem:[#allocation9 + $0x1c4] ss:$16 sps:$4 sm:$0xff]   ;;  %v321_v25 = vpack.c.bf16 %v312_v12, %v312_v12 }
  0x68   :  { %3327 = vmatpush1.bf16.msra.mxu0 %v6670_v27  ;;  %v286_v26 = vrot.slane %v278_v15, 2  ;;  %298 = vst [vmem:[#allocation3 + $0x20] sm:$0x3] %v278_v15  ;;  %v332_v27 = vrot.slane %v320_v16, 6  ;;  %324 = vst [vmem:[#allocation2 + $0x20] sm:$0x3] %v320_v16  ;;  %v7378_v16 = vpack.c.bf16 %v628_v60, %v628_v60 }
  0x69   :  { %3633 = vmatpush1.bf16.msra.mxu1 %v6671_v28  ;;  %3328 = vmatprep.subr.bf16.mxu0 %v6672_v29  ;;  %v6716_v28 = vld [vmem:[#allocation9 + $0x1cc] ss:$16 sps:$4 sm:$0xff]   ;;  %v7349_v29 = vpack.c.bf16 %v354_v19, %v354_v19  ;;  %299 = vst [vmem:[#allocation3 + $0x28] sm:$0x3] %v7347_v24  ;;  %325 = vst [vmem:[#allocation2 + $0x28] sm:$0x3] %v321_v25 }
  0x6a   :  { %3634 = vmatprep.subr.bf16.mxu1 %v6674_v30  ;;  %v7351_v30 = vpack.c.bf16 %v404_v20, %v404_v20  ;;  %340 = vst [vmem:[#allocation3 + $0x20] sm:$0xc] %v332_v27  ;;  %294 = vst [vmem:[#allocation2] sm:$0xc0] %v286_v26  ;;  %v6720_v50 = vld [vmem:[#allocation9 + $0x1e4] ss:$16 sps:$4 sm:$0xff]  }
  0x6b   :  { %v670_v0 = vld [vmem:[#allocation4 + $0xc0] sm:$0xff]  ;;  %v6734_v14 = vld [vmem:[#allocation9 + $0x20c] ss:$16 sps:$4 sm:$0xff]   ;;  %v6732_v26 = vld [vmem:[#allocation9 + $0x208] ss:$16 sps:$4 sm:$0xff]  }
  0x6c   :  { %3329 = vmatpush1.bf16.msra.mxu0 %v6676_v31  ;;  %v382_v31 = vrot.slane %v7343_v21, 4  ;;  %v762_v6 = vld [vmem:[#allocation4 + $0xe0] sm:$0xff]  ;;  %v680_v10 = vcombine.high %v670_v0, %v670_v0  ;;  %666 = vst [vmem:[#allocation3 + $0x60] sm:$0x3] %v7378_v16 }
  0x6d   :  { %3635 = vmatpush1.bf16.msra.mxu1 %v6677_v32  ;;  %3330 = vmatprep.subr.bf16.mxu0 %v6678_v33  ;;  %v432_v32 = vrot.slane %v7345_v22, 2  ;;  %v444_v33 = vld [vmem:[#allocation4 + $0x70] sm:$0xff]  ;;  %v772_v12 = vcombine.high %v762_v6, %v762_v6 }
  0x6e   :  { %3636 = vmatprep.subr.bf16.mxu1 %v6680_v34  ;;  %v486_v34 = vld [vmem:[#allocation4 + $0x80] sm:$0xff]  ;;  %390 = vst [vmem:[#allocation3 + $0x20] sm:$0x30] %v382_v31  ;;  %v2499_v52 = vld [vmem:[#allocation3 + $0x8] sm:$0xff] }
  0x6f   :  { %440 = vst [vmem:[#allocation3 + $0x20] sm:$0xc0] %v432_v32  ;;  %v504_v49 = vpack.c.bf16 %v486_v34, %v486_v34  ;;  %3346 = vmatprep.mubr.bf16.mxu0 %v2499_v52  ;;  %3652 = vmatprep.mubr.bf16.mxu1 %v2499_v52  ;;  %v6724_v7 = vld [vmem:[#allocation9 + $0x1e0] ss:$16 sps:$4 sm:$0xff]   ;;  %v6731_v13 = vld [vmem:[#allocation9 + $0x204] ss:$16 sps:$4 sm:$0xff]   ;;  %v7382_v20 = vpack.c.bf16 %v772_v12, %v772_v12 }
  0x70   :  { %3331 = vmatpush1.bf16.msra.mxu0 %v6682_v35  ;;  %v333_v35 = vrot.slane %v321_v25, 6  ;;  %v6729_v25 = vld [vmem:[#allocation9 + $0x200] ss:$16 sps:$4 sm:$0xff]   ;;  %v6738_v52 = vld [vmem:[#allocation9 + $0x228] ss:$16 sps:$4 sm:$0xff]  }
  0x71   :  { %3637 = vmatpush1.bf16.msra.mxu1 %v6683_v36  ;;  %3332 = vmatprep.subr.bf16.mxu0 %v6684_v37  ;;  %v454_v36 = vcombine.high %v444_v33, %v444_v33  ;;  %v496_v37 = vcombine.high %v486_v34, %v486_v34  ;;  %508 = vst [vmem:[#allocation2 + $0x40] sm:$0x3] %v504_v49  ;;  %v2498_v31 = vld [vmem:[#allocation3] sm:$0xff]  ;;  %v801_v34 = vrot.slane %v7382_v20, 2 }
  0x72   :  { %3638 = vmatprep.subr.bf16.mxu1 %v6686_v38  ;;  %v528_v38 = vld [vmem:[#allocation4 + $0x90] sm:$0xff]  ;;  %341 = vst [vmem:[#allocation3 + $0x28] sm:$0xc] %v333_v35 }
  0x73   :  { %v505_v48 = vpack.c.bf16 %v496_v37, %v496_v37  ;;  %v7367_v55 = vpack.c.bf16 %v528_v38, %v528_v38  ;;  %v6740_v37 = vld [vmem:[#allocation9 + $0x22c] ss:$16 sps:$4 sm:$0xff]   ;;  %809 = vst [vmem:[#allocation3 + $0x68] sm:$0xc0] %v801_v34  ;;  %v6757_v34 = vld [vmem:[#allocation9 + $0x264] ss:$16 sps:$4 sm:$0xff]  }
  0x74   :  { %3333 = vmatpush1.bf16.msra.mxu0 %v6688_v39  ;;  %v578_v39 = vld [vmem:[#allocation4 + $0xa0] sm:$0xff] }
  0x75   :  { %3639 = vmatpush1.bf16.msra.mxu1 %v6689_v40  ;;  %3334 = vmatprep.subr.bf16.mxu0 %v6690_v41  ;;  %v7356_v40 = vpack.c.bf16 %v444_v33, %v444_v33  ;;  %v383_v41 = vrot.slane %v7349_v29, 4  ;;  %v517_v56 = vrot.slane %v505_v48, 6  ;;  %509 = vst [vmem:[#allocation2 + $0x48] sm:$0x3] %v505_v48  ;;  %v7370_v59 = vpack.c.bf16 %v578_v39, %v578_v39 }
  0x76   :  { %3640 = vmatprep.subr.bf16.mxu1 %v6692_v42  ;;  %v433_v42 = vrot.slane %v7351_v30, 2  ;;  %v566_v4 = vrot.slane %v7367_v55, 4 }
  0x77   :  { %482 = vst [vmem:[#allocation3 + $0x40] sm:$0x3] %v7356_v40  ;;  %391 = vst [vmem:[#allocation3 + $0x28] sm:$0x30] %v383_v41  ;;  %v616_v9 = vrot.slane %v7370_v59, 2 }
  0x78   :  { %3335 = vmatpush1.bf16.msra.mxu0 %v6694_v43  ;;  %v538_v43 = vcombine.high %v528_v38, %v528_v38  ;;  %441 = vst [vmem:[#allocation3 + $0x28] sm:$0xc0] %v433_v42  ;;  %525 = vst [vmem:[#allocation3 + $0x48] sm:$0xc] %v517_v56  ;;  %v854_v42 = vld [vmem:[#allocation4 + $0x100] sm:$0xff] }
  0x79   :  { %3641 = vmatpush1.bf16.msra.mxu1 %v6695_v44  ;;  %3336 = vmatprep.subr.bf16.mxu0 %v6696_v45  ;;  %v588_v44 = vcombine.high %v578_v39, %v578_v39  ;;  %v6718_v45 = vld [vmem:[#allocation9 + $0x1c0] ss:$16 sps:$4 sm:$0xff]   ;;  %574 = vst [vmem:[#allocation3 + $0x40] sm:$0x30] %v566_v4  ;;  %624 = vst [vmem:[#allocation3 + $0x40] sm:$0xc0] %v616_v9  ;;  %v864_v48 = vcombine.high %v854_v42, %v854_v42 }
  0x7a   :  { %3642 = vmatprep.subr.bf16.mxu1 %v6698_v46  ;;  %v6719_v46 = vld [vmem:[#allocation9 + $0x1c8] ss:$16 sps:$4 sm:$0xff]   ;;  %v812_v39 = vld [vmem:[#allocation4 + $0xf0] sm:$0xff] }
  0x7b   :  { %v822_v41 = vcombine.high %v812_v39, %v812_v39  ;;  %v996_v9 = vld [vmem:[#allocation4 + $0x130] sm:$0xff] }
  0x7c   :  { %3337 = vmatpush1.bf16.msra.mxu0 %v6700_v47  ;;  %v7360_v47 = vpack.c.bf16 %v454_v36, %v454_v36  ;;  %v6737_v36 = vld [vmem:[#allocation9 + $0x224] ss:$16 sps:$4 sm:$0xff]  }
  0x7d   :  { %3643 = vmatpush1.bf16.msra.mxu1 %v6701_v53  ;;  %3338 = vmatprep.subr.bf16.mxu0 %v6702_v54  ;;  %v7363_v53 = vpack.c.bf16 %v538_v43, %v538_v43  ;;  %v7365_v54 = vpack.c.bf16 %v588_v44, %v588_v44  ;;  %v896_v43 = vld [vmem:[#allocation4 + $0x110] sm:$0xff]  ;;  %v946_v44 = vld [vmem:[#allocation4 + $0x120] sm:$0xff]  ;;  %v7396_v56 = vpack.c.bf16 %v822_v41, %v822_v41  ;;  %v6758_v41 = vld [vmem:[#allocation9 + $0x268] ss:$16 sps:$4 sm:$0xff]  }
  0x7e   :  { %3644 = vmatprep.subr.bf16.mxu1 %v6704_v58  ;;  %483 = vst [vmem:[#allocation3 + $0x48] sm:$0x3] %v7360_v47  ;;  %v516_v58 = vrot.slane %v504_v49, 6  ;;  %v906_v49 = vcombine.high %v896_v43, %v896_v43 }
  0x7f   :  { %v617_v3 = vrot.slane %v7365_v54, 2  ;;  %851 = vst [vmem:[#allocation3 + $0x88] sm:$0x3] %v7396_v56 }
  0x80   :  { %3339 = vmatpush1.bf16.msra.mxu0 %v6706_v1  ;;  %v712_v1 = vld [vmem:[#allocation4 + $0xd0] sm:$0xff]  ;;  %524 = vst [vmem:[#allocation3 + $0x40] sm:$0xc] %v516_v58  ;;  %v872_v58 = vpack.c.bf16 %v854_v42, %v854_v42  ;;  %v6760_v42 = vld [vmem:[#allocation9 + $0x26c] ss:$16 sps:$4 sm:$0xff]  }
  0x81   :  { %3645 = vmatpush1.bf16.msra.mxu1 %v6707_v2  ;;  %3340 = vmatprep.subr.bf16.mxu0 %v6708_v5  ;;  %v567_v2 = vrot.slane %v7363_v53, 4  ;;  %v638_v5 = vcombine.high %v628_v60, %v628_v60  ;;  %v722_v11 = vcombine.high %v712_v1, %v712_v1  ;;  %625 = vst [vmem:[#allocation3 + $0x48] sm:$0xc0] %v617_v3 }
  0x82   :  { %3646 = vmatprep.subr.bf16.mxu1 %v6710_v8  ;;  %v6725_v8 = vld [vmem:[#allocation9 + $0x1e8] ss:$16 sps:$4 sm:$0xff]   ;;  %v7399_v60 = vpack.c.bf16 %v896_v43, %v896_v43  ;;  %v7401_v3 = vpack.c.bf16 %v906_v49, %v906_v49  ;;  %876 = vst [vmem:[#allocation2 + $0x80] sm:$0x3] %v872_v58 }
  0x83   :  { %575 = vst [vmem:[#allocation3 + $0x48] sm:$0x30] %v567_v2  ;;  %v7376_v15 = vpack.c.bf16 %v638_v5, %v638_v5  ;;  %v7380_v19 = vpack.c.bf16 %v722_v11, %v722_v11  ;;  %v873_v2 = vpack.c.bf16 %v864_v48, %v864_v48  ;;  %v6745_v5 = vld [vmem:[#allocation9 + $0x240] ss:$16 sps:$4 sm:$0xff]  }
  0x84   :  { %3341 = vmatpush1.bf16.msra.mxu0 %v6712_v17  ;;  %v688_v17 = vpack.c.bf16 %v670_v0, %v670_v0  ;;  %v6747_v0 = vld [vmem:[#allocation9 + $0x244] ss:$16 sps:$4 sm:$0xff]   ;;  %v935_v12 = vrot.slane %v7401_v3, 4 }
  0x85   :  { %3647 = vmatpush1.bf16.msra.mxu1 %v6713_v18  ;;  %3342 = vmatprep.subr.bf16.mxu0 %v6714_v23  ;;  %v689_v18 = vpack.c.bf16 %v680_v10, %v680_v10  ;;  %v7384_v23 = vpack.c.bf16 %v712_v1, %v712_v1  ;;  %667 = vst [vmem:[#allocation3 + $0x68] sm:$0x3] %v7376_v15  ;;  %v751_v33 = vrot.slane %v7380_v19, 4  ;;  %v6750_v1 = vld [vmem:[#allocation9 + $0x24c] ss:$16 sps:$4 sm:$0xff]   ;;  %v1038_v10 = vld [vmem:[#allocation4 + $0x140] sm:$0xff] }
  0x86   :  { %3648 = vmatprep.subr.bf16.mxu1 %v6716_v28  ;;  %v700_v27 = vrot.slane %v688_v17, 6  ;;  %v7388_v28 = vpack.c.bf16 %v762_v6, %v762_v6  ;;  %692 = vst [vmem:[#allocation2 + $0x60] sm:$0x3] %v688_v17  ;;  %v884_v6 = vrot.slane %v872_v58, 6  ;;  %v885_v11 = vrot.slane %v873_v2, 6  ;;  %v1080_v17 = vld [vmem:[#allocation4 + $0x150] sm:$0xff] }
  0x87   :  { %v701_v32 = vrot.slane %v689_v18, 6  ;;  %693 = vst [vmem:[#allocation2 + $0x68] sm:$0x3] %v689_v18  ;;  %v750_v35 = vrot.slane %v7384_v23, 4  ;;  %759 = vst [vmem:[#allocation3 + $0x68] sm:$0x30] %v751_v33  ;;  %v7420_v48 = vpack.c.bf16 %v1080_v17, %v1080_v17 }
  0x88   :  { %3343 = vmatpush1.bf16.msra.mxu0 %v6718_v45  ;;  %708 = vst [vmem:[#allocation3 + $0x60] sm:$0xc] %v700_v27  ;;  %v800_v38 = vrot.slane %v7388_v28, 2  ;;  %v7394_v45 = vpack.c.bf16 %v812_v39, %v812_v39  ;;  %877 = vst [vmem:[#allocation2 + $0x88] sm:$0x3] %v873_v2  ;;  %v1130_v18 = vld [vmem:[#allocation4 + $0x160] sm:$0xff] }
  0x89   :  { %3649 = vmatpush1.bf16.msra.mxu1 %v6719_v46  ;;  %3344 = vmatprep.subr.bf16.mxu0 %v6720_v50  ;;  %709 = vst [vmem:[#allocation3 + $0x68] sm:$0xc] %v701_v32  ;;  %758 = vst [vmem:[#allocation3 + $0x60] sm:$0x30] %v750_v35  ;;  %v2503_v46 = vld [vmem:[#allocation3 + $0x28] sm:$0xff]  ;;  %v956_v50 = vcombine.high %v946_v44, %v946_v44  ;;  %v1090_v32 = vcombine.high %v1080_v17, %v1080_v17  ;;  %v1264_v58 = vld [vmem:[#allocation4 + $0x190] sm:$0xff] }
  0x8a   :  { %3650 = vmatprep.subr.bf16.mxu1 %v6722_v51  ;;  %808 = vst [vmem:[#allocation3 + $0x60] sm:$0xc0] %v800_v38  ;;  %v6735_v51 = vld [vmem:[#allocation9 + $0x220] ss:$16 sps:$4 sm:$0xff]   ;;  %850 = vst [vmem:[#allocation3 + $0x80] sm:$0x3] %v7394_v45  ;;  %v1140_v33 = vcombine.high %v1130_v18, %v1130_v18 }
  0x8b   :  { %v7403_v4 = vpack.c.bf16 %v956_v50, %v956_v50  ;;  %892 = vst [vmem:[#allocation3 + $0x80] sm:$0xc] %v884_v6  ;;  %893 = vst [vmem:[#allocation3 + $0x88] sm:$0xc] %v885_v11  ;;  %v2507_v38 = vld [vmem:[#allocation3 + $0x48] sm:$0xff]  ;;  %v7424_v50 = vpack.c.bf16 %v1130_v18, %v1130_v18  ;;  %v1118_v6 = vrot.slane %v7420_v48, 4 }
  0x8c   :  { %3345 = vmatpush1.bf16.msra.mxu0 %v6724_v7  ;;  %v934_v7 = vrot.slane %v7399_v60, 4  ;;  %943 = vst [vmem:[#allocation3 + $0x88] sm:$0x30] %v935_v12  ;;  %v6755_v39 = vld [vmem:[#allocation9 + $0x260] ss:$16 sps:$4 sm:$0xff]  }
  0x8d   :  { %3651 = vmatpush1.bf16.msra.mxu1 %v6725_v8  ;;  %3467 = vmatprep.subr.bf16.mxu0 %v6731_v13  ;;  %v7407_v8 = vpack.c.bf16 %v946_v44, %v946_v44  ;;  %v985_v13 = vrot.slane %v7403_v4, 2  ;;  %v7416_v44 = vpack.c.bf16 %v1090_v32, %v1090_v32  ;;  %v1168_v11 = vrot.slane %v7424_v50, 2  ;;  %1126 = vst [vmem:[#allocation3 + $0xa0] sm:$0x30] %v1118_v6  ;;  %v2506_v32 = vld [vmem:[#allocation3 + $0x40] sm:$0xff]  ;;  %v1448_v6 = vld [vmem:[#allocation4 + $0x1d0] sm:$0xff] }
  0x8e   :  { %3773 = vmatprep.subr.bf16.mxu1 %v6734_v14  ;;  %v1006_v14 = vcombine.high %v996_v9, %v996_v9  ;;  %942 = vst [vmem:[#allocation3 + $0x80] sm:$0x30] %v934_v7  ;;  %v1314_v7 = vld [vmem:[#allocation4 + $0x1a0] sm:$0xff] }
  0x8f   :  { %3347 = vmatmul.mubr.bf16.vlgmr.msra.gmra.mrb[0].mxu0 %v2498_v31  ;;  %v984_v27 = vrot.slane %v7407_v8, 2  ;;  %993 = vst [vmem:[#allocation3 + $0x88] sm:$0xc0] %v985_v13  ;;  %1176 = vst [vmem:[#allocation3 + $0xa0] sm:$0xc0] %v1168_v11  ;;  %v1498_v11 = vld [vmem:[#allocation4 + $0x1e0] sm:$0xff] }
  0x90   :  { %3653 = vmatmul.mubr.bf16.vlgmr.msra.gmra.mrb[0].mxu1 %v2498_v31  ;;  %3468 = vmatpush1.bf16.msra.mxu0 %v6729_v25  ;;  %v2502_v25 = vld [vmem:[#allocation3 + $0x20] sm:$0xff]  ;;  %v1048_v31 = vcombine.high %v1038_v10, %v1038_v10  ;;  %v7412_v35 = vpack.c.bf16 %v1006_v14, %v1006_v14  ;;  %v1324_v14 = vcombine.high %v1314_v7, %v1314_v7 }
  0x91   :  { %3774 = vmatpush1.bf16.msra.mxu1 %v6732_v26  ;;  %3469 = vmatprep.subr.bf16.mxu0 %v6737_v36  ;;  %v6748_v26 = vld [vmem:[#allocation9 + $0x248] ss:$16 sps:$4 sm:$0xff]   ;;  %v7414_v36 = vpack.c.bf16 %v996_v9, %v996_v9  ;;  %992 = vst [vmem:[#allocation3 + $0x80] sm:$0xc0] %v984_v27  ;;  %v6767_v9 = vld [vmem:[#allocation9 + $0x284] ss:$16 sps:$4 sm:$0xff]  }
  0x92   :  { %3775 = vmatprep.subr.bf16.mxu1 %v6740_v37  ;;  %3356 = vmatprep.mubr.bf16.mxu0 %v2503_v46  ;;  %v1056_v37 = vpack.c.bf16 %v1038_v10, %v1038_v10  ;;  %v1057_v43 = vpack.c.bf16 %v1048_v31, %v1048_v31  ;;  %1035 = vst [vmem:[#allocation3 + $0xa8] sm:$0x3] %v7412_v35  ;;  %v6770_v10 = vld [vmem:[#allocation9 + $0x28c] ss:$16 sps:$4 sm:$0xff]  }
  0x93   :  { %3662 = vmatprep.mubr.bf16.mxu1 %v2503_v46  ;;  %v7418_v46 = vpack.c.bf16 %v1140_v33, %v1140_v33  ;;  %1034 = vst [vmem:[#allocation3 + $0xa0] sm:$0x3] %v7414_v36  ;;  %v7436_v31 = vpack.c.bf16 %v1264_v58, %v1264_v58  ;;  %v6765_v33 = vld [vmem:[#allocation9 + $0x280] ss:$16 sps:$4 sm:$0xff]  }
  0x94   :  { %3470 = vmatpush1.bf16.msra.mxu0 %v6735_v51  ;;  %v1068_v49 = vrot.slane %v1056_v37, 6  ;;  %1060 = vst [vmem:[#allocation2 + $0xa0] sm:$0x3] %v1056_v37  ;;  %v1180_v51 = vld [vmem:[#allocation4 + $0x170] sm:$0xff]  ;;  %1061 = vst [vmem:[#allocation2 + $0xa8] sm:$0x3] %v1057_v43  ;;  %v7438_v37 = vpack.c.bf16 %v1324_v14, %v1324_v14  ;;  %v1508_v14 = vcombine.high %v1498_v11, %v1498_v11 }
  0x95   :  { %3776 = vmatpush1.bf16.msra.mxu1 %v6738_v52  ;;  %3471 = vmatprep.subr.bf16.mxu0 %v6747_v0  ;;  %v1222_v52 = vld [vmem:[#allocation4 + $0x180] sm:$0xff]  ;;  %v1069_v0 = vrot.slane %v1057_v43, 6  ;;  %v1169_v2 = vrot.slane %v7418_v46, 2  ;;  %v1190_v12 = vcombine.high %v1180_v51, %v1180_v51  ;;  %v7430_v17 = vpack.c.bf16 %v1180_v51, %v1180_v51  ;;  %8161 = vst [vmem:[#allocation14_spill] sm:$0xff] %v7436_v31  ;;  %v2511_v43 = vld [vmem:[#allocation3 + $0x68] sm:$0xff] }
  0x96   :  { %3777 = vmatprep.subr.bf16.mxu1 %v6750_v1  ;;  %v1119_v1 = vrot.slane %v7416_v44, 4  ;;  %1076 = vst [vmem:[#allocation3 + $0xa0] sm:$0xc] %v1068_v49  ;;  %v1232_v13 = vcombine.high %v1222_v52, %v1222_v52  ;;  %v1240_v18 = vpack.c.bf16 %v1222_v52, %v1222_v52  ;;  %8162 = vst [vmem:[#allocation15_spill] sm:$0xff] %v7438_v37  ;;  %v6776_v52 = vld [vmem:[#allocation9 + $0x2ac] ss:$16 sps:$4 sm:$0xff]  }
  0x97   :  { %3357 = vmatmul.mubr.bf16.gmra.mrb[4].mxu0 %v2502_v25  ;;  %1077 = vst [vmem:[#allocation3 + $0xa8] sm:$0xc] %v1069_v0  ;;  %1177 = vst [vmem:[#allocation3 + $0xa8] sm:$0xc0] %v1169_v2  ;;  %v1406_v2 = vld [vmem:[#allocation4 + $0x1c0] sm:$0xff] }
  0x98   :  { %3663 = vmatmul.mubr.bf16.gmra.mrb[4].mxu1 %v2502_v25  ;;  %3472 = vmatpush1.bf16.msra.mxu0 %v6745_v5  ;;  %v1274_v5 = vcombine.high %v1264_v58, %v1264_v58  ;;  %1127 = vst [vmem:[#allocation3 + $0xa8] sm:$0x30] %v1119_v1  ;;  %v7432_v25 = vpack.c.bf16 %v1190_v12, %v1190_v12  ;;  %1218 = vst [vmem:[#allocation3 + $0xc0] sm:$0x3] %v7430_v17  ;;  %v1353_v58 = vrot.slane %v7438_v37, 2  ;;  %v1364_v1 = vld [vmem:[#allocation4 + $0x1b0] sm:$0xff] }
  0x99   :  { %3778 = vmatpush1.bf16.msra.mxu1 %v6748_v26  ;;  %3366 = vmatprep.mubr.bf16.mxu0 %v2507_v38  ;;  %v1241_v26 = vpack.c.bf16 %v1232_v13, %v1232_v13  ;;  %1244 = vst [vmem:[#allocation2 + $0xc0] sm:$0x3] %v1240_v18  ;;  %v6771_v12 = vld [vmem:[#allocation9 + $0x2a0] ss:$16 sps:$4 sm:$0xff]   ;;  %v6774_v13 = vld [vmem:[#allocation9 + $0x2a8] ss:$16 sps:$4 sm:$0xff]  }
  0x9a   :  { %3672 = vmatprep.mubr.bf16.mxu1 %v2507_v38  ;;  %3473 = vmatprep.subr.bf16.mxu0 %v6757_v34  ;;  %v7434_v27 = vpack.c.bf16 %v1274_v5, %v1274_v5  ;;  %v6768_v34 = vld [vmem:[#allocation9 + $0x288] ss:$16 sps:$4 sm:$0xff]   ;;  %v1252_v38 = vrot.slane %v1240_v18, 6  ;;  %1219 = vst [vmem:[#allocation3 + $0xc8] sm:$0x3] %v7432_v25  ;;  %v7448_v18 = vpack.c.bf16 %v1364_v1, %v1364_v1 }
  0x9b   :  { %3779 = vmatprep.subr.bf16.mxu1 %v6760_v42  ;;  %v7441_v42 = vpack.c.bf16 %v1314_v7, %v1314_v7  ;;  %v1253_v49 = vrot.slane %v1241_v26, 6  ;;  %1245 = vst [vmem:[#allocation2 + $0xc8] sm:$0x3] %v1241_v26  ;;  %1361 = vst [vmem:[#allocation3 + $0xc8] sm:$0xc0] %v1353_v58  ;;  %v1374_v7 = vcombine.high %v1364_v1, %v1364_v1 }
  0x9c   :  { %3474 = vmatpush1.bf16.msra.mxu0 %v6755_v39  ;;  %v1303_v51 = vrot.slane %v7434_v27, 4  ;;  %v1302_v39 = vrot.slane %v7436_v31, 4  ;;  %1260 = vst [vmem:[#allocation3 + $0xc0] sm:$0xc] %v1252_v38  ;;  %v6783_v5 = vld [vmem:[#allocation9 + $0x2c4] ss:$16 sps:$4 sm:$0xff]   ;;  %v1424_v26 = vpack.c.bf16 %v1406_v2, %v1406_v2  ;;  %v7457_v1 = vpack.c.bf16 %v1448_v6, %v1448_v6 }
  0x9d   :  { %3780 = vmatpush1.bf16.msra.mxu1 %v6758_v41  ;;  %8163 = vst [vmem:[#allocation16_spill] sm:$0xff] %v7441_v42  ;;  %3475 = vmatprep.subr.bf16.mxu0 %v6767_v9  ;;  %v6773_v41 = vld [vmem:[#allocation9 + $0x2a4] ss:$16 sps:$4 sm:$0xff]   ;;  %v1352_v0 = vrot.slane %v7441_v42, 2  ;;  %1261 = vst [vmem:[#allocation3 + $0xc8] sm:$0xc] %v1253_v49  ;;  %v1416_v9 = vcombine.high %v1406_v2, %v1406_v2  ;;  %v7450_v38 = vpack.c.bf16 %v1374_v7, %v1374_v7 }
  0x9e   :  { %3781 = vmatprep.subr.bf16.mxu1 %v6770_v10  ;;  %1311 = vst [vmem:[#allocation3 + $0xc8] sm:$0x30] %v1303_v51  ;;  %1310 = vst [vmem:[#allocation3 + $0xc0] sm:$0x30] %v1302_v39  ;;  %v1458_v10 = vcombine.high %v1448_v6, %v1448_v6  ;;  %v2510_v51 = vld [vmem:[#allocation3 + $0x60] sm:$0xff]  ;;  %v2515_v39 = vld [vmem:[#allocation3 + $0x88] sm:$0xff]  ;;  %v7459_v2 = vpack.c.bf16 %v1498_v11, %v1498_v11 }
  0x9f   :  { %3367 = vmatmul.mubr.bf16.gmra.mrb[8].mxu0 %v2506_v32  ;;  %1360 = vst [vmem:[#allocation3 + $0xc0] sm:$0xc0] %v1352_v0  ;;  %8164 = vst [vmem:[#allocation17_spill] sm:$0xff] %v7448_v18  ;;  %v6781_v58 = vld [vmem:[#allocation9 + $0x2c0] ss:$16 sps:$4 sm:$0xff]   ;;  %v1436_v0 = vrot.slane %v1424_v26, 6 }
  0xa0   :  { %3673 = vmatmul.mubr.bf16.gmra.mrb[8].mxu1 %v2506_v32  ;;  %3376 = vmatprep.mubr.bf16.mxu0 %v2511_v43  ;;  %v6786_v32 = vld [vmem:[#allocation9 + $0x2cc] ss:$16 sps:$4 sm:$0xff]   ;;  %8165 = vst [vmem:[#allocation18_spill] sm:$0xff] %v7450_v38  ;;  %v7452_v49 = vpack.c.bf16 %v1458_v10, %v1458_v10  ;;  %1402 = vst [vmem:[#allocation3 + $0xe0] sm:$0x3] %v7448_v18  ;;  %v1590_v10 = vld [vmem:[#allocation4 + $0x200] sm:$0xff] }
  0xa1   :  { %3682 = vmatprep.mubr.bf16.mxu1 %v2511_v43  ;;  %3476 = vmatpush1.bf16.msra.mxu0 %v6765_v33  ;;  %v1425_v43 = vpack.c.bf16 %v1416_v9, %v1416_v9  ;;  %v6784_v33 = vld [vmem:[#allocation9 + $0x2c8] ss:$16 sps:$4 sm:$0xff]   ;;  %8167 = vst [vmem:[#allocation20_spill] sm:$0xff] %v7457_v1  ;;  %8168 = vst [vmem:[#allocation21_spill] sm:$0xff] %v7459_v2  ;;  %v1632_v42 = vld [vmem:[#allocation4 + $0x210] sm:$0xff]  ;;  %v1486_v11 = vrot.slane %v7457_v1, 4  ;;  %v1600_v18 = vcombine.high %v1590_v10, %v1590_v10 }
  0xa2   :  { %3782 = vmatpush1.bf16.msra.mxu1 %v6768_v34  ;;  %3477 = vmatprep.subr.bf16.mxu0 %v6773_v41  ;;  %8166 = vst [vmem:[#allocation19_spill] sm:$0xff] %v7452_v49  ;;  %v7454_v34 = vpack.c.bf16 %v1508_v14, %v1508_v14  ;;  %1428 = vst [vmem:[#allocation2 + $0xe0] sm:$0x3] %v1424_v26  ;;  %v1548_v41 = vld [vmem:[#allocation4 + $0x1f0] sm:$0xff]  ;;  %v1487_v7 = vrot.slane %v7452_v49, 4  ;;  %v1682_v14 = vld [vmem:[#allocation4 + $0x220] sm:$0xff] }
  0xa3   :  { %3783 = vmatprep.subr.bf16.mxu1 %v6776_v52  ;;  %1403 = vst [vmem:[#allocation3 + $0xe8] sm:$0x3] %v7450_v38  ;;  %v1437_v52 = vrot.slane %v1425_v43, 6  ;;  %1429 = vst [vmem:[#allocation2 + $0xe8] sm:$0x3] %v1425_v43  ;;  %v1558_v9 = vcombine.high %v1548_v41, %v1548_v41  ;;  %v7463_v31 = vpack.c.bf16 %v1548_v41, %v1548_v41  ;;  %v1536_v26 = vrot.slane %v7459_v2, 2 }
  0xa4   :  { %v1537_v6 = vrot.slane %v7454_v34, 2  ;;  %1444 = vst [vmem:[#allocation3 + $0xe0] sm:$0xc] %v1436_v0  ;;  %v6793_v49 = vld [vmem:[#allocation9 + $0x2e4] ss:$16 sps:$4 sm:$0xff]   ;;  %v1642_v41 = vcombine.high %v1632_v42, %v1632_v42  ;;  %v1692_v37 = vcombine.high %v1682_v14, %v1682_v14  ;;  %v1609_v0 = vpack.c.bf16 %v1600_v18, %v1600_v18 }
  0xa5   :  { %8169 = vst [vmem:[#allocation22_spill] sm:$0xff] %v7463_v31  ;;  %3478 = vmatpush1.bf16.msra.mxu0 %v6771_v12  ;;  %v6796_v43 = vld [vmem:[#allocation9 + $0x2ec] ss:$16 sps:$4 sm:$0xff]   ;;  %1445 = vst [vmem:[#allocation3 + $0xe8] sm:$0xc] %v1437_v52  ;;  %v7468_v38 = vpack.c.bf16 %v1558_v9, %v1558_v9  ;;  %v1774_v2 = vld [vmem:[#allocation4 + $0x240] sm:$0xff] }
  0xa6   :  { %3784 = vmatpush1.bf16.msra.mxu1 %v6774_v13  ;;  %3479 = vmatprep.subr.bf16.mxu0 %v6783_v5  ;;  %1495 = vst [vmem:[#allocation3 + $0xe8] sm:$0x30] %v1487_v7  ;;  %1586 = vst [vmem:[#allocation3 + $0x100] sm:$0x3] %v7463_v31  ;;  %v6791_v12 = vld [vmem:[#allocation9 + $0x2e0] ss:$16 sps:$4 sm:$0xff]   ;;  %v1608_v5 = vpack.c.bf16 %v1590_v10, %v1590_v10  ;;  %v7474_v7 = vpack.c.bf16 %v1642_v41, %v1642_v41 }
  0xa7   :  { %3785 = vmatprep.subr.bf16.mxu1 %v6786_v32  ;;  %8170 = vst [vmem:[#allocation23_spill] sm:$0xff] %v7468_v38  ;;  %3377 = vmatmul.mubr.bf16.gmra.mrb[12].mxu0 %v2510_v51  ;;  %v6794_v13 = vld [vmem:[#allocation9 + $0x2e8] ss:$16 sps:$4 sm:$0xff]   ;;  %1545 = vst [vmem:[#allocation3 + $0xe8] sm:$0xc0] %v1537_v6  ;;  %v7471_v32 = vpack.c.bf16 %v1632_v42, %v1632_v42  ;;  %v7476_v9 = vpack.c.bf16 %v1692_v37, %v1692_v37  ;;  %v1621_v6 = vrot.slane %v1609_v0, 6 }
  0xa8   :  { %3683 = vmatmul.mubr.bf16.gmra.mrb[12].mxu1 %v2510_v51  ;;  %1494 = vst [vmem:[#allocation3 + $0xe0] sm:$0x30] %v1486_v11  ;;  %1544 = vst [vmem:[#allocation3 + $0xe0] sm:$0xc0] %v1536_v26  ;;  %3386 = vmatprep.mubr.bf16.mxu0 %v2515_v39  ;;  %v6803_v52 = vld [vmem:[#allocation9 + $0x304] ss:$16 sps:$4 sm:$0xff]   ;;  %v7478_v31 = vpack.c.bf16 %v1682_v14, %v1682_v14 }
  0xa9   :  { %8171 = vst [vmem:[#allocation24_spill] sm:$0xff] %v7471_v32  ;;  %3692 = vmatprep.mubr.bf16.mxu1 %v2515_v39  ;;  %1587 = vst [vmem:[#allocation3 + $0x108] sm:$0x3] %v7468_v38  ;;  %v1732_v51 = vld [vmem:[#allocation4 + $0x230] sm:$0xff]  ;;  %3480 = vmatpush1.bf16.msra.mxu0 %v6781_v58  ;;  %v1620_v18 = vrot.slane %v1608_v5, 6  ;;  %v1670_v42 = vrot.slane %v7471_v32, 4  ;;  %v1784_v58 = vcombine.high %v1774_v2, %v1774_v2 }
  0xaa   :  { %8172 = vst [vmem:[#allocation25_spill] sm:$0xff] %v7474_v7  ;;  %8173 = vst [vmem:[#allocation26_spill] sm:$0xff] %v7476_v9  ;;  %3786 = vmatpush1.bf16.msra.mxu1 %v6784_v33  ;;  %v1742_v39 = vcombine.high %v1732_v51, %v1732_v51  ;;  %v1816_v10 = vld [vmem:[#allocation4 + $0x250] sm:$0xff]  ;;  %v1866_v11 = vld [vmem:[#allocation4 + $0x260] sm:$0xff]  ;;  %3481 = vmatprep.subr.bf16.mxu0 %v6793_v49  ;;  %v1671_v37 = vrot.slane %v7474_v7, 4  ;;  %v1721_v14 = vrot.slane %v7476_v9, 2 }
  0xab   :  { %8174 = vst [vmem:[#allocation27_spill] sm:$0xff] %v7478_v31  ;;  %1613 = vst [vmem:[#allocation2 + $0x108] sm:$0x3] %v1609_v0  ;;  %3787 = vmatprep.subr.bf16.mxu1 %v6796_v43  ;;  %v6806_v26 = vld [vmem:[#allocation9 + $0x30c] ss:$16 sps:$4 sm:$0xff]   ;;  %v1720_v41 = vrot.slane %v7478_v31, 2  ;;  %v1876_v32 = vcombine.high %v1866_v11, %v1866_v11  ;;  %v7486_v1 = vpack.c.bf16 %v1732_v51, %v1732_v51 }
  0xac   :  { %1612 = vst [vmem:[#allocation2 + $0x100] sm:$0x3] %v1608_v5  ;;  %v6801_v33 = vld [vmem:[#allocation9 + $0x300] ss:$16 sps:$4 sm:$0xff]   ;;  %1629 = vst [vmem:[#allocation3 + $0x108] sm:$0xc] %v1621_v6  ;;  %v7484_v0 = vpack.c.bf16 %v1742_v39, %v1742_v39  ;;  %v1826_v5 = vcombine.high %v1816_v10, %v1816_v10  ;;  %v1793_v7 = vpack.c.bf16 %v1784_v58, %v1784_v58 }
  0xad   :  { %1628 = vst [vmem:[#allocation3 + $0x100] sm:$0xc] %v1620_v18  ;;  %1678 = vst [vmem:[#allocation3 + $0x100] sm:$0x30] %v1670_v42  ;;  %v2514_v49 = vld [vmem:[#allocation3 + $0x80] sm:$0xff]  ;;  %v1792_v9 = vpack.c.bf16 %v1774_v2, %v1774_v2  ;;  %v7488_v38 = vpack.c.bf16 %v1816_v10, %v1816_v10  ;;  %v7490_v31 = vpack.c.bf16 %v1866_v11, %v1866_v11  ;;  %v2519_v6 = vld [vmem:[#allocation3 + $0xa8] sm:$0xff]  ;;  %3482 = vmatpush1.bf16.msra.mxu0 %v6791_v12 }
  0xae   :  { %8175 = vst [vmem:[#allocation28_spill] sm:$0xff] %v7484_v0  ;;  %8176 = vst [vmem:[#allocation29_spill] sm:$0xff] %v7486_v1  ;;  %v6804_v43 = vld [vmem:[#allocation9 + $0x308] ss:$16 sps:$4 sm:$0xff]   ;;  %3788 = vmatpush1.bf16.msra.mxu1 %v6794_v13  ;;  %v6809_v18 = vld [vmem:[#allocation9 + $0x324] ss:$16 sps:$4 sm:$0xff]   ;;  %v7493_v42 = vpack.c.bf16 %v1826_v5, %v1826_v5  ;;  %v7495_v51 = vpack.c.bf16 %v1876_v32, %v1876_v32  ;;  %3483 = vmatprep.subr.bf16.mxu0 %v6803_v52 }
  0xaf   :  { %1679 = vst [vmem:[#allocation3 + $0x108] sm:$0x30] %v1671_v37  ;;  %1729 = vst [vmem:[#allocation3 + $0x108] sm:$0xc0] %v1721_v14  ;;  %3789 = vmatprep.subr.bf16.mxu1 %v6806_v26  ;;  %v6812_v39 = vld [vmem:[#allocation9 + $0x32c] ss:$16 sps:$4 sm:$0xff]   ;;  %3387 = vmatmul.mubr.bf16.gmra.mrb[16].mxu0 %v2514_v49 }
  0xb0   :  { %1728 = vst [vmem:[#allocation3 + $0x100] sm:$0xc0] %v1720_v41  ;;  %8177 = vst [vmem:[#allocation30_spill] sm:$0xff] %v7488_v38  ;;  %v1805_v2 = vrot.slane %v1793_v7, 6  ;;  %v1804_v10 = vrot.slane %v1792_v9, 6  ;;  %v1854_v11 = vrot.slane %v7488_v38, 4  ;;  %3693 = vmatmul.mubr.bf16.gmra.mrb[16].mxu1 %v2514_v49  ;;  %3396 = vmatprep.mubr.bf16.mxu0 %v2519_v6 }
  0xb1   :  { %8178 = vst [vmem:[#allocation31_spill] sm:$0xff] %v7490_v31  ;;  %1771 = vst [vmem:[#allocation3 + $0x128] sm:$0x3] %v7484_v0  ;;  %v1904_v12 = vrot.slane %v7490_v31, 2  ;;  %v6807_v13 = vld [vmem:[#allocation9 + $0x320] ss:$16 sps:$4 sm:$0xff]   ;;  %3702 = vmatprep.mubr.bf16.mxu1 %v2519_v6  ;;  %3484 = vmatpush1.bf16.msra.mxu0 %v6801_v33 }
  0xb2   :  { %8179 = vst [vmem:[#allocation32_spill] sm:$0xff] %v7493_v42  ;;  %8180 = vst [vmem:[#allocation33_spill] sm:$0xff] %v7495_v51  ;;  %v1855_v37 = vrot.slane %v7493_v42, 4  ;;  %v1905_v32 = vrot.slane %v7495_v51, 2  ;;  %v6810_v52 = vld [vmem:[#allocation9 + $0x328] ss:$16 sps:$4 sm:$0xff]   ;;  %3790 = vmatpush1.bf16.msra.mxu1 %v6804_v43  ;;  %3485 = vmatprep.subr.bf16.mxu0 %v6809_v18 }
  0xb3   :  { %1770 = vst [vmem:[#allocation3 + $0x120] sm:$0x3] %v7486_v1  ;;  %1797 = vst [vmem:[#allocation2 + $0x128] sm:$0x3] %v1793_v7  ;;  %v1916_v7 = vld [vmem:[#allocation4 + $0x270] sm:$0xff]  ;;  %v1958_v26 = vld [vmem:[#allocation4 + $0x280] sm:$0xff]  ;;  %3791 = vmatprep.subr.bf16.mxu1 %v6812_v39 }
  0xb4   :  { %1796 = vst [vmem:[#allocation2 + $0x120] sm:$0x3] %v1792_v9  ;;  %1813 = vst [vmem:[#allocation3 + $0x128] sm:$0xc] %v1805_v2  ;;  %v1926_v9 = vcombine.high %v1916_v7, %v1916_v7  ;;  %v1968_v14 = vcombine.high %v1958_v26, %v1958_v26  ;;  %v2000_v41 = vld [vmem:[#allocation4 + $0x290] sm:$0xff]  ;;  %v2050_v58 = vld [vmem:[#allocation4 + $0x2a0] sm:$0xff]  ;;  %v7502_v5 = vpack.c.bf16 %v1916_v7, %v1916_v7 }
  0xb5   :  { %1812 = vst [vmem:[#allocation3 + $0x120] sm:$0xc] %v1804_v10  ;;  %1862 = vst [vmem:[#allocation3 + $0x120] sm:$0x30] %v1854_v11  ;;  %v6819_v49 = vld [vmem:[#allocation9 + $0x344] ss:$16 sps:$4 sm:$0xff]   ;;  %v2010_v2 = vcombine.high %v2000_v41, %v2000_v41  ;;  %v2060_v10 = vcombine.high %v2050_v58, %v2050_v58  ;;  %v1976_v11 = vpack.c.bf16 %v1958_v26, %v1958_v26  ;;  %3486 = vmatpush1.bf16.msra.mxu0 %v6807_v13 }
  0xb6   :  { %1912 = vst [vmem:[#allocation3 + $0x120] sm:$0xc0] %v1904_v12  ;;  %1863 = vst [vmem:[#allocation3 + $0x128] sm:$0x30] %v1855_v37  ;;  %v6822_v6 = vld [vmem:[#allocation9 + $0x34c] ss:$16 sps:$4 sm:$0xff]   ;;  %v7504_v33 = vpack.c.bf16 %v1926_v9, %v1926_v9  ;;  %v1977_v43 = vpack.c.bf16 %v1968_v14, %v1968_v14  ;;  %v7507_v37 = vpack.c.bf16 %v2000_v41, %v2000_v41  ;;  %3792 = vmatpush1.bf16.msra.mxu1 %v6810_v52 }
  0xb7   :  { %1913 = vst [vmem:[#allocation3 + $0x128] sm:$0xc0] %v1905_v32  ;;  %8181 = vst [vmem:[#allocation34_spill] sm:$0xff] %v7502_v5  ;;  %v2518_v12 = vld [vmem:[#allocation3 + $0xa0] sm:$0xff]  ;;  %v6820_v38 = vld [vmem:[#allocation9 + $0x348] ss:$16 sps:$4 sm:$0xff]   ;;  %v7509_v32 = vpack.c.bf16 %v2050_v58, %v2050_v58  ;;  %v7511_v51 = vpack.c.bf16 %v2010_v2, %v2010_v2  ;;  %v7513_v42 = vpack.c.bf16 %v2060_v10, %v2060_v10  ;;  %3487 = vmatprep.subr.bf16.mxu0 %v6819_v49 }
  0xb8   :  { %v6817_v31 = vld [vmem:[#allocation9 + $0x340] ss:$16 sps:$4 sm:$0xff]   ;;  %8182 = vst [vmem:[#allocation35_spill] sm:$0xff] %v7504_v33  ;;  %1954 = vst [vmem:[#allocation3 + $0x140] sm:$0x3] %v7502_v5  ;;  %v2523_v7 = vld [vmem:[#allocation3 + $0xc8] sm:$0xff]  ;;  %3793 = vmatprep.subr.bf16.mxu1 %v6822_v6  ;;  %3397 = vmatmul.mubr.bf16.gmra.mrb[20].mxu0 %v2518_v12 }
  0xb9   :  { %8183 = vst [vmem:[#allocation36_spill] sm:$0xff] %v7507_v37  ;;  %8184 = vst [vmem:[#allocation37_spill] sm:$0xff] %v7509_v32  ;;  %v6829_v18 = vld [vmem:[#allocation9 + $0x364] ss:$16 sps:$4 sm:$0xff]   ;;  %v6832_v39 = vld [vmem:[#allocation9 + $0x36c] ss:$16 sps:$4 sm:$0xff]   ;;  %3703 = vmatmul.mubr.bf16.gmra.mrb[20].mxu1 %v2518_v12  ;;  %3406 = vmatprep.mubr.bf16.mxu0 %v2523_v7 }
  0xba   :  { %8185 = vst [vmem:[#allocation38_spill] sm:$0xff] %v7511_v51  ;;  %8186 = vst [vmem:[#allocation39_spill] sm:$0xff] %v7513_v42  ;;  %v1988_v26 = vrot.slane %v1976_v11, 6  ;;  %v1989_v9 = vrot.slane %v1977_v43, 6  ;;  %v2038_v14 = vrot.slane %v7507_v37, 4  ;;  %v2088_v41 = vrot.slane %v7509_v32, 2  ;;  %3712 = vmatprep.mubr.bf16.mxu1 %v2523_v7  ;;  %3488 = vmatpush1.bf16.msra.mxu0 %v6817_v31 }
  0xbb   :  { %1980 = vst [vmem:[#allocation2 + $0x140] sm:$0x3] %v1976_v11  ;;  %1955 = vst [vmem:[#allocation3 + $0x148] sm:$0x3] %v7504_v33  ;;  %v2100_v58 = vld [vmem:[#allocation4 + $0x2b0] sm:$0xff]  ;;  %v2142_v5 = vld [vmem:[#allocation4 + $0x2c0] sm:$0xff]  ;;  %3794 = vmatpush1.bf16.msra.mxu1 %v6820_v38  ;;  %3489 = vmatprep.subr.bf16.mxu0 %v6829_v18 }
  0xbc   :  { %1981 = vst [vmem:[#allocation2 + $0x148] sm:$0x3] %v1977_v43  ;;  %v2184_v1 = vld [vmem:[#allocation4 + $0x2d0] sm:$0xff]  ;;  %v2039_v2 = vrot.slane %v7511_v51, 4  ;;  %v2089_v10 = vrot.slane %v7513_v42, 2  ;;  %v2110_v13 = vcombine.high %v2100_v58, %v2100_v58  ;;  %v2152_v52 = vcombine.high %v2142_v5, %v2142_v5  ;;  %v2234_v11 = vld [vmem:[#allocation4 + $0x2e0] sm:$0xff]  ;;  %3795 = vmatprep.subr.bf16.mxu1 %v6832_v39 }
  0xbd   :  { %1996 = vst [vmem:[#allocation3 + $0x140] sm:$0xc] %v1988_v26  ;;  %v6827_v43 = vld [vmem:[#allocation9 + $0x360] ss:$16 sps:$4 sm:$0xff]   ;;  %1997 = vst [vmem:[#allocation3 + $0x148] sm:$0xc] %v1989_v9  ;;  %v2194_v32 = vcombine.high %v2184_v1, %v2184_v1  ;;  %v2244_v37 = vcombine.high %v2234_v11, %v2234_v11  ;;  %v7520_v33 = vpack.c.bf16 %v2100_v58, %v2100_v58 }
  0xbe   :  { %2046 = vst [vmem:[#allocation3 + $0x140] sm:$0x30] %v2038_v14  ;;  %2096 = vst [vmem:[#allocation3 + $0x140] sm:$0xc0] %v2088_v41  ;;  %v6830_v49 = vld [vmem:[#allocation9 + $0x368] ss:$16 sps:$4 sm:$0xff]   ;;  %v7522_v6 = vpack.c.bf16 %v2110_v13, %v2110_v13  ;;  %v2161_v26 = vpack.c.bf16 %v2152_v52, %v2152_v52  ;;  %v2160_v42 = vpack.c.bf16 %v2142_v5, %v2142_v5  ;;  %3490 = vmatpush1.bf16.msra.mxu0 %v6827_v43 }
  0xbf   :  { %8187 = vst [vmem:[#allocation40_spill] sm:$0xff] %v7520_v33  ;;  %2047 = vst [vmem:[#allocation3 + $0x148] sm:$0x30] %v2039_v2  ;;  %v6839_v12 = vld [vmem:[#allocation9 + $0x384] ss:$16 sps:$4 sm:$0xff]   ;;  %v7524_v9 = vpack.c.bf16 %v2194_v32, %v2194_v32  ;;  %v7526_v14 = vpack.c.bf16 %v2244_v37, %v2244_v37  ;;  %v7529_v41 = vpack.c.bf16 %v2184_v1, %v2184_v1  ;;  %v120_v7 = vld [vmem:[#allocation4 + $0x8] sm:$0xff]  ;;  %3796 = vmatpush1.bf16.msra.mxu1 %v6830_v49 }
  0xc0   :  { %2097 = vst [vmem:[#allocation3 + $0x148] sm:$0xc0] %v2089_v10  ;;  %8188 = vst [vmem:[#allocation41_spill] sm:$0xff] %v7522_v6  ;;  %v6842_v51 = vld [vmem:[#allocation9 + $0x38c] ss:$16 sps:$4 sm:$0xff]   ;;  %v2522_v58 = vld [vmem:[#allocation3 + $0xc0] sm:$0xff]  ;;  %v7532_v38 = vpack.c.bf16 %v2234_v11, %v2234_v11  ;;  %v129_v5 = vcombine.high %v120_v7, %v120_v7  ;;  %v138_v18 = vpack.c.bf16 %v120_v7, %v120_v7  ;;  %3491 = vmatprep.subr.bf16.mxu0 %v6839_v12 }
  0xc1   :  { %8189 = vst [vmem:[#allocation42_spill] sm:$0xff] %v7524_v9  ;;  %8190 = vst [vmem:[#allocation43_spill] sm:$0xff] %v7526_v14  ;;  %v2173_v2 = vrot.slane %v2161_v26, 6  ;;  %v2172_v31 = vrot.slane %v2160_v42, 6  ;;  %v161_v32 = vld [vmem:[#allocation4 + $0x18] sm:$0xff]  ;;  %v211_v37 = vld [vmem:[#allocation4 + $0x28] sm:$0xff]  ;;  %3797 = vmatprep.subr.bf16.mxu1 %v6842_v51  ;;  %3407 = vmatmul.mubr.bf16.gmra.mrb[24].mxu0 %v2522_v58 }
  0xc2   :  { %2138 = vst [vmem:[#allocation3 + $0x160] sm:$0x3] %v7520_v33  ;;  %8191 = vst [vmem:[#allocation44_spill] sm:$0xff] %v7529_v41  ;;  %v6837_v10 = vld [vmem:[#allocation9 + $0x380] ss:$16 sps:$4 sm:$0xff]   ;;  %v2223_v13 = vrot.slane %v7524_v9, 4  ;;  %v139_v33 = vpack.c.bf16 %v129_v5, %v129_v5  ;;  %v171_v11 = vcombine.high %v161_v32, %v161_v32  ;;  %v7540_v9 = vpack.c.bf16 %v211_v37, %v211_v37 }
  0xc3   :  { %2139 = vst [vmem:[#allocation3 + $0x168] sm:$0x3] %v7522_v6  ;;  %2165 = vst [vmem:[#allocation2 + $0x168] sm:$0x3] %v2161_v26  ;;  %v2273_v1 = vrot.slane %v7526_v14, 2  ;;  %v2222_v52 = vrot.slane %v7529_v41, 4  ;;  %v7538_v6 = vpack.c.bf16 %v161_v32, %v161_v32  ;;  %v221_v14 = vcombine.high %v211_v37, %v211_v37  ;;  %3713 = vmatmul.mubr.bf16.gmra.mrb[24].mxu1 %v2522_v58 }
  0xc4   :  { %8192 = vst [vmem:[#allocation45_spill] sm:$0xff] %v7532_v38  ;;  %2164 = vst [vmem:[#allocation2 + $0x160] sm:$0x3] %v2160_v42  ;;  %v6840_v39 = vld [vmem:[#allocation9 + $0x388] ss:$16 sps:$4 sm:$0xff]   ;;  %v2272_v26 = vrot.slane %v7532_v38, 2  ;;  %v7542_v5 = vpack.c.bf16 %v171_v11, %v171_v11  ;;  %3492 = vmatpush1.bf16.msra.mxu0 %v6837_v10 }
  0xc5   :  { %2181 = vst [vmem:[#allocation3 + $0x168] sm:$0xc] %v2173_v2  ;;  %2180 = vst [vmem:[#allocation3 + $0x160] sm:$0xc] %v2172_v31  ;;  %v2527_v42 = vld [vmem:[#allocation3 + $0xe8] sm:$0xff]  ;;  %v150_v7 = vrot.slane %v138_v18, 6  ;;  %3798 = vmatpush1.bf16.msra.mxu1 %v6840_v39 }
  0xc6   :  { %8193 = vst [vmem:[#allocation46_spill] sm:$0xff] %v7538_v6  ;;  %v6845_v0 = vld [vmem:[#allocation9 + $0x3a4] ss:$16 sps:$4 sm:$0xff]   ;;  %2231 = vst [vmem:[#allocation3 + $0x168] sm:$0x30] %v2223_v13  ;;  %v151_v31 = vrot.slane %v139_v33, 6  ;;  %v7545_v13 = vpack.c.bf16 %v221_v14, %v221_v14  ;;  %3416 = vmatprep.mubr.bf16.mxu0 %v2527_v42  ;;  %3722 = vmatprep.mubr.bf16.mxu1 %v2527_v42 }
  0xc7   :  { %2281 = vst [vmem:[#allocation3 + $0x168] sm:$0xc0] %v2273_v1  ;;  %2230 = vst [vmem:[#allocation3 + $0x160] sm:$0x30] %v2222_v52  ;;  %v6848_v2 = vld [vmem:[#allocation9 + $0x3ac] ss:$16 sps:$4 sm:$0xff]   ;;  %3493 = vmatprep.subr.bf16.mxu0 %v6845_v0 }
  0xc8   :  { %8194 = vst [vmem:[#allocation47_spill] sm:$0xff] %v7540_v9  ;;  %142 = vst [vmem:[#allocation2 + $0x10] sm:$0x3] %v138_v18  ;;  %v200_v43 = vrot.slane %v7538_v6, 4  ;;  %v6843_v49 = vld [vmem:[#allocation9 + $0x3a0] ss:$16 sps:$4 sm:$0xff]   ;;  %3799 = vmatprep.subr.bf16.mxu1 %v6848_v2 }
  0xc9   :  { %2280 = vst [vmem:[#allocation3 + $0x160] sm:$0xc0] %v2272_v26  ;;  %8195 = vst [vmem:[#allocation48_spill] sm:$0xff] %v7542_v5  ;;  %v6846_v32 = vld [vmem:[#allocation9 + $0x3a8] ss:$16 sps:$4 sm:$0xff]   ;;  %v250_v37 = vrot.slane %v7540_v9, 2  ;;  %3494 = vmatpush1.bf16.msra.mxu0 %v6843_v49 }
  0xca   :  { %143 = vst [vmem:[#allocation2 + $0x18] sm:$0x3] %v139_v33  ;;  %8196 = vst [vmem:[#allocation49_spill] sm:$0xff] %v7545_v13  ;;  %v6855_v51 = vld [vmem:[#allocation9 + $0x3c4] ss:$16 sps:$4 sm:$0xff]   ;;  %v201_v1 = vrot.slane %v7542_v5, 4  ;;  %3800 = vmatpush1.bf16.msra.mxu1 %v6846_v32 }
  0xcb   :  { %158 = vst [vmem:[#allocation3 + $0x10] sm:$0xc] %v150_v7  ;;  %v6858_v12 = vld [vmem:[#allocation9 + $0x3cc] ss:$16 sps:$4 sm:$0xff]   ;;  %159 = vst [vmem:[#allocation3 + $0x18] sm:$0xc] %v151_v31  ;;  %3495 = vmatprep.subr.bf16.mxu0 %v6855_v51 }
  0xcc   :  { %208 = vst [vmem:[#allocation3 + $0x10] sm:$0x30] %v200_v43  ;;  %v251_v33 = vrot.slane %v7545_v13, 2  ;;  %258 = vst [vmem:[#allocation3 + $0x10] sm:$0xc0] %v250_v37  ;;  %v261_v58 = vld [vmem:[#allocation4 + $0x38] sm:$0xff]  ;;  %3801 = vmatprep.subr.bf16.mxu1 %v6858_v12 }
  0xcd   :  { %v303_v52 = vld [vmem:[#allocation4 + $0x48] sm:$0xff]  ;;  %v345_v14 = vld [vmem:[#allocation4 + $0x58] sm:$0xff]  ;;  %209 = vst [vmem:[#allocation3 + $0x18] sm:$0x30] %v201_v1  ;;  %v271_v18 = vcombine.high %v261_v58, %v261_v58  ;;  %v2526_v7 = vld [vmem:[#allocation3 + $0xe0] sm:$0xff]  ;;  %v280_v43 = vpack.c.bf16 %v261_v58, %v261_v58 }
  0xce   :  { %v313_v26 = vcombine.high %v303_v52, %v303_v52  ;;  %v355_v11 = vcombine.high %v345_v14, %v345_v14  ;;  %v395_v42 = vld [vmem:[#allocation4 + $0x68] sm:$0xff]  ;;  %v6853_v31 = vld [vmem:[#allocation9 + $0x3c0] ss:$16 sps:$4 sm:$0xff]   ;;  %259 = vst [vmem:[#allocation3 + $0x18] sm:$0xc0] %v251_v33  ;;  %v322_v10 = vpack.c.bf16 %v303_v52, %v303_v52  ;;  %v7550_v39 = vpack.c.bf16 %v345_v14, %v345_v14  ;;  %v445_v32 = vld [vmem:[#allocation4 + $0x78] sm:$0xff] }
  0xcf   :  { %v405_v9 = vcombine.high %v395_v42, %v395_v42  ;;  %v6856_v6 = vld [vmem:[#allocation9 + $0x3c8] ss:$16 sps:$4 sm:$0xff]   ;;  %v6865_v37 = vld [vmem:[#allocation9 + $0x3e4] ss:$16 sps:$4 sm:$0xff]   ;;  %v7552_v13 = vpack.c.bf16 %v271_v18, %v271_v18  ;;  %v7556_v2 = vpack.c.bf16 %v395_v42, %v395_v42  ;;  %v6868_v38 = vld [vmem:[#allocation9 + $0x3ec] ss:$16 sps:$4 sm:$0xff]   ;;  %3417 = vmatmul.mubr.bf16.gmra.mrb[28].mxu0 %v2526_v7  ;;  %3723 = vmatmul.mubr.bf16.gmra.mrb[28].mxu1 %v2526_v7 }
  0xd0   :  { %8197 = vst [vmem:[#allocation50_spill] sm:$0xff] %v7550_v39  ;;  %v323_v5 = vpack.c.bf16 %v313_v26, %v313_v26  ;;  %v7554_v0 = vpack.c.bf16 %v355_v11, %v355_v11  ;;  %v2531_v1 = vld [vmem:[#allocation3 + $0x108] sm:$0xff]  ;;  %v288_v33 = vrot.slane %v280_v43, 2  ;;  %300 = vst [vmem:[#allocation3 + $0x30] sm:$0x3] %v280_v43  ;;  %v334_v58 = vrot.slane %v322_v10, 6  ;;  %3496 = vmatpush1.bf16.msra.mxu0 %v6853_v31 }
  0xd1   :  { %8198 = vst [vmem:[#allocation51_spill] sm:$0xff] %v7556_v2  ;;  %v7558_v41 = vpack.c.bf16 %v405_v9, %v405_v9  ;;  %v384_v52 = vrot.slane %v7550_v39, 4  ;;  %326 = vst [vmem:[#allocation2 + $0x30] sm:$0x3] %v322_v10  ;;  %v434_v49 = vrot.slane %v7556_v2, 2  ;;  %v487_v26 = vld [vmem:[#allocation4 + $0x88] sm:$0xff]  ;;  %v455_v51 = vcombine.high %v445_v32, %v445_v32  ;;  %3426 = vmatprep.mubr.bf16.mxu0 %v2531_v1 }
  0xd2   :  { %301 = vst [vmem:[#allocation3 + $0x38] sm:$0x3] %v7552_v13  ;;  %v335_v14 = vrot.slane %v323_v5, 6  ;;  %v385_v18 = vrot.slane %v7554_v0, 4  ;;  %327 = vst [vmem:[#allocation2 + $0x38] sm:$0x3] %v323_v5  ;;  %v497_v12 = vcombine.high %v487_v26, %v487_v26  ;;  %3732 = vmatprep.mubr.bf16.mxu1 %v2531_v1  ;;  %v7565_v2 = vpack.c.bf16 %v445_v32, %v445_v32 }
  0xd3   :  { %8199 = vst [vmem:[#allocation52_spill] sm:$0xff] %v7558_v41  ;;  %v529_v9 = vld [vmem:[#allocation4 + $0x98] sm:$0xff]  ;;  %v435_v11 = vrot.slane %v7558_v41, 2  ;;  %342 = vst [vmem:[#allocation3 + $0x30] sm:$0xc] %v334_v58  ;;  %v579_v43 = vld [vmem:[#allocation4 + $0xa8] sm:$0xff]  ;;  %v506_v39 = vpack.c.bf16 %v487_v26, %v487_v26  ;;  %3802 = vmatpush1.bf16.msra.mxu1 %v6856_v6  ;;  %3497 = vmatprep.subr.bf16.mxu0 %v6865_v37 }
  0xd4   :  { %392 = vst [vmem:[#allocation3 + $0x30] sm:$0x30] %v384_v52  ;;  %296 = vst [vmem:[#allocation2 + $0x10] sm:$0xc0] %v288_v33  ;;  %v539_v42 = vcombine.high %v529_v9, %v529_v9  ;;  %v6863_v10 = vld [vmem:[#allocation9 + $0x3e0] ss:$16 sps:$4 sm:$0xff]   ;;  %v589_v5 = vcombine.high %v579_v43, %v579_v43  ;;  %v7568_v33 = vpack.c.bf16 %v455_v51, %v455_v51  ;;  %3803 = vmatprep.subr.bf16.mxu1 %v6868_v38 }
  0xd5   :  { %343 = vst [vmem:[#allocation3 + $0x38] sm:$0xc] %v335_v14  ;;  %393 = vst [vmem:[#allocation3 + $0x38] sm:$0x30] %v385_v18  ;;  %v187_v7 = vrot.slane %v7335_v62, 6  ;;  %v507_v52 = vpack.c.bf16 %v497_v12, %v497_v12  ;;  %v237_v1 = vrot.slane %v7337_v63, 4  ;;  %v7576_v6 = vpack.c.bf16 %v529_v9, %v529_v9  ;;  %3498 = vmatpush1.bf16.msra.mxu0 %v6863_v10 }
  0xd6   :  { %442 = vst [vmem:[#allocation3 + $0x30] sm:$0xc0] %v434_v49  ;;  %8200 = vst [vmem:[#allocation53_spill] sm:$0xff] %v7565_v2  ;;  %v6866_v58 = vld [vmem:[#allocation9 + $0x3e8] ss:$16 sps:$4 sm:$0xff]   ;;  %v7570_v41 = vpack.c.bf16 %v539_v42, %v539_v42  ;;  %v2530_v14 = vld [vmem:[#allocation3 + $0x100] sm:$0xff]  ;;  %v7573_v32 = vpack.c.bf16 %v589_v5, %v589_v5  ;;  %v7578_v31 = vpack.c.bf16 %v579_v43, %v579_v43 }
  0xd7   :  { %443 = vst [vmem:[#allocation3 + $0x38] sm:$0xc0] %v435_v11  ;;  %v6874_v18 = vld [vmem:[#allocation8 + $0x4] ss:$16 sps:$4 sm:$0xff]   ;;  %v6877_v49 = vld [vmem:[#allocation8 + $0xc] ss:$16 sps:$4 sm:$0xff]   ;;  %3804 = vmatpush1.bf16.msra.mxu1 %v6866_v58  ;;  %3427 = vmatmul.mubr.bf16.gmra.mrb[32].mxu0 %v2530_v14 }
  0xd8   :  { %8201 = vst [vmem:[#allocation54_spill] sm:$0xff] %v7570_v41  ;;  %484 = vst [vmem:[#allocation3 + $0x50] sm:$0x3] %v7565_v2  ;;  %v518_v62 = vrot.slane %v506_v39, 6  ;;  %v629_v26 = vld [vmem:[#allocation4 + $0xb8] sm:$0xff]  ;;  %v519_v63 = vrot.slane %v507_v52, 6  ;;  %4566 = vmatprep.subr.bf16.mxu0 %v6874_v18  ;;  %4872 = vmatprep.subr.bf16.mxu1 %v6877_v49 }
  0xd9   :  { %8202 = vst [vmem:[#allocation55_spill] sm:$0xff] %v7578_v31  ;;  %510 = vst [vmem:[#allocation2 + $0x50] sm:$0x3] %v506_v39  ;;  %v569_v37 = vrot.slane %v7570_v41, 4  ;;  %v639_v38 = vcombine.high %v629_v26, %v629_v26  ;;  %v671_v11 = vld [vmem:[#allocation4 + $0xc8] sm:$0xff]  ;;  %v713_v51 = vld [vmem:[#allocation4 + $0xd8] sm:$0xff]  ;;  %v7582_v42 = vpack.c.bf16 %v629_v26, %v629_v26  ;;  %3733 = vmatmul.mubr.bf16.gmra.mrb[32].mxu1 %v2530_v14 }
  0xda   :  { %195 = vst [vmem:[#allocation2 + $0x8] sm:$0xc] %v187_v7  ;;  %485 = vst [vmem:[#allocation3 + $0x58] sm:$0x3] %v7568_v33  ;;  %v763_v12 = vld [vmem:[#allocation4 + $0xe8] sm:$0xff]  ;;  %v619_v9 = vrot.slane %v7573_v32, 2  ;;  %v681_v5 = vcombine.high %v671_v11, %v671_v11  ;;  %v723_v41 = vcombine.high %v713_v51, %v713_v51  ;;  %v690_v26 = vpack.c.bf16 %v671_v11, %v671_v11 }
  0xdb   :  { %511 = vst [vmem:[#allocation2 + $0x58] sm:$0x3] %v507_v52  ;;  %245 = vst [vmem:[#allocation2 + $0x8] sm:$0x30] %v237_v1  ;;  %v568_v39 = vrot.slane %v7576_v6, 4  ;;  %v618_v43 = vrot.slane %v7578_v31, 2  ;;  %v7587_v52 = vpack.c.bf16 %v639_v38, %v639_v38  ;;  %v773_v2 = vcombine.high %v763_v12, %v763_v12 }
  0xdc   :  { %526 = vst [vmem:[#allocation3 + $0x50] sm:$0xc] %v518_v62  ;;  %v2535_v7 = vld [vmem:[#allocation3 + $0x128] sm:$0xff]  ;;  %527 = vst [vmem:[#allocation3 + $0x58] sm:$0xc] %v519_v63  ;;  %v287_v1 = vrot.slane %v7347_v24, 2  ;;  %v691_v62 = vpack.c.bf16 %v681_v5, %v681_v5  ;;  %v7591_v31 = vpack.c.bf16 %v713_v51, %v713_v51  ;;  %v7595_v58 = vpack.c.bf16 %v723_v41, %v723_v41 }
  0xdd   :  { %577 = vst [vmem:[#allocation3 + $0x58] sm:$0x30] %v569_v37  ;;  %668 = vst [vmem:[#allocation3 + $0x70] sm:$0x3] %v7582_v42  ;;  %v186_v10 = vrot.slane %v7331_v57, 6  ;;  %v7597_v63 = vpack.c.bf16 %v773_v2, %v773_v2  ;;  %v7599_v24 = vpack.c.bf16 %v763_v12, %v763_v12  ;;  %v236_v18 = vrot.slane %v7333_v61, 4  ;;  %3436 = vmatprep.mubr.bf16.mxu0 %v2535_v7 }
  0xde   :  { %627 = vst [vmem:[#allocation3 + $0x58] sm:$0xc0] %v619_v9  ;;  %576 = vst [vmem:[#allocation3 + $0x50] sm:$0x30] %v568_v39  ;;  %3742 = vmatprep.mubr.bf16.mxu1 %v2535_v7  ;;  %v703_v49 = vrot.slane %v691_v62, 6  ;;  %v702_v37 = vrot.slane %v690_v26, 6 }
  0xdf   :  { %626 = vst [vmem:[#allocation3 + $0x50] sm:$0xc0] %v618_v43  ;;  %669 = vst [vmem:[#allocation3 + $0x78] sm:$0x3] %v7587_v52  ;;  %v752_v57 = vrot.slane %v7591_v31, 4  ;;  %v753_v14 = vrot.slane %v7595_v58, 4 }
  0xe0   :  { %295 = vst [vmem:[#allocation2 + $0x8] sm:$0xc0] %v287_v1  ;;  %695 = vst [vmem:[#allocation2 + $0x78] sm:$0x3] %v691_v62  ;;  %v803_v41 = vrot.slane %v7597_v63, 2  ;;  %v802_v2 = vrot.slane %v7599_v24, 2 }
  0xe1   :  { %694 = vst [vmem:[#allocation2 + $0x70] sm:$0x3] %v690_v26  ;;  %194 = vst [vmem:[#allocation2] sm:$0xc] %v186_v10  ;;  %v813_v38 = vld [vmem:[#allocation4 + $0xf8] sm:$0xff]  ;;  %v855_v11 = vld [vmem:[#allocation4 + $0x108] sm:$0xff] }
  0xe2   :  { %244 = vst [vmem:[#allocation2] sm:$0x30] %v236_v18  ;;  %711 = vst [vmem:[#allocation3 + $0x78] sm:$0xc] %v703_v49  ;;  %v823_v61 = vcombine.high %v813_v38, %v813_v38  ;;  %v7606_v51 = vpack.c.bf16 %v813_v38, %v813_v38  ;;  %v371_v12 = vrot.slane %v7349_v29, 6  ;;  %v865_v9 = vcombine.high %v855_v11, %v855_v11  ;;  %v897_v39 = vld [vmem:[#allocation4 + $0x118] sm:$0xff] }
  0xe3   :  { %710 = vst [vmem:[#allocation3 + $0x70] sm:$0xc] %v702_v37  ;;  %760 = vst [vmem:[#allocation3 + $0x70] sm:$0x30] %v752_v57  ;;  %v947_v43 = vld [vmem:[#allocation4 + $0x128] sm:$0xff]  ;;  %v874_v5 = vpack.c.bf16 %v855_v11, %v855_v11  ;;  %v421_v7 = vrot.slane %v7351_v30, 4  ;;  %v907_v10 = vcombine.high %v897_v39, %v897_v39  ;;  %v7614_v49 = vpack.c.bf16 %v897_v39, %v897_v39 }
  0xe4   :  { %761 = vst [vmem:[#allocation3 + $0x78] sm:$0x30] %v753_v14  ;;  %811 = vst [vmem:[#allocation3 + $0x78] sm:$0xc0] %v803_v41  ;;  %v471_v1 = vrot.slane %v7360_v47, 2  ;;  %v2534_v62 = vld [vmem:[#allocation3 + $0x120] sm:$0xff]  ;;  %v7611_v26 = vpack.c.bf16 %v823_v61, %v823_v61  ;;  %v957_v18 = vcombine.high %v947_v43, %v947_v43  ;;  %v875_v37 = vpack.c.bf16 %v865_v9, %v865_v9 }
  0xe5   :  { %810 = vst [vmem:[#allocation3 + $0x70] sm:$0xc0] %v802_v2  ;;  %852 = vst [vmem:[#allocation3 + $0x90] sm:$0x3] %v7606_v51  ;;  %v2539_v29 = vld [vmem:[#allocation3 + $0x148] sm:$0xff]  ;;  %v886_v57 = vrot.slane %v874_v5, 6  ;;  %v7616_v14 = vpack.c.bf16 %v947_v43, %v947_v43  ;;  %v7620_v47 = vpack.c.bf16 %v907_v10, %v907_v10  ;;  %3437 = vmatmul.mubr.bf16.gmra.mrb[36].mxu0 %v2534_v62  ;;  %3743 = vmatmul.mubr.bf16.gmra.mrb[36].mxu1 %v2534_v62 }
  0xe6   :  { %8203 = vst [vmem:[#allocation56_spill] sm:$0xff] %v7614_v49  ;;  %379 = vst [vmem:[#allocation2 + $0x28] sm:$0xc] %v371_v12  ;;  %v370_v30 = vrot.slane %v7343_v21, 6  ;;  %v7622_v41 = vpack.c.bf16 %v957_v18, %v957_v18  ;;  %v936_v2 = vrot.slane %v7614_v49, 4  ;;  %v887_v38 = vrot.slane %v875_v37, 6  ;;  %3446 = vmatprep.mubr.bf16.mxu0 %v2539_v29  ;;  %3752 = vmatprep.mubr.bf16.mxu1 %v2539_v29 }
  0xe7   :  { %8204 = vst [vmem:[#allocation57_spill] sm:$0xff] %v7616_v14  ;;  %878 = vst [vmem:[#allocation2 + $0x90] sm:$0x3] %v874_v5  ;;  %v986_v61 = vrot.slane %v7616_v14, 2  ;;  %v997_v11 = vld [vmem:[#allocation4 + $0x138] sm:$0xff]  ;;  %v1039_v12 = vld [vmem:[#allocation4 + $0x148] sm:$0xff] }
  0xe8   :  { %429 = vst [vmem:[#allocation2 + $0x28] sm:$0x30] %v421_v7  ;;  %479 = vst [vmem:[#allocation2 + $0x28] sm:$0xc0] %v471_v1  ;;  %v1081_v9 = vld [vmem:[#allocation4 + $0x158] sm:$0xff]  ;;  %v420_v21 = vrot.slane %v7345_v22, 4  ;;  %v1007_v5 = vcombine.high %v997_v11, %v997_v11  ;;  %v1049_v7 = vcombine.high %v1039_v12, %v1039_v12  ;;  %v7629_v18 = vpack.c.bf16 %v997_v11, %v997_v11 }
  0xe9   :  { %853 = vst [vmem:[#allocation3 + $0x98] sm:$0x3] %v7611_v26  ;;  %8205 = vst [vmem:[#allocation58_spill] sm:$0xff] %v7622_v41  ;;  %v937_v39 = vrot.slane %v7620_v47, 4  ;;  %v987_v43 = vrot.slane %v7622_v41, 2  ;;  %v1131_v1 = vld [vmem:[#allocation4 + $0x168] sm:$0xff]  ;;  %v1091_v62 = vcombine.high %v1081_v9, %v1081_v9 }
  0xea   :  { %879 = vst [vmem:[#allocation2 + $0x98] sm:$0x3] %v875_v37  ;;  %894 = vst [vmem:[#allocation3 + $0x90] sm:$0xc] %v886_v57  ;;  %v1141_v10 = vcombine.high %v1131_v1, %v1131_v1  ;;  %v1058_v37 = vpack.c.bf16 %v1039_v12, %v1039_v12  ;;  %v7631_v22 = vpack.c.bf16 %v1007_v5, %v1007_v5  ;;  %v1181_v11 = vld [vmem:[#allocation4 + $0x178] sm:$0xff]  ;;  %v112_v12 = vlaneseq  ;;  %v1223_v5 = vld [vmem:[#allocation4 + $0x188] sm:$0xff] }
  0xeb   :  { %378 = vst [vmem:[#allocation2 + $0x20] sm:$0xc] %v370_v30  ;;  %944 = vst [vmem:[#allocation3 + $0x90] sm:$0x30] %v936_v2  ;;  %v1059_v29 = vpack.c.bf16 %v1049_v7, %v1049_v7  ;;  %v7633_v57 = vpack.c.bf16 %v1081_v9, %v1081_v9  ;;  %v7635_v30 = vpack.c.bf16 %v1131_v1, %v1131_v1  ;;  %v2538_v2 = vld [vmem:[#allocation3 + $0x140] sm:$0xff]  ;;  %v1265_v7 = vld [vmem:[#allocation4 + $0x198] sm:$0xff] }
  0xec   :  { %895 = vst [vmem:[#allocation3 + $0x98] sm:$0xc] %v887_v38  ;;  %994 = vst [vmem:[#allocation3 + $0x90] sm:$0xc0] %v986_v61  ;;  %v7637_v14 = vpack.c.bf16 %v1091_v62, %v1091_v62  ;;  %v7639_v38 = vpack.c.bf16 %v1141_v10, %v1141_v10  ;;  %v1070_v61 = vrot.slane %v1058_v37, 6  ;;  %v1315_v1 = vld [vmem:[#allocation4 + $0x1a8] sm:$0xff]  ;;  %v1275_v49 = vcombine.high %v1265_v7, %v1265_v7 }
  0xed   :  { %8206 = vst [vmem:[#allocation59_spill] sm:$0xff] %v7629_v18  ;;  %428 = vst [vmem:[#allocation2 + $0x20] sm:$0x30] %v420_v21  ;;  %v1071_v21 = vrot.slane %v1059_v29, 6  ;;  %v1120_v9 = vrot.slane %v7633_v57, 4  ;;  %v2543_v62 = vld [vmem:[#allocation3 + $0x168] sm:$0xff]  ;;  %3447 = vmatmul.mubr.bf16.gmra.mrb[40].mxu0 %v2538_v2  ;;  %3753 = vmatmul.mubr.bf16.gmra.mrb[40].mxu1 %v2538_v2 }
  0xee   :  { %945 = vst [vmem:[#allocation3 + $0x98] sm:$0x30] %v937_v39  ;;  %995 = vst [vmem:[#allocation3 + $0x98] sm:$0xc0] %v987_v43  ;;  %v1170_v39 = vrot.slane %v7635_v30, 2  ;;  %v1191_v43 = vcombine.high %v1181_v11, %v1181_v11  ;;  %v1121_v10 = vrot.slane %v7637_v14, 4  ;;  %3456 = vmatprep.mubr.bf16.mxu0 %v2543_v62  ;;  %3762 = vmatprep.mubr.bf16.mxu1 %v2543_v62 }
  0xef   :  { %8207 = vst [vmem:[#allocation60_spill] sm:$0xff] %v7631_v22  ;;  %8208 = vst [vmem:[#allocation61_spill] sm:$0xff] %v7633_v57  ;;  %v1325_v57 = vcombine.high %v1315_v1, %v1315_v1 }
  0xf0   :  { %8209 = vst [vmem:[#allocation62_spill] sm:$0xff] %v7635_v30  ;;  %8210 = vst [vmem:[#allocation63_spill] sm:$0xff] %v7637_v14  ;;  %v1242_v30 = vpack.c.bf16 %v1223_v5, %v1223_v5  ;;  %v7651_v14 = vpack.c.bf16 %v1275_v49, %v1275_v49 }
  0xf1   :  { %8211 = vst [vmem:[#allocation64_spill] sm:$0xff] %v7639_v38  ;;  %1036 = vst [vmem:[#allocation3 + $0xb0] sm:$0x3] %v7629_v18  ;;  %v1171_v18 = vrot.slane %v7639_v38, 2  ;;  %v7653_v38 = vpack.c.bf16 %v1265_v7, %v1265_v7  ;;  %v605_v7 = vrot.slane %v7365_v54, 4 }
  0xf2   :  { %1062 = vst [vmem:[#allocation2 + $0xb0] sm:$0x3] %v1058_v37  ;;  %1037 = vst [vmem:[#allocation3 + $0xb8] sm:$0x3] %v7631_v22  ;;  %v1233_v37 = vcombine.high %v1223_v5, %v1223_v5  ;;  %v7649_v22 = vpack.c.bf16 %v1181_v11, %v1181_v11  ;;  %v1254_v11 = vrot.slane %v1242_v30, 6  ;;  %v1305_v2 = vrot.slane %v7651_v14, 4 }
  0xf3   :  { %1063 = vst [vmem:[#allocation2 + $0xb8] sm:$0x3] %v1059_v29  ;;  %1078 = vst [vmem:[#allocation3 + $0xb0] sm:$0xc] %v1070_v61  ;;  %v7647_v29 = vpack.c.bf16 %v1191_v43, %v1191_v43  ;;  %v470_v61 = vrot.slane %v7356_v40, 2  ;;  %v1304_v40 = vrot.slane %v7653_v38, 4 }
  0xf4   :  { %1079 = vst [vmem:[#allocation3 + $0xb8] sm:$0xc] %v1071_v21  ;;  %1128 = vst [vmem:[#allocation3 + $0xb0] sm:$0x30] %v1120_v9  ;;  %v1243_v41 = vpack.c.bf16 %v1233_v37, %v1233_v37  ;;  %v7657_v21 = vpack.c.bf16 %v1325_v57, %v1325_v57  ;;  %v7660_v9 = vpack.c.bf16 %v1315_v1, %v1315_v1  ;;  %v2542_v43 = vld [vmem:[#allocation3 + $0x160] sm:$0xff]  ;;  %v1407_v5 = vld [vmem:[#allocation4 + $0x1c8] sm:$0xff] }
  0xf5   :  { %1178 = vst [vmem:[#allocation3 + $0xb0] sm:$0xc0] %v1170_v39  ;;  %1129 = vst [vmem:[#allocation3 + $0xb8] sm:$0x30] %v1121_v10  ;;  %v1417_v62 = vcombine.high %v1407_v5, %v1407_v5  ;;  %v1449_v10 = vld [vmem:[#allocation4 + $0x1d8] sm:$0xff]  ;;  %v1499_v37 = vld [vmem:[#allocation4 + $0x1e8] sm:$0xff]  ;;  %3457 = vmatmul.mubr.bf16.gmra.mrb[44].mxu0 %v2542_v43  ;;  %3763 = vmatmul.mubr.bf16.gmra.mrb[44].mxu1 %v2542_v43 }
  0xf6   :  { %1179 = vst [vmem:[#allocation3 + $0xb8] sm:$0xc0] %v1171_v18  ;;  %8212 = vst [vmem:[#allocation65_spill] sm:$0xff] %v7653_v38  ;;  %v555_v18 = vrot.slane %v7363_v53, 6  ;;  %v1255_v49 = vrot.slane %v1243_v41, 6  ;;  %v1355_v39 = vrot.slane %v7657_v21, 2 }
  0xf7   :  { %1221 = vst [vmem:[#allocation3 + $0xd8] sm:$0x3] %v7647_v29  ;;  %8213 = vst [vmem:[#allocation66_spill] sm:$0xff] %v7657_v21  ;;  %v1354_v57 = vrot.slane %v7660_v9, 2  ;;  %v7667_v53 = vand.u32 127, %v112_v12  ;;  %v7675_v12 = vpack.c.bf16 %v1499_v37, %v1499_v37  ;;  %v1867_v38 = vld [vmem:[#allocation4 + $0x268] sm:$0xff] }
  0xf8   :  { %1220 = vst [vmem:[#allocation3 + $0xd0] sm:$0x3] %v7649_v22  ;;  %8214 = vst [vmem:[#allocation67_spill] sm:$0xff] %v7660_v9  ;;  %v6883_v9 = vld [vmem:[#allocation8 + $0x2c] ss:$16 sps:$4 sm:$0xff]  }
  0xf9   :  { %1246 = vst [vmem:[#allocation2 + $0xd0] sm:$0x3] %v1242_v30  ;;  %1247 = vst [vmem:[#allocation2 + $0xd8] sm:$0x3] %v1243_v41  ;;  %v1365_v30 = vld [vmem:[#allocation4 + $0x1b8] sm:$0xff]  ;;  %v655_v41 = vrot.slane %v7376_v15, 2  ;;  %v1427_v15 = vpack.c.bf16 %v1417_v62, %v1417_v62 }
  0xfa   :  { %478 = vst [vmem:[#allocation2 + $0x20] sm:$0xc0] %v470_v61  ;;  %1262 = vst [vmem:[#allocation3 + $0xd0] sm:$0xc] %v1254_v11  ;;  %v1375_v1 = vcombine.high %v1365_v30, %v1365_v30  ;;  %v7671_v61 = vpack.c.bf16 %v1365_v30, %v1365_v30  ;;  %v1426_v11 = vpack.c.bf16 %v1407_v5, %v1407_v5 }
  0xfb   :  { %563 = vst [vmem:[#allocation2 + $0x48] sm:$0xc] %v555_v18  ;;  %1263 = vst [vmem:[#allocation3 + $0xd8] sm:$0xc] %v1255_v49  ;;  %v2501_v18 = vld [vmem:[#allocation3 + $0x18] sm:$0xff]  ;;  %v1459_v49 = vcombine.high %v1449_v10, %v1449_v10 }
  0xfc   :  { %1313 = vst [vmem:[#allocation3 + $0xd8] sm:$0x30] %v1305_v2  ;;  %1312 = vst [vmem:[#allocation3 + $0xd0] sm:$0x30] %v1304_v40  ;;  %v1509_v2 = vcombine.high %v1499_v37, %v1499_v37  ;;  %v7673_v40 = vpack.c.bf16 %v1449_v10, %v1449_v10  ;;  %v7677_v54 = vpack.c.bf16 %v1375_v1, %v1375_v1  ;;  %3499 = vmatprep.mubr.bf16.mxu0 %v2501_v18  ;;  %v1633_v37 = vld [vmem:[#allocation4 + $0x218] sm:$0xff] }
  0xfd   :  { %1363 = vst [vmem:[#allocation3 + $0xd8] sm:$0xc0] %v1355_v39  ;;  %1362 = vst [vmem:[#allocation3 + $0xd0] sm:$0xc0] %v1354_v57  ;;  %v1438_v39 = vrot.slane %v1426_v11, 6  ;;  %v554_v57 = vrot.slane %v7367_v55, 6  ;;  %v7681_v30 = vpack.c.bf16 %v1459_v49, %v1459_v49  ;;  %3805 = vmatprep.mubr.bf16.mxu1 %v2501_v18 }
  0xfe   :  { %8215 = vst [vmem:[#allocation68_spill] sm:$0xff] %v7671_v61  ;;  %8216 = vst [vmem:[#allocation69_spill] sm:$0xff] %v7673_v40  ;;  %v7683_v5 = vpack.c.bf16 %v1509_v2, %v1509_v2  ;;  %v1488_v10 = vrot.slane %v7673_v40, 4  ;;  %v1439_v1 = vrot.slane %v1427_v15, 6  ;;  %v1591_v55 = vld [vmem:[#allocation4 + $0x208] sm:$0xff] }
  0xff   :  { %8217 = vst [vmem:[#allocation70_spill] sm:$0xff] %v7675_v12  ;;  %613 = vst [vmem:[#allocation2 + $0x48] sm:$0x30] %v605_v7  ;;  %v1538_v7 = vrot.slane %v7675_v12, 2  ;;  %v1489_v49 = vrot.slane %v7681_v30, 4  ;;  %v1601_v18 = vcombine.high %v1591_v55, %v1591_v55  ;;  %v1643_v12 = vcombine.high %v1633_v37, %v1633_v37  ;;  %v1683_v40 = vld [vmem:[#allocation4 + $0x228] sm:$0xff] }
 0x100   :  { %663 = vst [vmem:[#allocation2 + $0x48] sm:$0xc0] %v655_v41  ;;  %8218 = vst [vmem:[#allocation71_spill] sm:$0xff] %v7677_v54  ;;  %v1549_v41 = vld [vmem:[#allocation4 + $0x1f8] sm:$0xff]  ;;  %v1539_v2 = vrot.slane %v7683_v5, 2 }
 0x101   :  { %1404 = vst [vmem:[#allocation3 + $0xf0] sm:$0x3] %v7671_v61  ;;  %1430 = vst [vmem:[#allocation2 + $0xf0] sm:$0x3] %v1426_v11  ;;  %v1559_v62 = vcombine.high %v1549_v41, %v1549_v41  ;;  %v7688_v43 = vpack.c.bf16 %v1549_v41, %v1549_v41  ;;  %v604_v11 = vrot.slane %v7370_v59, 4  ;;  %v1610_v41 = vpack.c.bf16 %v1591_v55, %v1591_v55 }
 0x102   :  { %8219 = vst [vmem:[#allocation72_spill] sm:$0xff] %v7681_v30  ;;  %8220 = vst [vmem:[#allocation73_spill] sm:$0xff] %v7683_v5  ;;  %v6872_v61 = vld [vmem:[#allocation8] ss:$16 sps:$4 sm:$0xff]   ;;  %v6875_v59 = vld [vmem:[#allocation8 + $0x8] ss:$16 sps:$4 sm:$0xff]   ;;  %v7700_v5 = vpack.c.bf16 %v1683_v40, %v1683_v40 }
 0x103   :  { %1405 = vst [vmem:[#allocation3 + $0xf8] sm:$0x3] %v7677_v54  ;;  %1431 = vst [vmem:[#allocation2 + $0xf8] sm:$0x3] %v1427_v15  ;;  %v7693_v15 = vpack.c.bf16 %v1559_v62, %v1559_v62  ;;  %v6880_v30 = vld [vmem:[#allocation8 + $0x24] ss:$16 sps:$4 sm:$0xff]  }
 0x104   :  { %1446 = vst [vmem:[#allocation3 + $0xf0] sm:$0xc] %v1438_v39  ;;  %8221 = vst [vmem:[#allocation74_spill] sm:$0xff] %v7688_v43  ;;  %v1693_v39 = vcombine.high %v1683_v40, %v1683_v40  ;;  %v2500_v62 = vld [vmem:[#allocation3 + $0x10] sm:$0xff]  ;;  %v1622_v55 = vrot.slane %v1610_v41, 6  ;;  %v1722_v40 = vrot.slane %v7700_v5, 2 }
 0x105   :  { %562 = vst [vmem:[#allocation2 + $0x40] sm:$0xc] %v554_v57  ;;  %1496 = vst [vmem:[#allocation3 + $0xf0] sm:$0x30] %v1488_v10  ;;  %v7696_v57 = vpack.c.bf16 %v1633_v37, %v1633_v37  ;;  %v1611_v10 = vpack.c.bf16 %v1601_v18, %v1601_v18  ;;  %v1817_v18 = vld [vmem:[#allocation4 + $0x258] sm:$0xff]  ;;  %3500 = vmatmul.mubr.bf16.vlgmr.msra.gmra.mrb[0].mxu0 %v2500_v62  ;;  %3806 = vmatmul.mubr.bf16.vlgmr.msra.gmra.mrb[0].mxu1 %v2500_v62 }
 0x106   :  { %1546 = vst [vmem:[#allocation3 + $0xf0] sm:$0xc0] %v1538_v7  ;;  %1447 = vst [vmem:[#allocation3 + $0xf8] sm:$0xc] %v1439_v1  ;;  %v7698_v7 = vpack.c.bf16 %v1643_v12, %v1643_v12  ;;  %v654_v1 = vrot.slane %v7378_v16, 2  ;;  %v1733_v16 = vld [vmem:[#allocation4 + $0x238] sm:$0xff]  ;;  %4567 = vmatpush1.bf16.msra.mxu0 %v6872_v61  ;;  %4873 = vmatpush1.bf16.msra.mxu1 %v6875_v59  ;;  %v7724_v61 = vpack.c.bf16 %v1817_v18, %v1817_v18 }
 0x107   :  { %8222 = vst [vmem:[#allocation75_spill] sm:$0xff] %v7693_v15  ;;  %1588 = vst [vmem:[#allocation3 + $0x110] sm:$0x3] %v7688_v43  ;;  %v7704_v43 = vpack.c.bf16 %v1693_v39, %v1693_v39  ;;  %v1672_v37 = vrot.slane %v7696_v57, 4  ;;  %v2505_v54 = vld [vmem:[#allocation3 + $0x38] sm:$0xff]  ;;  %4568 = vmatprep.subr.bf16.mxu0 %v6880_v30  ;;  %4874 = vmatprep.subr.bf16.mxu1 %v6883_v9  ;;  %v7726_v59 = vpack.c.bf16 %v1867_v38, %v1867_v38 }
 0x108   :  { %8223 = vst [vmem:[#allocation76_spill] sm:$0xff] %v7696_v57  ;;  %612 = vst [vmem:[#allocation2 + $0x40] sm:$0x30] %v604_v11  ;;  %v7708_v11 = vadd.s32 384, %v7667_v53  ;;  %v1673_v12 = vrot.slane %v7698_v7, 4  ;;  %3509 = vmatprep.mubr.bf16.mxu0 %v2505_v54  ;;  %3815 = vmatprep.mubr.bf16.mxu1 %v2505_v54 }
 0x109   :  { %1497 = vst [vmem:[#allocation3 + $0xf8] sm:$0x30] %v1489_v49  ;;  %1547 = vst [vmem:[#allocation3 + $0xf8] sm:$0xc0] %v1539_v2  ;;  %v1623_v49 = vrot.slane %v1611_v10, 6  ;;  %v1775_v2 = vld [vmem:[#allocation4 + $0x248] sm:$0xff] }
 0x10a   :  { %8224 = vst [vmem:[#allocation77_spill] sm:$0xff] %v7698_v7  ;;  %8225 = vst [vmem:[#allocation78_spill] sm:$0xff] %v7700_v5  ;;  %v1723_v39 = vrot.slane %v7704_v43, 2  ;;  %v1785_v57 = vcombine.high %v1775_v2, %v1775_v2  ;;  %v6878_v53 = vld [vmem:[#allocation8 + $0x20] ss:$16 sps:$4 sm:$0xff]   ;;  %v7713_v5 = vpack.c.bf16 %v1733_v16, %v1733_v16  ;;  %v1794_v7 = vpack.c.bf16 %v1775_v2, %v1775_v2 }
 0x10b   :  { %1589 = vst [vmem:[#allocation3 + $0x118] sm:$0x3] %v7693_v15  ;;  %8226 = vst [vmem:[#allocation79_spill] sm:$0xff] %v7704_v43  ;;  %v1743_v15 = vcombine.high %v1733_v16, %v1733_v16  ;;  %v6891_v30 = vld [vmem:[#allocation8 + $0x48] ss:$16 sps:$4 sm:$0xff]   ;;  %v1856_v16 = vrot.slane %v7724_v61, 4  ;;  %4569 = vmatpush1.bf16.msra.mxu0 %v6878_v53 }
 0x10c   :  { %1614 = vst [vmem:[#allocation2 + $0x110] sm:$0x3] %v1610_v41  ;;  %1615 = vst [vmem:[#allocation2 + $0x118] sm:$0x3] %v1611_v10  ;;  %v1827_v41 = vcombine.high %v1817_v18, %v1817_v18  ;;  %v1877_v10 = vcombine.high %v1867_v38, %v1867_v38  ;;  %v1795_v21 = vpack.c.bf16 %v1785_v57, %v1785_v57  ;;  %v1906_v38 = vrot.slane %v7726_v59, 2  ;;  %v1917_v18 = vld [vmem:[#allocation4 + $0x278] sm:$0xff] }
 0x10d   :  { %662 = vst [vmem:[#allocation2 + $0x40] sm:$0xc0] %v654_v1  ;;  %1630 = vst [vmem:[#allocation3 + $0x110] sm:$0xc] %v1622_v55  ;;  %v739_v1 = vrot.slane %v7380_v19, 6  ;;  %v7716_v43 = vpack.c.bf16 %v1743_v15, %v1743_v15  ;;  %v1806_v19 = vrot.slane %v1794_v7, 6 }
 0x10e   :  { %1680 = vst [vmem:[#allocation3 + $0x110] sm:$0x30] %v1672_v37  ;;  %1631 = vst [vmem:[#allocation3 + $0x118] sm:$0xc] %v1623_v49  ;;  %v6881_v55 = vld [vmem:[#allocation8 + $0x28] ss:$16 sps:$4 sm:$0xff]   ;;  %v7718_v62 = vpack.c.bf16 %v1827_v41, %v1827_v41 }
 0x10f   :  { %1681 = vst [vmem:[#allocation3 + $0x118] sm:$0x30] %v1673_v12  ;;  %1730 = vst [vmem:[#allocation3 + $0x110] sm:$0xc0] %v1722_v40  ;;  %v6890_v37 = vld [vmem:[#allocation8 + $0x44] ss:$16 sps:$4 sm:$0xff]   ;;  %v7721_v40 = vpack.c.bf16 %v1877_v10, %v1877_v10  ;;  %4875 = vmatpush1.bf16.msra.mxu1 %v6881_v55 }
 0x110   :  { %1731 = vst [vmem:[#allocation3 + $0x118] sm:$0xc0] %v1723_v39  ;;  %v789_v49 = vrot.slane %v7382_v20, 4  ;;  %v6893_v12 = vld [vmem:[#allocation8 + $0x4c] ss:$16 sps:$4 sm:$0xff]   ;;  %8227 = vst [vmem:[#allocation80_spill] sm:$0xff] %v7726_v59  ;;  %4570 = vmatprep.subr.bf16.mxu0 %v6890_v37  ;;  %v1927_v39 = vcombine.high %v1917_v18, %v1917_v18 }
 0x111   :  { %1772 = vst [vmem:[#allocation3 + $0x130] sm:$0x3] %v7713_v5  ;;  %1798 = vst [vmem:[#allocation2 + $0x130] sm:$0x3] %v1794_v7  ;;  %v6888_v15 = vld [vmem:[#allocation8 + $0x40] ss:$16 sps:$4 sm:$0xff]   ;;  %4876 = vmatprep.subr.bf16.mxu1 %v6893_v12 }
 0x112   :  { %747 = vst [vmem:[#allocation2 + $0x68] sm:$0xc] %v739_v1  ;;  %1773 = vst [vmem:[#allocation3 + $0x138] sm:$0x3] %v7716_v43  ;;  %v1807_v20 = vrot.slane %v1795_v21, 6  ;;  %v1857_v9 = vrot.slane %v7718_v62, 4  ;;  %v7735_v1 = vpack.c.bf16 %v1917_v18, %v1917_v18  ;;  %4571 = vmatpush1.bf16.msra.mxu0 %v6888_v15 }
 0x113   :  { %1799 = vst [vmem:[#allocation2 + $0x138] sm:$0x3] %v1795_v21  ;;  %797 = vst [vmem:[#allocation2 + $0x68] sm:$0x30] %v789_v49  ;;  %v1907_v57 = vrot.slane %v7721_v40, 2  ;;  %v2504_v7 = vld [vmem:[#allocation3 + $0x30] sm:$0xff]  ;;  %4877 = vmatpush1.bf16.msra.mxu1 %v6891_v30 }
 0x114   :  { %1814 = vst [vmem:[#allocation3 + $0x130] sm:$0xc] %v1806_v19  ;;  %v6900_v54 = vld [vmem:[#allocation8 + $0x64] ss:$16 sps:$4 sm:$0xff]   ;;  %v6903_v2 = vld [vmem:[#allocation8 + $0x6c] ss:$16 sps:$4 sm:$0xff]   ;;  %3510 = vmatmul.mubr.bf16.gmra.mrb[4].mxu0 %v2504_v7  ;;  %3816 = vmatmul.mubr.bf16.gmra.mrb[4].mxu1 %v2504_v7 }
 0x115   :  { %1815 = vst [vmem:[#allocation3 + $0x138] sm:$0xc] %v1807_v20  ;;  %1865 = vst [vmem:[#allocation3 + $0x138] sm:$0x30] %v1857_v9  ;;  %vm2241_vm0 = vcmp.lt.s32.totalorder %v7708_v11, 448  ;;  %v839_v21 = vrot.slane %v7396_v56, 2  ;;  %4572 = vmatprep.subr.bf16.mxu0 %v6900_v54  ;;  %4878 = vmatprep.subr.bf16.mxu1 %v6903_v2 }
 0x116   :  { %1915 = vst [vmem:[#allocation3 + $0x138] sm:$0xc0] %v1907_v57  ;;  %1864 = vst [vmem:[#allocation3 + $0x130] sm:$0x30] %v1856_v16  ;;  %v1959_v41 = vld [vmem:[#allocation4 + $0x288] sm:$0xff]  ;;  %v2001_v10 = vld [vmem:[#allocation4 + $0x298] sm:$0xff]  ;;  %v7739_v57 = vpack.c.bf16 %v1927_v39, %v1927_v39 }
 0x117   :  { %1914 = vst [vmem:[#allocation3 + $0x130] sm:$0xc0] %v1906_v38  ;;  %v2051_v53 = vld [vmem:[#allocation4 + $0x2a8] sm:$0xff]  ;;  %8228 = vst [vmem:[#allocation81_spill] sm:$0xff] %v7735_v1  ;;  %v738_v55 = vrot.slane %v7384_v23, 6  ;;  %v788_v49 = vrot.slane %v7388_v28, 4  ;;  %v1969_v20 = vcombine.high %v1959_v41, %v1959_v41  ;;  %v2011_v9 = vcombine.high %v2001_v10, %v2001_v10 }
 0x118   :  { %v2509_v19 = vld [vmem:[#allocation3 + $0x58] sm:$0xff]  ;;  %v2061_v59 = vcombine.high %v2051_v53, %v2051_v53  ;;  %v1978_v56 = vpack.c.bf16 %v1959_v41, %v1959_v41  ;;  %847 = vst [vmem:[#allocation2 + $0x68] sm:$0xc0] %v839_v21  ;;  %v6898_v37 = vld [vmem:[#allocation8 + $0x60] ss:$16 sps:$4 sm:$0xff]   ;;  %v7742_v16 = vpack.c.bf16 %v2001_v10, %v2001_v10  ;;  %v7744_v38 = vpack.c.bf16 %v2051_v53, %v2051_v53  ;;  %v2143_v15 = vld [vmem:[#allocation4 + $0x2c8] sm:$0xff] }
 0x119   :  { %v6901_v12 = vld [vmem:[#allocation8 + $0x68] ss:$16 sps:$4 sm:$0xff]   ;;  %1956 = vst [vmem:[#allocation3 + $0x150] sm:$0x3] %v7735_v1  ;;  %746 = vst [vmem:[#allocation2 + $0x60] sm:$0xc] %v738_v55  ;;  %v1979_v18 = vpack.c.bf16 %v1969_v20, %v1969_v20  ;;  %v7747_v21 = vpack.c.bf16 %v2011_v9, %v2011_v9  ;;  %3519 = vmatprep.mubr.bf16.mxu0 %v2509_v19  ;;  %3825 = vmatprep.mubr.bf16.mxu1 %v2509_v19 }
 0x11a   :  { %8229 = vst [vmem:[#allocation82_spill] sm:$0xff] %v7742_v16  ;;  %8230 = vst [vmem:[#allocation83_spill] sm:$0xff] %v7744_v38  ;;  %v838_v23 = vrot.slane %v7394_v45, 2  ;;  %v6910_v28 = vld [vmem:[#allocation8 + $0x84] ss:$16 sps:$4 sm:$0xff]   ;;  %v7749_v7 = vpack.c.bf16 %v2061_v59, %v2061_v59  ;;  %v1990_v39 = vrot.slane %v1978_v56, 6  ;;  %4573 = vmatpush1.bf16.msra.mxu0 %v6898_v37  ;;  %4879 = vmatpush1.bf16.msra.mxu1 %v6901_v12 }
 0x11b   :  { %796 = vst [vmem:[#allocation2 + $0x60] sm:$0x30] %v788_v49  ;;  %8231 = vst [vmem:[#allocation84_spill] sm:$0xff] %v7747_v21  ;;  %v6913_v41 = vld [vmem:[#allocation8 + $0x8c] ss:$16 sps:$4 sm:$0xff]   ;;  %v2040_v10 = vrot.slane %v7742_v16, 4  ;;  %4574 = vmatprep.subr.bf16.mxu0 %v6910_v28 }
 0x11c   :  { %8232 = vst [vmem:[#allocation85_spill] sm:$0xff] %v7749_v7  ;;  %1982 = vst [vmem:[#allocation2 + $0x150] sm:$0x3] %v1978_v56  ;;  %v2090_v53 = vrot.slane %v7744_v38, 2  ;;  %v2101_v45 = vld [vmem:[#allocation4 + $0x2b8] sm:$0xff]  ;;  %v1991_v30 = vrot.slane %v1979_v18, 6  ;;  %v2153_v56 = vcombine.high %v2143_v15, %v2143_v15  ;;  %4880 = vmatprep.subr.bf16.mxu1 %v6913_v41 }
 0x11d   :  { %1957 = vst [vmem:[#allocation3 + $0x158] sm:$0x3] %v7739_v57  ;;  %846 = vst [vmem:[#allocation2 + $0x60] sm:$0xc0] %v838_v23  ;;  %v2041_v59 = vrot.slane %v7747_v21, 4  ;;  %v2091_v55 = vrot.slane %v7749_v7, 2  ;;  %v2111_v49 = vcombine.high %v2101_v45, %v2101_v45  ;;  %v7756_v1 = vpack.c.bf16 %v2101_v45, %v2101_v45 }
 0x11e   :  { %1983 = vst [vmem:[#allocation2 + $0x158] sm:$0x3] %v1979_v18  ;;  %1998 = vst [vmem:[#allocation3 + $0x150] sm:$0xc] %v1990_v39  ;;  %v2185_v19 = vld [vmem:[#allocation4 + $0x2d8] sm:$0xff]  ;;  %v2235_v20 = vld [vmem:[#allocation4 + $0x2e8] sm:$0xff]  ;;  %v2162_v18 = vpack.c.bf16 %v2143_v15, %v2143_v15  ;;  %v2163_v45 = vpack.c.bf16 %v2153_v56, %v2153_v56 }
 0x11f   :  { %v6908_v9 = vld [vmem:[#allocation8 + $0x80] ss:$16 sps:$4 sm:$0xff]   ;;  %2048 = vst [vmem:[#allocation3 + $0x150] sm:$0x30] %v2040_v10  ;;  %2098 = vst [vmem:[#allocation3 + $0x150] sm:$0xc0] %v2090_v53  ;;  %v2195_v38 = vcombine.high %v2185_v19, %v2185_v19  ;;  %v2245_v16 = vcombine.high %v2235_v20, %v2235_v20  ;;  %v7758_v23 = vpack.c.bf16 %v2111_v49, %v2111_v49 }
 0x120   :  { %v2508_v54 = vld [vmem:[#allocation3 + $0x50] sm:$0xff]  ;;  %v6911_v2 = vld [vmem:[#allocation8 + $0x88] ss:$16 sps:$4 sm:$0xff]   ;;  %1999 = vst [vmem:[#allocation3 + $0x158] sm:$0xc] %v1991_v30  ;;  %v7760_v39 = vpack.c.bf16 %v2185_v19, %v2185_v19  ;;  %v923_v10 = vrot.slane %v7401_v3, 6  ;;  %v7768_v12 = vpack.c.bf16 %v2235_v20, %v2235_v20  ;;  %4575 = vmatpush1.bf16.msra.mxu0 %v6908_v9 }
 0x121   :  { %2049 = vst [vmem:[#allocation3 + $0x158] sm:$0x30] %v2041_v59  ;;  %2099 = vst [vmem:[#allocation3 + $0x158] sm:$0xc0] %v2091_v55  ;;  %v2513_v53 = vld [vmem:[#allocation3 + $0x78] sm:$0xff]  ;;  %v7763_v21 = vpack.c.bf16 %v2195_v38, %v2195_v38  ;;  %v2251_v37 = vsel %vm2241_vm0, %v2245_v16, 0.0  ;;  %3520 = vmatmul.mubr.bf16.gmra.mrb[8].mxu0 %v2508_v54  ;;  %3826 = vmatmul.mubr.bf16.gmra.mrb[8].mxu1 %v2508_v54 }
 0x122   :  { %v6916_v7 = vld [vmem:[#allocation8 + $0xa4] ss:$16 sps:$4 sm:$0xff]   ;;  %2140 = vst [vmem:[#allocation3 + $0x170] sm:$0x3] %v7756_v1  ;;  %v6919_v30 = vld [vmem:[#allocation8 + $0xac] ss:$16 sps:$4 sm:$0xff]   ;;  %v7771_v15 = vpack.c.bf16 %v2251_v37, %v2251_v37  ;;  %3529 = vmatprep.mubr.bf16.mxu0 %v2513_v53  ;;  %3835 = vmatprep.mubr.bf16.mxu1 %v2513_v53 }
 0x123   :  { %2141 = vst [vmem:[#allocation3 + $0x178] sm:$0x3] %v7758_v23  ;;  %v2174_v3 = vrot.slane %v2162_v18, 6  ;;  %v2224_v28 = vrot.slane %v7760_v39, 4  ;;  %2166 = vst [vmem:[#allocation2 + $0x170] sm:$0x3] %v2162_v18  ;;  %4881 = vmatpush1.bf16.msra.mxu1 %v6911_v2  ;;  %4576 = vmatprep.subr.bf16.mxu0 %v6916_v7 }
 0x124   :  { %931 = vst [vmem:[#allocation2 + $0x88] sm:$0xc] %v923_v10  ;;  %v973_v38 = vrot.slane %v7403_v4, 4  ;;  %v2175_v11 = vrot.slane %v2163_v45, 6  ;;  %v2225_v16 = vrot.slane %v7763_v21, 4  ;;  %v2274_v41 = vrot.slane %v7768_v12, 2  ;;  %4882 = vmatprep.subr.bf16.mxu1 %v6919_v30 }
 0x125   :  { %2167 = vst [vmem:[#allocation2 + $0x178] sm:$0x3] %v2163_v45  ;;  %v6914_v59 = vld [vmem:[#allocation8 + $0xa0] ss:$16 sps:$4 sm:$0xff]   ;;  %v2275_v55 = vrot.slane %v7771_v15, 2  ;;  %v1023_v49 = vrot.slane %v7412_v35, 2 }
 0x126   :  { %2182 = vst [vmem:[#allocation3 + $0x170] sm:$0xc] %v2174_v3  ;;  %2232 = vst [vmem:[#allocation3 + $0x170] sm:$0x30] %v2224_v28  ;;  %v6917_v4 = vld [vmem:[#allocation8 + $0xa8] ss:$16 sps:$4 sm:$0xff]   ;;  %4577 = vmatpush1.bf16.msra.mxu0 %v6914_v59 }
 0x127   :  { %981 = vst [vmem:[#allocation2 + $0x88] sm:$0x30] %v973_v38  ;;  %v6926_v19 = vld [vmem:[#allocation8 + $0xc4] ss:$16 sps:$4 sm:$0xff]   ;;  %2183 = vst [vmem:[#allocation3 + $0x178] sm:$0xc] %v2175_v11  ;;  %4883 = vmatpush1.bf16.msra.mxu1 %v6917_v4 }
 0x128   :  { %2233 = vst [vmem:[#allocation3 + $0x178] sm:$0x30] %v2225_v16  ;;  %2282 = vst [vmem:[#allocation3 + $0x170] sm:$0xc0] %v2274_v41  ;;  %v922_v20 = vrot.slane %v7399_v60, 6  ;;  %v972_v54 = vrot.slane %v7407_v8, 4  ;;  %4578 = vmatprep.subr.bf16.mxu0 %v6926_v19 }
 0x129   :  { %v6929_v56 = vld [vmem:[#allocation8 + $0xcc] ss:$16 sps:$4 sm:$0xff]   ;;  %2283 = vst [vmem:[#allocation3 + $0x178] sm:$0xc0] %v2275_v55  ;;  %1031 = vst [vmem:[#allocation2 + $0x88] sm:$0xc0] %v1023_v49 }
 0x12a   :  { %v1022_v18 = vrot.slane %v7414_v36, 2  ;;  %v6924_v10 = vld [vmem:[#allocation8 + $0xc0] ss:$16 sps:$4 sm:$0xff]   ;;  %930 = vst [vmem:[#allocation2 + $0x80] sm:$0xc] %v922_v20  ;;  %v1107_v35 = vrot.slane %v7416_v44, 6  ;;  %4884 = vmatprep.subr.bf16.mxu1 %v6929_v56 }
 0x12b   :  { %v1157_v9 = vrot.slane %v7418_v46, 4  ;;  %v2512_v2 = vld [vmem:[#allocation3 + $0x70] sm:$0xff]  ;;  %v6927_v53 = vld [vmem:[#allocation8 + $0xc8] ss:$16 sps:$4 sm:$0xff]   ;;  %980 = vst [vmem:[#allocation2 + $0x80] sm:$0x30] %v972_v54  ;;  %4579 = vmatpush1.bf16.msra.mxu0 %v6924_v10 }
 0x12c   :  { %1030 = vst [vmem:[#allocation2 + $0x80] sm:$0xc0] %v1022_v18  ;;  %v1207_v60 = vrot.slane %v7432_v25, 2  ;;  %v2517_v7 = vld [vmem:[#allocation3 + $0x98] sm:$0xff]  ;;  %1115 = vst [vmem:[#allocation2 + $0xa8] sm:$0xc] %v1107_v35  ;;  %3530 = vmatmul.mubr.bf16.gmra.mrb[12].mxu0 %v2512_v2  ;;  %3836 = vmatmul.mubr.bf16.gmra.mrb[12].mxu1 %v2512_v2 }
 0x12d   :  { %1165 = vst [vmem:[#allocation2 + $0xa8] sm:$0x30] %v1157_v9  ;;  %v1106_v8 = vrot.slane %v7420_v48, 6  ;;  %v1156_v36 = vrot.slane %v7424_v50, 4  ;;  %v1206_v45 = vrot.slane %v7430_v17, 2  ;;  %v1291_v37 = vrot.slane %v7434_v27, 6  ;;  %3539 = vmatprep.mubr.bf16.mxu0 %v2517_v7  ;;  %3845 = vmatprep.mubr.bf16.mxu1 %v2517_v7 }
 0x12e   :  { %v6936_v44 = vld [vmem:[#allocation8 + $0xe4] ss:$16 sps:$4 sm:$0xff]   ;;  %v6939_v46 = vld [vmem:[#allocation8 + $0xec] ss:$16 sps:$4 sm:$0xff]   ;;  %1215 = vst [vmem:[#allocation2 + $0xa8] sm:$0xc0] %v1207_v60  ;;  %4885 = vmatpush1.bf16.msra.mxu1 %v6927_v53 }
 0x12f   :  { %1114 = vst [vmem:[#allocation2 + $0xa0] sm:$0xc] %v1106_v8  ;;  %1164 = vst [vmem:[#allocation2 + $0xa0] sm:$0x30] %v1156_v36  ;;  %v8233_v25 = vld [vmem:[#allocation15_spill] sm:$0xff]  ;;  %v8234_v3 = vld [vmem:[#allocation18_spill] sm:$0xff]  ;;  %4580 = vmatprep.subr.bf16.mxu0 %v6936_v44  ;;  %4886 = vmatprep.subr.bf16.mxu1 %v6939_v46 }
 0x130   :  { %1214 = vst [vmem:[#allocation2 + $0xa0] sm:$0xc0] %v1206_v45  ;;  %v1341_v30 = vrot.slane %v8233_v25, 4  ;;  %v1391_v48 = vrot.slane %v8234_v3, 2  ;;  %v6934_v50 = vld [vmem:[#allocation8 + $0xe0] ss:$16 sps:$4 sm:$0xff]  }
 0x131   :  { %1299 = vst [vmem:[#allocation2 + $0xc8] sm:$0xc] %v1291_v37  ;;  %v8235_v17 = vld [vmem:[#allocation14_spill] sm:$0xff]  ;;  %v8236_v38 = vld [vmem:[#allocation16_spill] sm:$0xff]  ;;  %v6937_v27 = vld [vmem:[#allocation8 + $0xe8] ss:$16 sps:$4 sm:$0xff]   ;;  %4581 = vmatpush1.bf16.msra.mxu0 %v6934_v50 }
 0x132   :  { %v1290_v28 = vrot.slane %v8235_v17, 6  ;;  %v1340_v11 = vrot.slane %v8236_v38, 4  ;;  %1349 = vst [vmem:[#allocation2 + $0xc8] sm:$0x30] %v1341_v30  ;;  %1399 = vst [vmem:[#allocation2 + $0xc8] sm:$0xc0] %v1391_v48  ;;  %4887 = vmatpush1.bf16.msra.mxu1 %v6937_v27 }
 0x133   :  { %v8237_v16 = vld [vmem:[#allocation17_spill] sm:$0xff]  ;;  %v8238_v59 = vld [vmem:[#allocation19_spill] sm:$0xff]  ;;  %v1525_v49 = vrot.slane %v7454_v34, 4  ;;  %v6946_v4 = vld [vmem:[#allocation8 + $0x104] ss:$16 sps:$4 sm:$0xff]  }
 0x134   :  { %v1390_v41 = vrot.slane %v8237_v16, 2  ;;  %v1475_v55 = vrot.slane %v8238_v59, 6  ;;  %v6949_v19 = vld [vmem:[#allocation8 + $0x10c] ss:$16 sps:$4 sm:$0xff]   ;;  %1298 = vst [vmem:[#allocation2 + $0xc0] sm:$0xc] %v1290_v28  ;;  %4582 = vmatprep.subr.bf16.mxu0 %v6946_v4 }
 0x135   :  { %1348 = vst [vmem:[#allocation2 + $0xc0] sm:$0x30] %v1340_v11  ;;  %v8239_v20 = vld [vmem:[#allocation23_spill] sm:$0xff]  ;;  %v6944_v54 = vld [vmem:[#allocation8 + $0x100] ss:$16 sps:$4 sm:$0xff]   ;;  %v8241_v9 = vld [vmem:[#allocation21_spill] sm:$0xff]  ;;  %4888 = vmatprep.subr.bf16.mxu1 %v6949_v19 }
 0x136   :  { %v1575_v56 = vrot.slane %v8239_v20, 2  ;;  %v6947_v18 = vld [vmem:[#allocation8 + $0x108] ss:$16 sps:$4 sm:$0xff]   ;;  %1398 = vst [vmem:[#allocation2 + $0xc0] sm:$0xc0] %v1390_v41  ;;  %v8240_v10 = vld [vmem:[#allocation20_spill] sm:$0xff]  ;;  %4583 = vmatpush1.bf16.msra.mxu0 %v6944_v54 }
 0x137   :  { %1483 = vst [vmem:[#allocation2 + $0xe8] sm:$0xc] %v1475_v55  ;;  %1533 = vst [vmem:[#allocation2 + $0xe8] sm:$0x30] %v1525_v49  ;;  %v1474_v35 = vrot.slane %v8240_v10, 6  ;;  %v1524_v2 = vrot.slane %v8241_v9, 4  ;;  %4889 = vmatpush1.bf16.msra.mxu1 %v6947_v18 }
 0x138   :  { %v2516_v53 = vld [vmem:[#allocation3 + $0x90] sm:$0xff]  ;;  %1583 = vst [vmem:[#allocation2 + $0xe8] sm:$0xc0] %v1575_v56  ;;  %v8243_v8 = vld [vmem:[#allocation25_spill] sm:$0xff]  ;;  %v2521_v45 = vld [vmem:[#allocation3 + $0xb8] sm:$0xff] }
 0x139   :  { %v6952_v60 = vld [vmem:[#allocation8 + $0x124] ss:$16 sps:$4 sm:$0xff]   ;;  %v1659_v36 = vrot.slane %v8243_v8, 6  ;;  %1482 = vst [vmem:[#allocation2 + $0xe0] sm:$0xc] %v1474_v35  ;;  %v8247_v17 = vld [vmem:[#allocation27_spill] sm:$0xff]  ;;  %3540 = vmatmul.mubr.bf16.gmra.mrb[16].mxu0 %v2516_v53  ;;  %3846 = vmatmul.mubr.bf16.gmra.mrb[16].mxu1 %v2516_v53 }
 0x13a   :  { %v8242_v34 = vld [vmem:[#allocation22_spill] sm:$0xff]  ;;  %1532 = vst [vmem:[#allocation2 + $0xe0] sm:$0x30] %v1524_v2  ;;  %v8245_v37 = vld [vmem:[#allocation28_spill] sm:$0xff]  ;;  %v6955_v30 = vld [vmem:[#allocation8 + $0x12c] ss:$16 sps:$4 sm:$0xff]   ;;  %3549 = vmatprep.mubr.bf16.mxu0 %v2521_v45  ;;  %3855 = vmatprep.mubr.bf16.mxu1 %v2521_v45 }
 0x13b   :  { %v1574_v7 = vrot.slane %v8242_v34, 2  ;;  %v8244_v44 = vld [vmem:[#allocation26_spill] sm:$0xff]  ;;  %v1759_v25 = vrot.slane %v8245_v37, 2  ;;  %1667 = vst [vmem:[#allocation2 + $0x108] sm:$0xc] %v1659_v36  ;;  %v8246_v3 = vld [vmem:[#allocation24_spill] sm:$0xff]  ;;  %4584 = vmatprep.subr.bf16.mxu0 %v6952_v60  ;;  %4890 = vmatprep.subr.bf16.mxu1 %v6955_v30 }
 0x13c   :  { %v1709_v46 = vrot.slane %v8244_v44, 4  ;;  %v1658_v48 = vrot.slane %v8246_v3, 6  ;;  %v1708_v28 = vrot.slane %v8247_v17, 4  ;;  %v8248_v50 = vld [vmem:[#allocation29_spill] sm:$0xff]  ;;  %v6950_v11 = vld [vmem:[#allocation8 + $0x120] ss:$16 sps:$4 sm:$0xff]  }
 0x13d   :  { %1582 = vst [vmem:[#allocation2 + $0xe0] sm:$0xc0] %v1574_v7  ;;  %1767 = vst [vmem:[#allocation2 + $0x108] sm:$0xc0] %v1759_v25  ;;  %v1758_v38 = vrot.slane %v8248_v50, 2  ;;  %v8249_v27 = vld [vmem:[#allocation32_spill] sm:$0xff]  ;;  %4585 = vmatpush1.bf16.msra.mxu0 %v6950_v11 }
 0x13e   :  { %1717 = vst [vmem:[#allocation2 + $0x108] sm:$0x30] %v1709_v46  ;;  %1666 = vst [vmem:[#allocation2 + $0x100] sm:$0xc] %v1658_v48  ;;  %v1843_v16 = vrot.slane %v8249_v27, 6  ;;  %v8250_v59 = vld [vmem:[#allocation33_spill] sm:$0xff] }
 0x13f   :  { %1716 = vst [vmem:[#allocation2 + $0x100] sm:$0x30] %v1708_v28  ;;  %v6953_v41 = vld [vmem:[#allocation8 + $0x128] ss:$16 sps:$4 sm:$0xff]   ;;  %1766 = vst [vmem:[#allocation2 + $0x100] sm:$0xc0] %v1758_v38 }
 0x140   :  { %v1893_v55 = vrot.slane %v8250_v59, 4  ;;  %v8251_v49 = vld [vmem:[#allocation35_spill] sm:$0xff]  ;;  %v2520_v19 = vld [vmem:[#allocation3 + $0xb0] sm:$0xff]  ;;  %1851 = vst [vmem:[#allocation2 + $0x128] sm:$0xc] %v1843_v16  ;;  %4891 = vmatpush1.bf16.msra.mxu1 %v6953_v41  ;;  %v8257_v37 = vld [vmem:[#allocation41_spill] sm:$0xff] }
 0x141   :  { %v1943_v4 = vrot.slane %v8251_v49, 2  ;;  %v6962_v20 = vld [vmem:[#allocation8 + $0x144] ss:$16 sps:$4 sm:$0xff]   ;;  %v6965_v56 = vld [vmem:[#allocation8 + $0x14c] ss:$16 sps:$4 sm:$0xff]   ;;  %v2127_v25 = vrot.slane %v8257_v37, 2  ;;  %3550 = vmatmul.mubr.bf16.gmra.mrb[20].mxu0 %v2520_v19  ;;  %3856 = vmatmul.mubr.bf16.gmra.mrb[20].mxu1 %v2520_v19 }
 0x142   :  { %v8252_v10 = vld [vmem:[#allocation30_spill] sm:$0xff]  ;;  %v8253_v9 = vld [vmem:[#allocation31_spill] sm:$0xff]  ;;  %1901 = vst [vmem:[#allocation2 + $0x128] sm:$0x30] %v1893_v55  ;;  %4586 = vmatprep.subr.bf16.mxu0 %v6962_v20  ;;  %4892 = vmatprep.subr.bf16.mxu1 %v6965_v56  ;;  %v8258_v30 = vld [vmem:[#allocation36_spill] sm:$0xff] }
 0x143   :  { %v1842_v35 = vrot.slane %v8252_v10, 6  ;;  %v1892_v2 = vrot.slane %v8253_v9, 4  ;;  %v6960_v53 = vld [vmem:[#allocation8 + $0x140] ss:$16 sps:$4 sm:$0xff]   ;;  %1951 = vst [vmem:[#allocation2 + $0x128] sm:$0xc0] %v1943_v4 }
 0x144   :  { %v8254_v54 = vld [vmem:[#allocation34_spill] sm:$0xff]  ;;  %v6963_v34 = vld [vmem:[#allocation8 + $0x148] ss:$16 sps:$4 sm:$0xff]   ;;  %v6975_v46 = vld [vmem:[#allocation8 + $0x16c] ss:$16 sps:$4 sm:$0xff]   ;;  %v2026_v3 = vrot.slane %v8258_v30, 6  ;;  %4587 = vmatpush1.bf16.msra.mxu0 %v6960_v53 }
 0x145   :  { %v1942_v18 = vrot.slane %v8254_v54, 2  ;;  %1850 = vst [vmem:[#allocation2 + $0x120] sm:$0xc] %v1842_v35  ;;  %1900 = vst [vmem:[#allocation2 + $0x120] sm:$0x30] %v1892_v2  ;;  %v8255_v7 = vld [vmem:[#allocation38_spill] sm:$0xff]  ;;  %4893 = vmatpush1.bf16.msra.mxu1 %v6963_v34 }
 0x146   :  { %v2027_v8 = vrot.slane %v8255_v7, 6  ;;  %v8256_v36 = vld [vmem:[#allocation39_spill] sm:$0xff]  ;;  %v6972_v44 = vld [vmem:[#allocation8 + $0x164] ss:$16 sps:$4 sm:$0xff]   ;;  %v8259_v48 = vld [vmem:[#allocation37_spill] sm:$0xff]  ;;  %4894 = vmatprep.subr.bf16.mxu1 %v6975_v46  ;;  %v7241_v10 = vmov 0.0|0.0  }
 0x147   :  { %v2077_v60 = vrot.slane %v8256_v36, 4  ;;  %v2525_v45 = vld [vmem:[#allocation3 + $0xd8] sm:$0xff]  ;;  %1950 = vst [vmem:[#allocation2 + $0x120] sm:$0xc0] %v1942_v18  ;;  %v2076_v17 = vrot.slane %v8259_v48, 4  ;;  %v8260_v28 = vld [vmem:[#allocation40_spill] sm:$0xff]  ;;  %4588 = vmatprep.subr.bf16.mxu0 %v6972_v44 }
 0x148   :  { %2035 = vst [vmem:[#allocation2 + $0x148] sm:$0xc] %v2027_v8  ;;  %v2126_v50 = vrot.slane %v8260_v28, 2  ;;  %2135 = vst [vmem:[#allocation2 + $0x148] sm:$0xc0] %v2127_v25  ;;  %3559 = vmatprep.mubr.bf16.mxu0 %v2525_v45  ;;  %3865 = vmatprep.mubr.bf16.mxu1 %v2525_v45  ;;  %v2524_v41 = vld [vmem:[#allocation3 + $0xd0] sm:$0xff] }
 0x149   :  { %2085 = vst [vmem:[#allocation2 + $0x148] sm:$0x30] %v2077_v60  ;;  %2034 = vst [vmem:[#allocation2 + $0x140] sm:$0xc] %v2026_v3  ;;  %v6970_v38 = vld [vmem:[#allocation8 + $0x160] ss:$16 sps:$4 sm:$0xff]   ;;  %3560 = vmatmul.mubr.bf16.gmra.mrb[24].mxu0 %v2524_v41  ;;  %3866 = vmatmul.mubr.bf16.gmra.mrb[24].mxu1 %v2524_v41 }
 0x14a   :  { %2084 = vst [vmem:[#allocation2 + $0x140] sm:$0x30] %v2076_v17  ;;  %2134 = vst [vmem:[#allocation2 + $0x140] sm:$0xc0] %v2126_v50  ;;  %v6973_v11 = vld [vmem:[#allocation8 + $0x168] ss:$16 sps:$4 sm:$0xff]   ;;  %4589 = vmatpush1.bf16.msra.mxu0 %v6970_v38 }
 0x14b   :  { %v6982_v27 = vld [vmem:[#allocation8 + $0x184] ss:$16 sps:$4 sm:$0xff]   ;;  %v6985_v16 = vld [vmem:[#allocation8 + $0x18c] ss:$16 sps:$4 sm:$0xff]   ;;  %v6980_v59 = vld [vmem:[#allocation8 + $0x180] ss:$16 sps:$4 sm:$0xff]   ;;  %4895 = vmatpush1.bf16.msra.mxu1 %v6973_v11 }
 0x14c   :  { %v8261_v55 = vld [vmem:[#allocation42_spill] sm:$0xff]  ;;  %v8262_v4 = vld [vmem:[#allocation43_spill] sm:$0xff]  ;;  %v2310_v35 = vrot.slane %v7241_v10, 2  ;;  %4590 = vmatprep.subr.bf16.mxu0 %v6982_v27  ;;  %4896 = vmatprep.subr.bf16.mxu1 %v6985_v16  ;;  %v8263_v53 = vld [vmem:[#allocation44_spill] sm:$0xff]  ;;  %v289_v28 = vrot.slane %v7552_v13, 2 }
 0x14d   :  { %v2211_v49 = vrot.slane %v8261_v55, 6  ;;  %v2261_v19 = vrot.slane %v8262_v4, 4  ;;  %v2529_v20 = vld [vmem:[#allocation3 + $0xf8] sm:$0xff]  ;;  %v6988_v9 = vld [vmem:[#allocation8 + $0x1a4] ss:$16 sps:$4 sm:$0xff]   ;;  %v2210_v54 = vrot.slane %v8263_v53, 6 }
 0x14e   :  { %v6983_v56 = vld [vmem:[#allocation8 + $0x188] ss:$16 sps:$4 sm:$0xff]   ;;  %v6991_v2 = vld [vmem:[#allocation8 + $0x1ac] ss:$16 sps:$4 sm:$0xff]   ;;  %2319 = vst [vmem:[#allocation2 + $0x168] sm:$0xc0] %v2310_v35  ;;  %3569 = vmatprep.mubr.bf16.mxu0 %v2529_v20  ;;  %3875 = vmatprep.mubr.bf16.mxu1 %v2529_v20 }
 0x14f   :  { %2219 = vst [vmem:[#allocation2 + $0x168] sm:$0xc] %v2211_v49  ;;  %2269 = vst [vmem:[#allocation2 + $0x168] sm:$0x30] %v2261_v19  ;;  %v8264_v18 = vld [vmem:[#allocation45_spill] sm:$0xff]  ;;  %4591 = vmatpush1.bf16.msra.mxu0 %v6980_v59  ;;  %4897 = vmatpush1.bf16.msra.mxu1 %v6983_v56  ;;  %v2528_v45 = vld [vmem:[#allocation3 + $0xf0] sm:$0xff] }
 0x150   :  { %2318 = vst [vmem:[#allocation2 + $0x160] sm:$0xc0] %v2310_v35  ;;  %2320 = vst [vmem:[#allocation2 + $0x170] sm:$0xc0] %v2310_v35  ;;  %v2260_v34 = vrot.slane %v8264_v18, 4  ;;  %4592 = vmatprep.subr.bf16.mxu0 %v6988_v9  ;;  %4898 = vmatprep.subr.bf16.mxu1 %v6991_v2  ;;  %v8265_v46 = vld [vmem:[#allocation48_spill] sm:$0xff] }
 0x151   :  { %2321 = vst [vmem:[#allocation2 + $0x178] sm:$0xc0] %v2310_v35  ;;  %v6986_v7 = vld [vmem:[#allocation8 + $0x1a0] ss:$16 sps:$4 sm:$0xff]   ;;  %2218 = vst [vmem:[#allocation2 + $0x160] sm:$0xc] %v2210_v54  ;;  %3570 = vmatmul.mubr.bf16.gmra.mrb[28].mxu0 %v2528_v45  ;;  %3876 = vmatmul.mubr.bf16.gmra.mrb[28].mxu1 %v2528_v45 }
 0x152   :  { %v6989_v8 = vld [vmem:[#allocation8 + $0x1a8] ss:$16 sps:$4 sm:$0xff]   ;;  %2268 = vst [vmem:[#allocation2 + $0x160] sm:$0x30] %v2260_v34  ;;  %v6998_v36 = vld [vmem:[#allocation8 + $0x1c4] ss:$16 sps:$4 sm:$0xff]  }
 0x153   :  { %v7001_v60 = vld [vmem:[#allocation8 + $0x1cc] ss:$16 sps:$4 sm:$0xff]   ;;  %v6996_v44 = vld [vmem:[#allocation8 + $0x1c0] ss:$16 sps:$4 sm:$0xff]   ;;  %v189_v37 = vrot.slane %v8265_v46, 6  ;;  %4593 = vmatpush1.bf16.msra.mxu0 %v6986_v7  ;;  %4899 = vmatpush1.bf16.msra.mxu1 %v6989_v8  ;;  %v373_v4 = vrot.slane %v7554_v0, 6 }
 0x154   :  { %v8266_v25 = vld [vmem:[#allocation49_spill] sm:$0xff]  ;;  %v2533_v3 = vld [vmem:[#allocation3 + $0x118] sm:$0xff]  ;;  %v7008_v17 = vld [vmem:[#allocation8 + $0x1e4] ss:$16 sps:$4 sm:$0xff]   ;;  %4594 = vmatprep.subr.bf16.mxu0 %v6998_v36  ;;  %4900 = vmatprep.subr.bf16.mxu1 %v7001_v60  ;;  %297 = vst [vmem:[#allocation2 + $0x18] sm:$0xc0] %v289_v28 }
 0x155   :  { %v239_v30 = vrot.slane %v8266_v25, 4  ;;  %v6999_v48 = vld [vmem:[#allocation8 + $0x1c8] ss:$16 sps:$4 sm:$0xff]   ;;  %v7011_v50 = vld [vmem:[#allocation8 + $0x1ec] ss:$16 sps:$4 sm:$0xff]   ;;  %v8267_v38 = vld [vmem:[#allocation46_spill] sm:$0xff]  ;;  %3579 = vmatprep.mubr.bf16.mxu0 %v2533_v3  ;;  %3885 = vmatprep.mubr.bf16.mxu1 %v2533_v3 }
 0x156   :  { %197 = vst [vmem:[#allocation2 + $0x18] sm:$0xc] %v189_v37  ;;  %v188_v11 = vrot.slane %v8267_v38, 6  ;;  %v8268_v27 = vld [vmem:[#allocation47_spill] sm:$0xff]  ;;  %v7006_v41 = vld [vmem:[#allocation8 + $0x1e0] ss:$16 sps:$4 sm:$0xff]  }
 0x157   :  { %247 = vst [vmem:[#allocation2 + $0x18] sm:$0x30] %v239_v30  ;;  %v238_v16 = vrot.slane %v8268_v27, 4  ;;  %v7009_v59 = vld [vmem:[#allocation8 + $0x1e8] ss:$16 sps:$4 sm:$0xff]   ;;  %4595 = vmatpush1.bf16.msra.mxu0 %v6996_v44  ;;  %4901 = vmatpush1.bf16.msra.mxu1 %v6999_v48  ;;  %v2532_v49 = vld [vmem:[#allocation3 + $0x110] sm:$0xff] }
 0x158   :  { %196 = vst [vmem:[#allocation2 + $0x10] sm:$0xc] %v188_v11  ;;  %v7014_v13 = vld [vmem:[#allocation8 + $0x204] ss:$16 sps:$4 sm:$0xff]   ;;  %4596 = vmatprep.subr.bf16.mxu0 %v7008_v17  ;;  %4902 = vmatprep.subr.bf16.mxu1 %v7011_v50  ;;  %v7017_v55 = vld [vmem:[#allocation8 + $0x20c] ss:$16 sps:$4 sm:$0xff]  }
 0x159   :  { %246 = vst [vmem:[#allocation2 + $0x10] sm:$0x30] %v238_v16  ;;  %v8269_v19 = vld [vmem:[#allocation52_spill] sm:$0xff]  ;;  %v473_v56 = vrot.slane %v7568_v33, 2  ;;  %v2537_v10 = vld [vmem:[#allocation3 + $0x138] sm:$0xff]  ;;  %v8270_v35 = vld [vmem:[#allocation50_spill] sm:$0xff]  ;;  %3580 = vmatmul.mubr.bf16.gmra.mrb[32].mxu0 %v2532_v49  ;;  %3886 = vmatmul.mubr.bf16.gmra.mrb[32].mxu1 %v2532_v49 }
 0x15a   :  { %v423_v20 = vrot.slane %v8269_v19, 4  ;;  %v372_v9 = vrot.slane %v8270_v35, 6  ;;  %381 = vst [vmem:[#allocation2 + $0x38] sm:$0xc] %v373_v4  ;;  %v8271_v2 = vld [vmem:[#allocation51_spill] sm:$0xff]  ;;  %v8272_v0 = vld [vmem:[#allocation53_spill] sm:$0xff]  ;;  %3589 = vmatprep.mubr.bf16.mxu0 %v2537_v10  ;;  %3895 = vmatprep.mubr.bf16.mxu1 %v2537_v10 }
 0x15b   :  { %4597 = vmatpush1.bf16.msra.mxu0 %v7006_v41  ;;  %4903 = vmatpush1.bf16.msra.mxu1 %v7009_v59  ;;  %481 = vst [vmem:[#allocation2 + $0x38] sm:$0xc0] %v473_v56  ;;  %v422_v53 = vrot.slane %v8271_v2, 4  ;;  %v472_v54 = vrot.slane %v8272_v0, 2  ;;  %v2536_v33 = vld [vmem:[#allocation3 + $0x130] sm:$0xff]  ;;  %v607_v7 = vrot.slane %v7573_v32, 4 }
 0x15c   :  { %4719 = vmatprep.subr.bf16.mxu0 %v7014_v13  ;;  %5025 = vmatprep.subr.bf16.mxu1 %v7017_v55  ;;  %431 = vst [vmem:[#allocation2 + $0x38] sm:$0x30] %v423_v20  ;;  %380 = vst [vmem:[#allocation2 + $0x30] sm:$0xc] %v372_v9  ;;  %v8273_v18 = vld [vmem:[#allocation54_spill] sm:$0xff]  ;;  %v657_v8 = vrot.slane %v7587_v52, 2 }
 0x15d   :  { %430 = vst [vmem:[#allocation2 + $0x30] sm:$0x30] %v422_v53  ;;  %480 = vst [vmem:[#allocation2 + $0x30] sm:$0xc0] %v472_v54  ;;  %v557_v34 = vrot.slane %v8273_v18, 6  ;;  %v2541_v36 = vld [vmem:[#allocation3 + $0x158] sm:$0xff] }
 0x15e   :  { %v556_v60 = vrot.slane %v7576_v6, 6  ;;  %v8274_v45 = vld [vmem:[#allocation55_spill] sm:$0xff]  ;;  %v656_v46 = vrot.slane %v7582_v42, 2  ;;  %615 = vst [vmem:[#allocation2 + $0x58] sm:$0x30] %v607_v7  ;;  %v2540_v32 = vld [vmem:[#allocation3 + $0x150] sm:$0xff] }
 0x15f   :  { %v606_v44 = vrot.slane %v8274_v45, 4  ;;  %565 = vst [vmem:[#allocation2 + $0x58] sm:$0xc] %v557_v34  ;;  %665 = vst [vmem:[#allocation2 + $0x58] sm:$0xc0] %v657_v8  ;;  %v741_v52 = vrot.slane %v7595_v58, 6 }
 0x160   :  { %564 = vst [vmem:[#allocation2 + $0x50] sm:$0xc] %v556_v60  ;;  %664 = vst [vmem:[#allocation2 + $0x50] sm:$0xc0] %v656_v46  ;;  %v791_v37 = vrot.slane %v7597_v63, 4  ;;  %v841_v6 = vrot.slane %v7611_v26, 2 }
 0x161   :  { %3590 = vmatmul.mubr.bf16.gmra.mrb[36].mxu0 %v2536_v33  ;;  %3896 = vmatmul.mubr.bf16.gmra.mrb[36].mxu1 %v2536_v33  ;;  %614 = vst [vmem:[#allocation2 + $0x50] sm:$0x30] %v606_v44  ;;  %v2545_v25 = vld [vmem:[#allocation3 + $0x178] sm:$0xff]  ;;  %v740_v42 = vrot.slane %v7591_v31, 6  ;;  %v790_v30 = vrot.slane %v7599_v24, 4  ;;  %v840_v3 = vrot.slane %v7606_v51, 2 }
 0x162   :  { %3599 = vmatprep.mubr.bf16.mxu0 %v2541_v36  ;;  %3905 = vmatprep.mubr.bf16.mxu1 %v2541_v36  ;;  %749 = vst [vmem:[#allocation2 + $0x78] sm:$0xc] %v741_v52  ;;  %799 = vst [vmem:[#allocation2 + $0x78] sm:$0x30] %v791_v37  ;;  %v2544_v58 = vld [vmem:[#allocation3 + $0x170] sm:$0xff]  ;;  %v925_v63 = vrot.slane %v7620_v47, 6 }
 0x163   :  { %849 = vst [vmem:[#allocation2 + $0x78] sm:$0xc0] %v841_v6  ;;  %748 = vst [vmem:[#allocation2 + $0x70] sm:$0xc] %v740_v42  ;;  %v8275_v26 = vld [vmem:[#allocation58_spill] sm:$0xff]  ;;  %v8276_v31 = vld [vmem:[#allocation60_spill] sm:$0xff] }
 0x164   :  { %798 = vst [vmem:[#allocation2 + $0x70] sm:$0x30] %v790_v30  ;;  %848 = vst [vmem:[#allocation2 + $0x70] sm:$0xc0] %v840_v3  ;;  %v975_v48 = vrot.slane %v8275_v26, 4  ;;  %v1025_v17 = vrot.slane %v8276_v31, 2 }
 0x165   :  { %v2323_v24 = vld [vmem:[#allocation2 + $0x8] sm:$0xff]  ;;  %v8277_v28 = vld [vmem:[#allocation56_spill] sm:$0xff]  ;;  %v8279_v11 = vld [vmem:[#allocation59_spill] sm:$0xff]  ;;  %933 = vst [vmem:[#allocation2 + $0x98] sm:$0xc] %v925_v63  ;;  %v1209_v20 = vrot.slane %v7647_v29, 2 }
 0x166   :  { %v924_v51 = vrot.slane %v8277_v28, 6  ;;  %v8278_v50 = vld [vmem:[#allocation57_spill] sm:$0xff]  ;;  %v1024_v27 = vrot.slane %v8279_v11, 2  ;;  %983 = vst [vmem:[#allocation2 + $0x98] sm:$0x30] %v975_v48  ;;  %v2322_v13 = vld [vmem:[#allocation2] sm:$0xff] }
 0x167   :  { %v974_v38 = vrot.slane %v8278_v50, 4  ;;  %1033 = vst [vmem:[#allocation2 + $0x98] sm:$0xc0] %v1025_v17  ;;  %v7012_v47 = vld [vmem:[#allocation8 + $0x200] ss:$16 sps:$4 sm:$0xff]   ;;  %v8280_v55 = vld [vmem:[#allocation63_spill] sm:$0xff] }
 0x168   :  { %932 = vst [vmem:[#allocation2 + $0x90] sm:$0xc] %v924_v51  ;;  %1032 = vst [vmem:[#allocation2 + $0x90] sm:$0xc0] %v1024_v27  ;;  %v7015_v16 = vld [vmem:[#allocation8 + $0x208] ss:$16 sps:$4 sm:$0xff]  }
 0x169   :  { %3600 = vmatmul.mubr.bf16.gmra.mrb[40].mxu0 %v2540_v32  ;;  %3906 = vmatmul.mubr.bf16.gmra.mrb[40].mxu1 %v2540_v32  ;;  %982 = vst [vmem:[#allocation2 + $0x90] sm:$0x30] %v974_v38  ;;  %v7020_v41 = vld [vmem:[#allocation8 + $0x224] ss:$16 sps:$4 sm:$0xff]   ;;  %v7023_v59 = vld [vmem:[#allocation8 + $0x22c] ss:$16 sps:$4 sm:$0xff]  }
 0x16a   :  { %3609 = vmatprep.mubr.bf16.mxu0 %v2545_v25  ;;  %3915 = vmatprep.mubr.bf16.mxu1 %v2545_v25  ;;  %v1109_v49 = vrot.slane %v8280_v55, 6  ;;  %v8281_v4 = vld [vmem:[#allocation64_spill] sm:$0xff]  ;;  %v8282_v56 = vld [vmem:[#allocation61_spill] sm:$0xff]  ;;  %v8283_v35 = vld [vmem:[#allocation62_spill] sm:$0xff]  ;;  %v1208_v2 = vrot.slane %v7649_v22, 2  ;;  %v1293_v7 = vrot.slane %v7651_v14, 6 }
 0x16b   :  { %v1159_v19 = vrot.slane %v8281_v4, 4  ;;  %v1108_v10 = vrot.slane %v8282_v56, 6  ;;  %v1158_v9 = vrot.slane %v8283_v35, 4  ;;  %1217 = vst [vmem:[#allocation2 + $0xb8] sm:$0xc0] %v1209_v20  ;;  %v2327_v53 = vld [vmem:[#allocation2 + $0x28] sm:$0xff] }
 0x16c   :  { %1117 = vst [vmem:[#allocation2 + $0xb8] sm:$0xc] %v1109_v49  ;;  %1216 = vst [vmem:[#allocation2 + $0xb0] sm:$0xc0] %v1208_v2  ;;  %v7018_v0 = vld [vmem:[#allocation8 + $0x220] ss:$16 sps:$4 sm:$0xff]  }
 0x16d   :  { %1167 = vst [vmem:[#allocation2 + $0xb8] sm:$0x30] %v1159_v19  ;;  %1116 = vst [vmem:[#allocation2 + $0xb0] sm:$0xc] %v1108_v10  ;;  %v7021_v54 = vld [vmem:[#allocation8 + $0x228] ss:$16 sps:$4 sm:$0xff]  }
 0x16e   :  { %1166 = vst [vmem:[#allocation2 + $0xb0] sm:$0x30] %v1158_v9  ;;  %v7026_v29 = vld [vmem:[#allocation8 + $0x244] ss:$16 sps:$4 sm:$0xff]   ;;  %v7029_v33 = vld [vmem:[#allocation8 + $0x24c] ss:$16 sps:$4 sm:$0xff]  }
 0x16f   :  { %v7024_v22 = vld [vmem:[#allocation8 + $0x240] ss:$16 sps:$4 sm:$0xff]   ;;  %v7027_v34 = vld [vmem:[#allocation8 + $0x248] ss:$16 sps:$4 sm:$0xff]   ;;  %v7032_v42 = vld [vmem:[#allocation8 + $0x264] ss:$16 sps:$4 sm:$0xff]  }
 0x170   :  { %v2326_v18 = vld [vmem:[#allocation2 + $0x20] sm:$0xff]  ;;  %v8284_v8 = vld [vmem:[#allocation66_spill] sm:$0xff]  ;;  %v8285_v60 = vld [vmem:[#allocation71_spill] sm:$0xff]  ;;  %1301 = vst [vmem:[#allocation2 + $0xd8] sm:$0xc] %v1293_v7 }
 0x171   :  { %3610 = vmatmul.mubr.bf16.gmra.mrb[44].mxu0 %v2544_v58  ;;  %3916 = vmatmul.mubr.bf16.gmra.mrb[44].mxu1 %v2544_v58  ;;  %v1343_v36 = vrot.slane %v8284_v8, 4  ;;  %v1393_v45 = vrot.slane %v8285_v60, 2  ;;  %v8286_v44 = vld [vmem:[#allocation65_spill] sm:$0xff]  ;;  %v8287_v32 = vld [vmem:[#allocation67_spill] sm:$0xff]  ;;  %v8288_v37 = vld [vmem:[#allocation68_spill] sm:$0xff]  ;;  %v1760_v8 = vrot.slane %v7713_v5, 2 }
 0x172   :  { %4598 = vmatprep.mubr.bf16.mxu0 %v2323_v24  ;;  %4904 = vmatprep.mubr.bf16.mxu1 %v2323_v24  ;;  %v1292_v46 = vrot.slane %v8286_v44, 6  ;;  %v1342_v52 = vrot.slane %v8287_v32, 4  ;;  %v1392_v6 = vrot.slane %v8288_v37, 2  ;;  %v2331_v25 = vld [vmem:[#allocation2 + $0x48] sm:$0xff]  ;;  %v7030_v14 = vld [vmem:[#allocation8 + $0x260] ss:$16 sps:$4 sm:$0xff]  }
 0x173   :  { %v7035_v30 = vld [vmem:[#allocation8 + $0x26c] ss:$16 sps:$4 sm:$0xff]   ;;  %1351 = vst [vmem:[#allocation2 + $0xd8] sm:$0x30] %v1343_v36  ;;  %1401 = vst [vmem:[#allocation2 + $0xd8] sm:$0xc0] %v1393_v45 }
 0x174   :  { %1300 = vst [vmem:[#allocation2 + $0xd0] sm:$0xc] %v1292_v46  ;;  %1350 = vst [vmem:[#allocation2 + $0xd0] sm:$0x30] %v1342_v52  ;;  %v7033_v3 = vld [vmem:[#allocation8 + $0x268] ss:$16 sps:$4 sm:$0xff]  }
 0x175   :  { %1400 = vst [vmem:[#allocation2 + $0xd0] sm:$0xc0] %v1392_v6  ;;  %v7038_v58 = vld [vmem:[#allocation8 + $0x284] ss:$16 sps:$4 sm:$0xff]   ;;  %v7041_v63 = vld [vmem:[#allocation8 + $0x28c] ss:$16 sps:$4 sm:$0xff]  }
 0x176   :  { %v2330_v26 = vld [vmem:[#allocation2 + $0x40] sm:$0xff]  ;;  %v8290_v24 = vld [vmem:[#allocation73_spill] sm:$0xff]  ;;  %v8291_v51 = vld [vmem:[#allocation75_spill] sm:$0xff]  ;;  %1768 = vst [vmem:[#allocation2 + $0x110] sm:$0xc0] %v1760_v8  ;;  %v1845_v52 = vrot.slane %v7718_v62, 6 }
 0x177   :  { %v7036_v48 = vld [vmem:[#allocation8 + $0x280] ss:$16 sps:$4 sm:$0xff]   ;;  %v1527_v28 = vrot.slane %v8290_v24, 4  ;;  %v1577_v50 = vrot.slane %v8291_v51, 2  ;;  %v2335_v38 = vld [vmem:[#allocation2 + $0x68] sm:$0xff]  ;;  %v1895_v37 = vrot.slane %v7721_v40, 4 }
 0x178   :  { %v8289_v31 = vld [vmem:[#allocation72_spill] sm:$0xff]  ;;  %v7039_v11 = vld [vmem:[#allocation8 + $0x288] ss:$16 sps:$4 sm:$0xff]   ;;  %v7047_v49 = vld [vmem:[#allocation8 + $0x2ac] ss:$16 sps:$4 sm:$0xff]   ;;  %v1945_v6 = vrot.slane %v7739_v57, 2 }
 0x179   :  { %4599 = vmatmul.mubr.bf16.vlgmr.msra.gmra.mrb[0].mxu0 %v2322_v13  ;;  %4905 = vmatmul.mubr.bf16.vlgmr.msra.gmra.mrb[0].mxu1 %v2322_v13  ;;  %v1477_v17 = vrot.slane %v8289_v31, 6  ;;  %v8292_v27 = vld [vmem:[#allocation69_spill] sm:$0xff]  ;;  %v7044_v55 = vld [vmem:[#allocation8 + $0x2a4] ss:$16 sps:$4 sm:$0xff]   ;;  %1535 = vst [vmem:[#allocation2 + $0xf8] sm:$0x30] %v1527_v28 }
 0x17a   :  { %4720 = vmatpush1.bf16.msra.mxu0 %v7012_v47  ;;  %5026 = vmatpush1.bf16.msra.mxu1 %v7015_v16  ;;  %v1476_v47 = vrot.slane %v8292_v27, 6  ;;  %v8293_v16 = vld [vmem:[#allocation70_spill] sm:$0xff]  ;;  %1585 = vst [vmem:[#allocation2 + $0xf8] sm:$0xc0] %v1577_v50  ;;  %v7045_v19 = vld [vmem:[#allocation8 + $0x2a8] ss:$16 sps:$4 sm:$0xff]  }
 0x17b   :  { %4721 = vmatprep.subr.bf16.mxu0 %v7020_v41  ;;  %5027 = vmatprep.subr.bf16.mxu1 %v7023_v59  ;;  %v1526_v41 = vrot.slane %v8293_v16, 4  ;;  %v8294_v59 = vld [vmem:[#allocation74_spill] sm:$0xff]  ;;  %1485 = vst [vmem:[#allocation2 + $0xf8] sm:$0xc] %v1477_v17  ;;  %v7053_v56 = vld [vmem:[#allocation8 + $0x2cc] ss:$16 sps:$4 sm:$0xff]  }
 0x17c   :  { %4608 = vmatprep.mubr.bf16.mxu0 %v2327_v53  ;;  %4914 = vmatprep.mubr.bf16.mxu1 %v2327_v53  ;;  %v1576_v13 = vrot.slane %v8294_v59, 2  ;;  %1484 = vst [vmem:[#allocation2 + $0xf0] sm:$0xc] %v1476_v47  ;;  %v7042_v4 = vld [vmem:[#allocation8 + $0x2a0] ss:$16 sps:$4 sm:$0xff]   ;;  %v8295_v9 = vld [vmem:[#allocation77_spill] sm:$0xff] }
 0x17d   :  { %1534 = vst [vmem:[#allocation2 + $0xf0] sm:$0x30] %v1526_v41  ;;  %v7050_v20 = vld [vmem:[#allocation8 + $0x2c4] ss:$16 sps:$4 sm:$0xff]   ;;  %v7048_v35 = vld [vmem:[#allocation8 + $0x2c0] ss:$16 sps:$4 sm:$0xff]  }
 0x17e   :  { %4722 = vmatpush1.bf16.msra.mxu0 %v7018_v0  ;;  %5028 = vmatpush1.bf16.msra.mxu1 %v7021_v54  ;;  %1584 = vst [vmem:[#allocation2 + $0xf0] sm:$0xc0] %v1576_v13  ;;  %v2334_v10 = vld [vmem:[#allocation2 + $0x60] sm:$0xff]  ;;  %v1661_v2 = vrot.slane %v8295_v9, 6  ;;  %v8296_v53 = vld [vmem:[#allocation79_spill] sm:$0xff]  ;;  %v1761_v54 = vrot.slane %v7716_v43, 2 }
 0x17f   :  { %4723 = vmatprep.subr.bf16.mxu0 %v7026_v29  ;;  %5029 = vmatprep.subr.bf16.mxu1 %v7029_v33  ;;  %v1711_v0 = vrot.slane %v8296_v53, 4  ;;  %v2339_v29 = vld [vmem:[#allocation2 + $0x88] sm:$0xff]  ;;  %v7056_v36 = vld [vmem:[#allocation8 + $0x2e4] ss:$16 sps:$4 sm:$0xff]   ;;  %v7054_v43 = vld [vmem:[#allocation8 + $0x2e0] ss:$16 sps:$4 sm:$0xff]  }
 0x180   :  { %v7051_v33 = vld [vmem:[#allocation8 + $0x2c8] ss:$16 sps:$4 sm:$0xff]   ;;  %v7059_v60 = vld [vmem:[#allocation8 + $0x2ec] ss:$16 sps:$4 sm:$0xff]   ;;  %1669 = vst [vmem:[#allocation2 + $0x118] sm:$0xc] %v1661_v2 }
 0x181   :  { %4609 = vmatmul.mubr.bf16.gmra.mrb[4].mxu0 %v2326_v18  ;;  %4915 = vmatmul.mubr.bf16.gmra.mrb[4].mxu1 %v2326_v18  ;;  %1719 = vst [vmem:[#allocation2 + $0x118] sm:$0x30] %v1711_v0  ;;  %1769 = vst [vmem:[#allocation2 + $0x118] sm:$0xc0] %v1761_v54  ;;  %v7057_v45 = vld [vmem:[#allocation8 + $0x2e8] ss:$16 sps:$4 sm:$0xff]  }
 0x182   :  { %4724 = vmatpush1.bf16.msra.mxu0 %v7024_v22  ;;  %5030 = vmatpush1.bf16.msra.mxu1 %v7027_v34  ;;  %v8297_v22 = vld [vmem:[#allocation76_spill] sm:$0xff]  ;;  %v8298_v34 = vld [vmem:[#allocation78_spill] sm:$0xff]  ;;  %v7065_v44 = vld [vmem:[#allocation8 + $0x30c] ss:$16 sps:$4 sm:$0xff]   ;;  %1853 = vst [vmem:[#allocation2 + $0x138] sm:$0xc] %v1845_v52 }
 0x183   :  { %4618 = vmatprep.mubr.bf16.mxu0 %v2331_v25  ;;  %4924 = vmatprep.mubr.bf16.mxu1 %v2331_v25  ;;  %v1660_v18 = vrot.slane %v8297_v22, 6  ;;  %v1710_v7 = vrot.slane %v8298_v34, 4  ;;  %v7062_v5 = vld [vmem:[#allocation8 + $0x304] ss:$16 sps:$4 sm:$0xff]   ;;  %v7060_v32 = vld [vmem:[#allocation8 + $0x300] ss:$16 sps:$4 sm:$0xff]  }
 0x184   :  { %4725 = vmatprep.subr.bf16.mxu0 %v7032_v42  ;;  %5031 = vmatprep.subr.bf16.mxu1 %v7035_v30  ;;  %v2338_v46 = vld [vmem:[#allocation2 + $0x80] sm:$0xff]  ;;  %v2343_v25 = vld [vmem:[#allocation2 + $0xa8] sm:$0xff]  ;;  %v1844_v30 = vrot.slane %v7724_v61, 6  ;;  %1903 = vst [vmem:[#allocation2 + $0x138] sm:$0x30] %v1895_v37  ;;  %v8303_v47 = vld [vmem:[#allocation82_spill] sm:$0xff] }
 0x185   :  { %1668 = vst [vmem:[#allocation2 + $0x110] sm:$0xc] %v1660_v18  ;;  %1718 = vst [vmem:[#allocation2 + $0x110] sm:$0x30] %v1710_v7  ;;  %v7063_v42 = vld [vmem:[#allocation8 + $0x308] ss:$16 sps:$4 sm:$0xff]  }
 0x186   :  { %4726 = vmatpush1.bf16.msra.mxu0 %v7030_v14  ;;  %5032 = vmatpush1.bf16.msra.mxu1 %v7033_v3  ;;  %v8299_v14 = vld [vmem:[#allocation80_spill] sm:$0xff]  ;;  %1953 = vst [vmem:[#allocation2 + $0x138] sm:$0xc0] %v1945_v6  ;;  %1852 = vst [vmem:[#allocation2 + $0x130] sm:$0xc] %v1844_v30  ;;  %v8302_v51 = vld [vmem:[#allocation85_spill] sm:$0xff] }
 0x187   :  { %4727 = vmatprep.subr.bf16.mxu0 %v7038_v58  ;;  %5033 = vmatprep.subr.bf16.mxu1 %v7041_v63  ;;  %v1894_v3 = vrot.slane %v8299_v14, 4  ;;  %v8300_v58 = vld [vmem:[#allocation81_spill] sm:$0xff]  ;;  %v7066_v62 = vld [vmem:[#allocation8 + $0x320] ss:$16 sps:$4 sm:$0xff]   ;;  %v7074_v61 = vld [vmem:[#allocation8 + $0x344] ss:$16 sps:$4 sm:$0xff]  }
 0x188   :  { %v1944_v63 = vrot.slane %v8300_v58, 2  ;;  %v7069_v40 = vld [vmem:[#allocation8 + $0x328] ss:$16 sps:$4 sm:$0xff]   ;;  %v7077_v57 = vld [vmem:[#allocation8 + $0x34c] ss:$16 sps:$4 sm:$0xff]   ;;  %v2342_v31 = vld [vmem:[#allocation2 + $0xa0] sm:$0xff] }
 0x189   :  { %4619 = vmatmul.mubr.bf16.gmra.mrb[8].mxu0 %v2330_v26  ;;  %4925 = vmatmul.mubr.bf16.gmra.mrb[8].mxu1 %v2330_v26  ;;  %v7068_v26 = vld [vmem:[#allocation8 + $0x324] ss:$16 sps:$4 sm:$0xff]   ;;  %1902 = vst [vmem:[#allocation2 + $0x130] sm:$0x30] %v1894_v3  ;;  %v7072_v17 = vld [vmem:[#allocation8 + $0x340] ss:$16 sps:$4 sm:$0xff]  }
 0x18a   :  { %4628 = vmatprep.mubr.bf16.mxu0 %v2335_v38  ;;  %4934 = vmatprep.mubr.bf16.mxu1 %v2335_v38  ;;  %1952 = vst [vmem:[#allocation2 + $0x130] sm:$0xc0] %v1944_v63  ;;  %v8301_v24 = vld [vmem:[#allocation84_spill] sm:$0xff]  ;;  %v2079_v50 = vrot.slane %v8302_v51, 4  ;;  %v2129_v38 = vrot.slane %v7758_v23, 2  ;;  %v2028_v16 = vrot.slane %v8303_v47, 6 }
 0x18b   :  { %4728 = vmatpush1.bf16.msra.mxu0 %v7036_v48  ;;  %5034 = vmatpush1.bf16.msra.mxu1 %v7039_v11  ;;  %v7071_v48 = vld [vmem:[#allocation8 + $0x32c] ss:$16 sps:$4 sm:$0xff]   ;;  %v2029_v28 = vrot.slane %v8301_v24, 6  ;;  %v7075_v27 = vld [vmem:[#allocation8 + $0x348] ss:$16 sps:$4 sm:$0xff]   ;;  %v2128_v13 = vrot.slane %v7756_v1, 2 }
 0x18c   :  { %4729 = vmatprep.subr.bf16.mxu0 %v7044_v55  ;;  %5035 = vmatprep.subr.bf16.mxu1 %v7047_v49  ;;  %v2347_v11 = vld [vmem:[#allocation2 + $0xc8] sm:$0xff]  ;;  %v8304_v41 = vld [vmem:[#allocation83_spill] sm:$0xff]  ;;  %v7080_v55 = vld [vmem:[#allocation8 + $0x364] ss:$16 sps:$4 sm:$0xff]   ;;  %2087 = vst [vmem:[#allocation2 + $0x158] sm:$0x30] %v2079_v50 }
 0x18d   :  { %v2078_v59 = vrot.slane %v8304_v41, 4  ;;  %v7083_v49 = vld [vmem:[#allocation8 + $0x36c] ss:$16 sps:$4 sm:$0xff]   ;;  %2037 = vst [vmem:[#allocation2 + $0x158] sm:$0xc] %v2029_v28  ;;  %v2212_v53 = vrot.slane %v7760_v39, 6 }
 0x18e   :  { %2137 = vst [vmem:[#allocation2 + $0x158] sm:$0xc0] %v2129_v38  ;;  %2036 = vst [vmem:[#allocation2 + $0x150] sm:$0xc] %v2028_v16  ;;  %v7078_v23 = vld [vmem:[#allocation8 + $0x360] ss:$16 sps:$4 sm:$0xff]  }
 0x18f   :  { %4730 = vmatpush1.bf16.msra.mxu0 %v7042_v4  ;;  %5036 = vmatpush1.bf16.msra.mxu1 %v7045_v19  ;;  %2086 = vst [vmem:[#allocation2 + $0x150] sm:$0x30] %v2078_v59  ;;  %2136 = vst [vmem:[#allocation2 + $0x150] sm:$0xc0] %v2128_v13  ;;  %v7081_v4 = vld [vmem:[#allocation8 + $0x368] ss:$16 sps:$4 sm:$0xff]  }
 0x190   :  { %4731 = vmatprep.subr.bf16.mxu0 %v7050_v20  ;;  %5037 = vmatprep.subr.bf16.mxu1 %v7053_v56  ;;  %v7086_v1 = vld [vmem:[#allocation8 + $0x384] ss:$16 sps:$4 sm:$0xff]   ;;  %v7089_v19 = vld [vmem:[#allocation8 + $0x38c] ss:$16 sps:$4 sm:$0xff]   ;;  %v7084_v9 = vld [vmem:[#allocation8 + $0x380] ss:$16 sps:$4 sm:$0xff]  }
 0x191   :  { %4629 = vmatmul.mubr.bf16.gmra.mrb[12].mxu0 %v2334_v10  ;;  %4935 = vmatmul.mubr.bf16.gmra.mrb[12].mxu1 %v2334_v10  ;;  %v2346_v20 = vld [vmem:[#allocation2 + $0xc0] sm:$0xff]  ;;  %v2351_v56 = vld [vmem:[#allocation2 + $0xe8] sm:$0xff]  ;;  %v2213_v10 = vrot.slane %v7763_v21, 6  ;;  %v2262_v0 = vrot.slane %v7768_v12, 4  ;;  %2220 = vst [vmem:[#allocation2 + $0x170] sm:$0xc] %v2212_v53 }
 0x192   :  { %4638 = vmatprep.mubr.bf16.mxu0 %v2339_v29  ;;  %4944 = vmatprep.mubr.bf16.mxu1 %v2339_v29  ;;  %v7087_v2 = vld [vmem:[#allocation8 + $0x388] ss:$16 sps:$4 sm:$0xff]   ;;  %v7092_v54 = vld [vmem:[#allocation8 + $0x3a4] ss:$16 sps:$4 sm:$0xff]   ;;  %v7095_v29 = vld [vmem:[#allocation8 + $0x3ac] ss:$16 sps:$4 sm:$0xff]  }
 0x193   :  { %4732 = vmatpush1.bf16.msra.mxu0 %v7048_v35  ;;  %5038 = vmatpush1.bf16.msra.mxu1 %v7051_v33  ;;  %v2263_v35 = vrot.slane %v7771_v15, 4  ;;  %2221 = vst [vmem:[#allocation2 + $0x178] sm:$0xc] %v2213_v10  ;;  %2270 = vst [vmem:[#allocation2 + $0x170] sm:$0x30] %v2262_v0  ;;  %v2350_v33 = vld [vmem:[#allocation2 + $0xe0] sm:$0xff] }
 0x194   :  { %4733 = vmatprep.subr.bf16.mxu0 %v7056_v36  ;;  %5039 = vmatprep.subr.bf16.mxu1 %v7059_v60  ;;  %v7090_v21 = vld [vmem:[#allocation8 + $0x3a0] ss:$16 sps:$4 sm:$0xff]   ;;  %v7093_v15 = vld [vmem:[#allocation8 + $0x3a8] ss:$16 sps:$4 sm:$0xff]   ;;  %v7098_v39 = vld [vmem:[#allocation8 + $0x3c4] ss:$16 sps:$4 sm:$0xff]  }
 0x195   :  { %2271 = vst [vmem:[#allocation2 + $0x178] sm:$0x30] %v2263_v35  ;;  %v7101_v12 = vld [vmem:[#allocation8 + $0x3cc] ss:$16 sps:$4 sm:$0xff]   ;;  %v7096_v18 = vld [vmem:[#allocation8 + $0x3c0] ss:$16 sps:$4 sm:$0xff]  }
 0x196   :  { %v2355_v22 = vld [vmem:[#allocation2 + $0x108] sm:$0xff]  ;;  %v7104_v7 = vld [vmem:[#allocation8 + $0x3e4] ss:$16 sps:$4 sm:$0xff]   ;;  %v7102_v36 = vld [vmem:[#allocation8 + $0x3e0] ss:$16 sps:$4 sm:$0xff]  }
 0x197   :  { %4734 = vmatpush1.bf16.msra.mxu0 %v7054_v43  ;;  %5040 = vmatpush1.bf16.msra.mxu1 %v7057_v45  ;;  %v7099_v34 = vld [vmem:[#allocation8 + $0x3c8] ss:$16 sps:$4 sm:$0xff]   ;;  %v7107_v8 = vld [vmem:[#allocation8 + $0x3ec] ss:$16 sps:$4 sm:$0xff]   ;;  %v7108_v43 = vld [vmem:[%s8087_s4 + $0x40] sm:$0xff]  }
 0x198   :  { %4735 = vmatprep.subr.bf16.mxu0 %v7062_v5  ;;  %5041 = vmatprep.subr.bf16.mxu1 %v7065_v44  ;;  %v7105_v60 = vld [vmem:[#allocation8 + $0x3e8] ss:$16 sps:$4 sm:$0xff]   ;;  %v7109_v45 = vld [vmem:[%s8087_s4 + $0xc0] sm:$0xff]   ;;  %v2340_v53 = vld [vmem:[#allocation2 + $0x90] sm:$0xff] }
 0x199   :  { %4639 = vmatmul.mubr.bf16.gmra.mrb[16].mxu0 %v2338_v46  ;;  %4945 = vmatmul.mubr.bf16.gmra.mrb[16].mxu1 %v2338_v46  ;;  %v2354_v5 = vld [vmem:[#allocation2 + $0x100] sm:$0xff]  ;;  %v2359_v44 = vld [vmem:[#allocation2 + $0x128] sm:$0xff]  ;;  %v2329_v30 = vld [vmem:[#allocation2 + $0x38] sm:$0xff] }
 0x19a   :  { %4648 = vmatprep.mubr.bf16.mxu0 %v2343_v25  ;;  %4954 = vmatprep.mubr.bf16.mxu1 %v2343_v25  ;;  %v2358_v46 = vld [vmem:[#allocation2 + $0x120] sm:$0xff]  ;;  %v2367_v37 = vld [vmem:[#allocation2 + $0x168] sm:$0xff]  ;;  %v2325_v25 = vld [vmem:[#allocation2 + $0x18] sm:$0xff] }
 0x19b   :  { %4736 = vmatpush1.bf16.msra.mxu0 %v7060_v32  ;;  %5042 = vmatpush1.bf16.msra.mxu1 %v7063_v42  ;;  %v2363_v32 = vld [vmem:[#allocation2 + $0x148] sm:$0xff]  ;;  %v2362_v52 = vld [vmem:[#allocation2 + $0x140] sm:$0xff]  ;;  %v2324_v42 = vld [vmem:[#allocation2 + $0x10] sm:$0xff] }
 0x19c   :  { %4737 = vmatprep.subr.bf16.mxu0 %v7068_v26  ;;  %5043 = vmatprep.subr.bf16.mxu1 %v7071_v48  ;;  %v2366_v6 = vld [vmem:[#allocation2 + $0x160] sm:$0xff]  ;;  %v7112_v58 = vld [vmem:[%s8087_s4 + $0x48] sm:$0xff]   ;;  %v7120_v24 = vld [vmem:[%s8087_s4 + $0x58] sm:$0xff]  }
 0x19d   :  { %v7110_v14 = vld [vmem:[%s8087_s4] sm:$0xff]   ;;  %v7113_v63 = vld [vmem:[%s8087_s4 + $0xc8] sm:$0xff]   ;;  %v7121_v28 = vld [vmem:[%s8087_s4 + $0xd8] sm:$0xff]  }
 0x19e   :  { %v7111_v3 = vld [vmem:[%s8087_s4 + $0x80] sm:$0xff]   ;;  %v7114_v26 = vld [vmem:[%s8087_s4 + $0x8] sm:$0xff]   ;;  %v7122_v51 = vld [vmem:[%s8087_s4 + $0x18] sm:$0xff]  }
 0x19f   :  { %4738 = vmatpush1.bf16.msra.mxu0 %v7066_v62  ;;  %5044 = vmatpush1.bf16.msra.mxu1 %v7069_v40  ;;  %v7115_v48 = vld [vmem:[%s8087_s4 + $0x88] sm:$0xff]   ;;  %v7116_v62 = vld [vmem:[%s8087_s4 + $0x50] sm:$0xff]   ;;  %v7123_v50 = vld [vmem:[%s8087_s4 + $0x98] sm:$0xff]  }
 0x1a0   :  { %4739 = vmatprep.subr.bf16.mxu0 %v7074_v61  ;;  %5045 = vmatprep.subr.bf16.mxu1 %v7077_v57  ;;  %v7117_v40 = vld [vmem:[%s8087_s4 + $0xd0] sm:$0xff]   ;;  %v2333_v57 = vld [vmem:[#allocation2 + $0x58] sm:$0xff]  ;;  %v7124_v38 = vld [vmem:[%s8087_s4 + $0x60] sm:$0xff]  }
 0x1a1   :  { %4649 = vmatmul.mubr.bf16.gmra.mrb[20].mxu0 %v2342_v31  ;;  %4955 = vmatmul.mubr.bf16.gmra.mrb[20].mxu1 %v2342_v31  ;;  %v2328_v61 = vld [vmem:[#allocation2 + $0x30] sm:$0xff]  ;;  %v2337_v47 = vld [vmem:[#allocation2 + $0x78] sm:$0xff]  ;;  %v7126_v16 = vld [vmem:[%s8087_s4 + $0x20] sm:$0xff]  }
 0x1a2   :  { %4658 = vmatprep.mubr.bf16.mxu0 %v2347_v11  ;;  %4964 = vmatprep.mubr.bf16.mxu1 %v2347_v11  ;;  %v7118_v31 = vld [vmem:[%s8087_s4 + $0x10] sm:$0xff]   ;;  %v7125_v11 = vld [vmem:[%s8087_s4 + $0xe0] sm:$0xff]   ;;  %v7128_v59 = vld [vmem:[%s8087_s4 + $0x68] sm:$0xff]  }
 0x1a3   :  { %4740 = vmatpush1.bf16.msra.mxu0 %v7072_v17  ;;  %5046 = vmatpush1.bf16.msra.mxu1 %v7075_v27  ;;  %v7119_v17 = vld [vmem:[%s8087_s4 + $0x90] sm:$0xff]   ;;  %v7127_v41 = vld [vmem:[%s8087_s4 + $0xa0] sm:$0xff]   ;;  %v7129_v13 = vld [vmem:[%s8087_s4 + $0xe8] sm:$0xff]  }
 0x1a4   :  { %4741 = vmatprep.subr.bf16.mxu0 %v7080_v55  ;;  %5047 = vmatprep.subr.bf16.mxu1 %v7083_v49  ;;  %v2332_v27 = vld [vmem:[#allocation2 + $0x50] sm:$0xff]  ;;  %v7130_v55 = vld [vmem:[%s8087_s4 + $0x28] sm:$0xff]   ;;  %v7136_v10 = vld [vmem:[%s8087_s4 + $0x78] sm:$0xff]  }
 0x1a5   :  { %v7131_v49 = vld [vmem:[%s8087_s4 + $0xa8] sm:$0xff]   ;;  %v7137_v35 = vld [vmem:[%s8087_s4 + $0xf8] sm:$0xff]  }
 0x1a6   :  { %v2345_v0 = vld [vmem:[#allocation2 + $0xb8] sm:$0xff] }
 0x1a7   :  { %4742 = vmatpush1.bf16.msra.mxu0 %v7078_v23  ;;  %5048 = vmatpush1.bf16.msra.mxu1 %v7081_v4  ;;  %v7132_v23 = vld [vmem:[%s8087_s4 + $0x70] sm:$0xff]  }
 0x1a8   :  { %4743 = vmatprep.subr.bf16.mxu0 %v7086_v1  ;;  %5049 = vmatprep.subr.bf16.mxu1 %v7089_v19  ;;  %v7133_v4 = vld [vmem:[%s8087_s4 + $0xf0] sm:$0xff]   ;;  %v2341_v19 = vld [vmem:[#allocation2 + $0x98] sm:$0xff] }
 0x1a9   :  { %4659 = vmatmul.mubr.bf16.gmra.mrb[24].mxu0 %v2346_v20  ;;  %4965 = vmatmul.mubr.bf16.gmra.mrb[24].mxu1 %v2346_v20  ;;  %v2336_v1 = vld [vmem:[#allocation2 + $0x70] sm:$0xff] }
 0x1aa   :  { %4668 = vmatprep.mubr.bf16.mxu0 %v2351_v56  ;;  %4974 = vmatprep.mubr.bf16.mxu1 %v2351_v56  ;;  %v7134_v20 = vld [vmem:[%s8087_s4 + $0x30] sm:$0xff]  }
 0x1ab   :  { %4744 = vmatpush1.bf16.msra.mxu0 %v7084_v9  ;;  %5050 = vmatpush1.bf16.msra.mxu1 %v7087_v2  ;;  %v7135_v56 = vld [vmem:[%s8087_s4 + $0xb0] sm:$0xff]   ;;  %v7138_v9 = vld [vmem:[%s8087_s4 + $0x38] sm:$0xff]  }
 0x1ac   :  { %4745 = vmatprep.subr.bf16.mxu0 %v7092_v54  ;;  %5051 = vmatprep.subr.bf16.mxu1 %v7095_v29  ;;  %v7139_v2 = vld [vmem:[%s8087_s4 + $0xb8] sm:$0xff]   ;;  %v2344_v54 = vld [vmem:[#allocation2 + $0xb0] sm:$0xff] }
 0x1ad   :  { %v2349_v29 = vld [vmem:[#allocation2 + $0xd8] sm:$0xff] }
 0x1af   :  { %4746 = vmatpush1.bf16.msra.mxu0 %v7090_v21  ;;  %5052 = vmatpush1.bf16.msra.mxu1 %v7093_v15  ;;  %v2348_v21 = vld [vmem:[#allocation2 + $0xd0] sm:$0xff]  ;;  %v2353_v15 = vld [vmem:[#allocation2 + $0xf8] sm:$0xff] }
 0x1b0   :  { %4747 = vmatprep.subr.bf16.mxu0 %v7098_v39  ;;  %5053 = vmatprep.subr.bf16.mxu1 %v7101_v12  ;;  %v2352_v39 = vld [vmem:[#allocation2 + $0xf0] sm:$0xff]  ;;  %v2357_v12 = vld [vmem:[#allocation2 + $0x118] sm:$0xff] }
 0x1b1   :  { %4669 = vmatmul.mubr.bf16.gmra.mrb[28].mxu0 %v2350_v33  ;;  %4975 = vmatmul.mubr.bf16.gmra.mrb[28].mxu1 %v2350_v33  ;;  %v2356_v33 = vld [vmem:[#allocation2 + $0x110] sm:$0xff] }
 0x1b2   :  { %4678 = vmatprep.mubr.bf16.mxu0 %v2355_v22  ;;  %4984 = vmatprep.mubr.bf16.mxu1 %v2355_v22  ;;  %v2361_v22 = vld [vmem:[#allocation2 + $0x138] sm:$0xff] }
 0x1b3   :  { %4748 = vmatpush1.bf16.msra.mxu0 %v7096_v18  ;;  %5054 = vmatpush1.bf16.msra.mxu1 %v7099_v34  ;;  %v2360_v18 = vld [vmem:[#allocation2 + $0x130] sm:$0xff]  ;;  %v2365_v34 = vld [vmem:[#allocation2 + $0x158] sm:$0xff] }
 0x1b4   :  { %4749 = vmatprep.subr.bf16.mxu0 %v7104_v7  ;;  %5055 = vmatprep.subr.bf16.mxu1 %v7107_v8  ;;  %v2364_v7 = vld [vmem:[#allocation2 + $0x150] sm:$0xff]  ;;  %v2369_v8 = vld [vmem:[#allocation2 + $0x178] sm:$0xff] }
 0x1b7   :  { %4750 = vmatpush1.bf16.msra.mxu0 %v7102_v36  ;;  %5056 = vmatpush1.bf16.msra.mxu1 %v7105_v60  ;;  %v2368_v36 = vld [vmem:[#allocation2 + $0x170] sm:$0xff] }
 0x1b8   :  { %6158 = vmatprep.subr.bf16.mxu0 %v7108_v43  ;;  %6246 = vmatprep.subr.bf16.mxu1 %v7109_v45 }
 0x1b9   :  { %4679 = vmatmul.mubr.bf16.gmra.mrb[32].mxu0 %v2354_v5  ;;  %4985 = vmatmul.mubr.bf16.gmra.mrb[32].mxu1 %v2354_v5 }
 0x1ba   :  { %4688 = vmatprep.mubr.bf16.mxu0 %v2359_v44  ;;  %4994 = vmatprep.mubr.bf16.mxu1 %v2359_v44 }
 0x1c1   :  { %4689 = vmatmul.mubr.bf16.gmra.mrb[36].mxu0 %v2358_v46  ;;  %4995 = vmatmul.mubr.bf16.gmra.mrb[36].mxu1 %v2358_v46 }
 0x1c2   :  { %4698 = vmatprep.mubr.bf16.mxu0 %v2363_v32  ;;  %5004 = vmatprep.mubr.bf16.mxu1 %v2363_v32 }
 0x1c9   :  { %4699 = vmatmul.mubr.bf16.gmra.mrb[40].mxu0 %v2362_v52  ;;  %5005 = vmatmul.mubr.bf16.gmra.mrb[40].mxu1 %v2362_v52 }
 0x1ca   :  { %4708 = vmatprep.mubr.bf16.mxu0 %v2367_v37  ;;  %5014 = vmatprep.mubr.bf16.mxu1 %v2367_v37 }
 0x1d1   :  { %4709 = vmatmul.mubr.bf16.gmra.mrb[44].mxu0 %v2366_v6  ;;  %5015 = vmatmul.mubr.bf16.gmra.mrb[44].mxu1 %v2366_v6 }
 0x1d2   :  { %4751 = vmatprep.mubr.bf16.mxu0 %v2325_v25  ;;  %5057 = vmatprep.mubr.bf16.mxu1 %v2325_v25 }
 0x1d9   :  { %4752 = vmatmul.mubr.bf16.vlgmr.msra.gmra.mrb[0].mxu0 %v2324_v42  ;;  %5058 = vmatmul.mubr.bf16.vlgmr.msra.gmra.mrb[0].mxu1 %v2324_v42 }
 0x1da   :  { %4761 = vmatprep.mubr.bf16.mxu0 %v2329_v30  ;;  %5067 = vmatprep.mubr.bf16.mxu1 %v2329_v30 }
 0x1db   :  { %6159 = vmatpush3.bf16.msra.mxu0 %v7110_v14  ;;  %6247 = vmatpush3.bf16.msra.mxu1 %v7111_v3 }
 0x1dc   :  { %6160 = vmatprep.subr.bf16.mxu0 %v7112_v58  ;;  %6248 = vmatprep.subr.bf16.mxu1 %v7113_v63 }
 0x1df   :  { %6161 = vmatpush3.bf16.msra.mxu0 %v7114_v26  ;;  %6249 = vmatpush3.bf16.msra.mxu1 %v7115_v48 }
 0x1e0   :  { %6162 = vmatprep.subr.bf16.mxu0 %v7116_v62  ;;  %6250 = vmatprep.subr.bf16.mxu1 %v7117_v40 }
 0x1e1   :  { %4762 = vmatmul.mubr.bf16.gmra.mrb[4].mxu0 %v2328_v61  ;;  %5068 = vmatmul.mubr.bf16.gmra.mrb[4].mxu1 %v2328_v61 }
 0x1e2   :  { %4771 = vmatprep.mubr.bf16.mxu0 %v2333_v57  ;;  %5077 = vmatprep.mubr.bf16.mxu1 %v2333_v57 }
 0x1e3   :  { %6163 = vmatpush3.bf16.msra.mxu0 %v7118_v31  ;;  %6251 = vmatpush3.bf16.msra.mxu1 %v7119_v17 }
 0x1e4   :  { %6164 = vmatprep.subr.bf16.mxu0 %v7120_v24  ;;  %6252 = vmatprep.subr.bf16.mxu1 %v7121_v28 }
 0x1e7   :  { %6165 = vmatpush3.bf16.msra.mxu0 %v7122_v51  ;;  %6253 = vmatpush3.bf16.msra.mxu1 %v7123_v50 }
 0x1e8   :  { %6166 = vmatprep.subr.bf16.mxu0 %v7124_v38  ;;  %6254 = vmatprep.subr.bf16.mxu1 %v7125_v11 }
 0x1e9   :  { %4772 = vmatmul.mubr.bf16.gmra.mrb[8].mxu0 %v2332_v27  ;;  %5078 = vmatmul.mubr.bf16.gmra.mrb[8].mxu1 %v2332_v27 }
 0x1ea   :  { %4781 = vmatprep.mubr.bf16.mxu0 %v2337_v47  ;;  %5087 = vmatprep.mubr.bf16.mxu1 %v2337_v47 }
 0x1eb   :  { %6167 = vmatpush3.bf16.msra.mxu0 %v7126_v16  ;;  %6255 = vmatpush3.bf16.msra.mxu1 %v7127_v41 }
 0x1ec   :  { %6168 = vmatprep.subr.bf16.mxu0 %v7128_v59  ;;  %6256 = vmatprep.subr.bf16.mxu1 %v7129_v13 }
 0x1ef   :  { %6169 = vmatpush3.bf16.msra.mxu0 %v7130_v55  ;;  %6257 = vmatpush3.bf16.msra.mxu1 %v7131_v49 }
 0x1f0   :  { %6170 = vmatprep.subr.bf16.mxu0 %v7132_v23  ;;  %6258 = vmatprep.subr.bf16.mxu1 %v7133_v4 }
 0x1f1   :  { %4782 = vmatmul.mubr.bf16.gmra.mrb[12].mxu0 %v2336_v1  ;;  %5088 = vmatmul.mubr.bf16.gmra.mrb[12].mxu1 %v2336_v1 }
 0x1f2   :  { %4791 = vmatprep.mubr.bf16.mxu0 %v2341_v19  ;;  %5097 = vmatprep.mubr.bf16.mxu1 %v2341_v19 }
 0x1f3   :  { %6171 = vmatpush3.bf16.msra.mxu0 %v7134_v20  ;;  %6259 = vmatpush3.bf16.msra.mxu1 %v7135_v56 }
 0x1f4   :  { %6172 = vmatprep.subr.bf16.mxu0 %v7136_v10  ;;  %6260 = vmatprep.subr.bf16.mxu1 %v7137_v35 }
 0x1f7   :  { %6173 = vmatpush3.bf16.msra.mxu0 %v7138_v9  ;;  %6261 = vmatpush3.bf16.msra.mxu1 %v7139_v2 }
 0x1f9   :  { %4792 = vmatmul.mubr.bf16.gmra.mrb[16].mxu0 %v2340_v53  ;;  %5098 = vmatmul.mubr.bf16.gmra.mrb[16].mxu1 %v2340_v53 }
 0x1fa   :  { %4801 = vmatprep.mubr.bf16.mxu0 %v2345_v0  ;;  %5107 = vmatprep.mubr.bf16.mxu1 %v2345_v0 }
 0x201   :  { %4802 = vmatmul.mubr.bf16.gmra.mrb[20].mxu0 %v2344_v54  ;;  %5108 = vmatmul.mubr.bf16.gmra.mrb[20].mxu1 %v2344_v54 }
 0x202   :  { %4811 = vmatprep.mubr.bf16.mxu0 %v2349_v29  ;;  %5117 = vmatprep.mubr.bf16.mxu1 %v2349_v29 }
 0x209   :  { %4812 = vmatmul.mubr.bf16.gmra.mrb[24].mxu0 %v2348_v21  ;;  %5118 = vmatmul.mubr.bf16.gmra.mrb[24].mxu1 %v2348_v21 }
 0x20a   :  { %4821 = vmatprep.mubr.bf16.mxu0 %v2353_v15  ;;  %5127 = vmatprep.mubr.bf16.mxu1 %v2353_v15 }
 0x211   :  { %4822 = vmatmul.mubr.bf16.gmra.mrb[28].mxu0 %v2352_v39  ;;  %5128 = vmatmul.mubr.bf16.gmra.mrb[28].mxu1 %v2352_v39 }
 0x212   :  { %4831 = vmatprep.mubr.bf16.mxu0 %v2357_v12  ;;  %5137 = vmatprep.mubr.bf16.mxu1 %v2357_v12 }
 0x219   :  { %4832 = vmatmul.mubr.bf16.gmra.mrb[32].mxu0 %v2356_v33  ;;  %5138 = vmatmul.mubr.bf16.gmra.mrb[32].mxu1 %v2356_v33 }
 0x21a   :  { %4841 = vmatprep.mubr.bf16.mxu0 %v2361_v22  ;;  %5147 = vmatprep.mubr.bf16.mxu1 %v2361_v22 }
 0x221   :  { %4842 = vmatmul.mubr.bf16.gmra.mrb[36].mxu0 %v2360_v18  ;;  %5148 = vmatmul.mubr.bf16.gmra.mrb[36].mxu1 %v2360_v18 }
 0x222   :  { %4851 = vmatprep.mubr.bf16.mxu0 %v2365_v34  ;;  %5157 = vmatprep.mubr.bf16.mxu1 %v2365_v34 }
 0x229   :  { %4852 = vmatmul.mubr.bf16.gmra.mrb[40].mxu0 %v2364_v7  ;;  %5158 = vmatmul.mubr.bf16.gmra.mrb[40].mxu1 %v2364_v7 }
 0x22a   :  { %4861 = vmatprep.mubr.bf16.mxu0 %v2369_v8  ;;  %5167 = vmatprep.mubr.bf16.mxu1 %v2369_v8 }
 0x231   :  { %4862 = vmatmul.mubr.bf16.gmra.mrb[44].mxu0 %v2368_v36  ;;  %5168 = vmatmul.mubr.bf16.gmra.mrb[44].mxu1 %v2368_v36 }
 0x2ac   :  { %v4753_v60 = vpop.f32.mrb[0].mxu0  ;;  %v5059_v43 = vpop.f32.mrb[0].mxu1 }
 0x2ad   :  { %v4755_v45 = vpop.f32.mrb[1].mxu0  ;;  %v5061_v5 = vpop.f32.mrb[1].mxu1  ;;  %v5178_v32 = vmul.f32 %v4753_v60, %v4753_v60  ;;  %v5180_v52 = vmul.f32 %v5059_v43, %v5059_v43 }
 0x2ae   :  { %v4757_v44 = vpop.f32.mrb[2].mxu0  ;;  %v5063_v46 = vpop.f32.mrb[2].mxu1  ;;  %v5179_v30 = vmul.f32 %v4755_v45, %v4755_v45  ;;  %v5181_v14 = vmul.f32 %v5061_v5, %v5061_v5 }
 0x2af   :  { %v5182_v37 = vmul.f32 %v4757_v44, %v4757_v44  ;;  %v5184_v6 = vmul.f32 %v5063_v46, %v5063_v46  ;;  %v4759_v25 = vpop.f32.mrb[3].mxu0  ;;  %v5065_v42 = vpop.f32.mrb[3].mxu1 }
 0x2b0   :  { %v5183_v3 = vmul.f32 %v4759_v25, %v4759_v25  ;;  %v5185_v58 = vmul.f32 %v5065_v42, %v5065_v42 }
 0x2b1   :  { %v5274_v63 = vpack.c.bf16 %v5182_v37, %v5178_v32  ;;  %v5276_v26 = vpack.c.bf16 %v5184_v6, %v5180_v52 }
 0x2b2   :  { %v5275_v48 = vpack.c.bf16 %v5183_v3, %v5179_v30  ;;  %v5277_v62 = vpack.c.bf16 %v5185_v58, %v5181_v14 }
 0x2b4   :  { %v4763_v40 = vpop.f32.mrb[4].mxu0  ;;  %v5069_v61 = vpop.f32.mrb[4].mxu1  ;;  %5610 = vmatprep.mubr.bf16.mxu0 %v5275_v48  ;;  %5739 = vmatprep.mubr.bf16.mxu1 %v5277_v62 }
 0x2b5   :  { %v4765_v57 = vpop.f32.mrb[5].mxu0  ;;  %v5071_v31 = vpop.f32.mrb[5].mxu1  ;;  %5611 = vmatmul.mubr.bf16.vlgmr.msra.gmra.mrb[48].mxu0 %v5274_v63  ;;  %5740 = vmatmul.mubr.bf16.vlgmr.msra.gmra.mrb[48].mxu1 %v5276_v26  ;;  %v5186_v28 = vmul.f32 %v4763_v40, %v4763_v40  ;;  %v5188_v51 = vmul.f32 %v5069_v61, %v5069_v61 }
 0x2b6   :  { %v4767_v17 = vpop.f32.mrb[6].mxu0  ;;  %v5073_v24 = vpop.f32.mrb[6].mxu1  ;;  %v5187_v47 = vmul.f32 %v4765_v57, %v4765_v57  ;;  %v5189_v16 = vmul.f32 %v5071_v31, %v5071_v31 }
 0x2b7   :  { %v5190_v50 = vmul.f32 %v4767_v17, %v4767_v17  ;;  %v5192_v38 = vmul.f32 %v5073_v24, %v5073_v24  ;;  %v4769_v11 = vpop.f32.mrb[7].mxu0  ;;  %v5075_v27 = vpop.f32.mrb[7].mxu1 }
 0x2b8   :  { %v5191_v41 = vmul.f32 %v4769_v11, %v4769_v11  ;;  %v5193_v59 = vmul.f32 %v5075_v27, %v5075_v27 }
 0x2b9   :  { %v5278_v13 = vpack.c.bf16 %v5190_v50, %v5186_v28  ;;  %v5280_v55 = vpack.c.bf16 %v5192_v38, %v5188_v51 }
 0x2ba   :  { %v5279_v49 = vpack.c.bf16 %v5191_v41, %v5187_v47  ;;  %v5281_v23 = vpack.c.bf16 %v5193_v59, %v5189_v16 }
 0x2bc   :  { %v4773_v4 = vpop.f32.mrb[8].mxu0  ;;  %v5079_v1 = vpop.f32.mrb[8].mxu1  ;;  %5618 = vmatprep.mubr.bf16.mxu0 %v5279_v49  ;;  %5747 = vmatprep.mubr.bf16.mxu1 %v5281_v23 }
 0x2bd   :  { %v4775_v19 = vpop.f32.mrb[9].mxu0  ;;  %v5081_v20 = vpop.f32.mrb[9].mxu1  ;;  %5619 = vmatmul.mubr.bf16.gmra.mrb[52].mxu0 %v5278_v13  ;;  %5748 = vmatmul.mubr.bf16.gmra.mrb[52].mxu1 %v5280_v55  ;;  %v5194_v35 = vmul.f32 %v4773_v4, %v4773_v4  ;;  %v5196_v9 = vmul.f32 %v5079_v1, %v5079_v1 }
 0x2be   :  { %v4777_v56 = vpop.f32.mrb[10].mxu0  ;;  %v5083_v10 = vpop.f32.mrb[10].mxu1  ;;  %v5195_v29 = vmul.f32 %v4775_v19, %v4775_v19  ;;  %v5197_v21 = vmul.f32 %v5081_v20, %v5081_v20 }
 0x2bf   :  { %v5198_v2 = vmul.f32 %v4777_v56, %v4777_v56  ;;  %v5200_v53 = vmul.f32 %v5083_v10, %v5083_v10  ;;  %v4779_v0 = vpop.f32.mrb[11].mxu0  ;;  %v5085_v54 = vpop.f32.mrb[11].mxu1 }
 0x2c0   :  { %v5199_v15 = vmul.f32 %v4779_v0, %v4779_v0  ;;  %v5201_v39 = vmul.f32 %v5085_v54, %v5085_v54 }
 0x2c1   :  { %v5282_v12 = vpack.c.bf16 %v5198_v2, %v5194_v35  ;;  %v5284_v33 = vpack.c.bf16 %v5200_v53, %v5196_v9 }
 0x2c2   :  { %v5283_v22 = vpack.c.bf16 %v5199_v15, %v5195_v29  ;;  %v5285_v18 = vpack.c.bf16 %v5201_v39, %v5197_v21 }
 0x2c4   :  { %v4783_v34 = vpop.f32.mrb[12].mxu0  ;;  %v5089_v7 = vpop.f32.mrb[12].mxu1  ;;  %5626 = vmatprep.mubr.bf16.mxu0 %v5283_v22  ;;  %5755 = vmatprep.mubr.bf16.mxu1 %v5285_v18 }
 0x2c5   :  { %v4785_v8 = vpop.f32.mrb[13].mxu0  ;;  %v5091_v36 = vpop.f32.mrb[13].mxu1  ;;  %5627 = vmatmul.mubr.bf16.gmra.mrb[56].mxu0 %v5282_v12  ;;  %5756 = vmatmul.mubr.bf16.gmra.mrb[56].mxu1 %v5284_v33  ;;  %v5202_v45 = vmul.f32 %v4783_v34, %v4783_v34  ;;  %v5204_v5 = vmul.f32 %v5089_v7, %v5089_v7 }
 0x2c6   :  { %v4787_v60 = vpop.f32.mrb[14].mxu0  ;;  %v5093_v43 = vpop.f32.mrb[14].mxu1  ;;  %v5203_v37 = vmul.f32 %v4785_v8, %v4785_v8  ;;  %v5205_v6 = vmul.f32 %v5091_v36, %v5091_v36 }
 0x2c7   :  { %v5206_v44 = vmul.f32 %v4787_v60, %v4787_v60  ;;  %v5208_v46 = vmul.f32 %v5093_v43, %v5093_v43  ;;  %v4789_v32 = vpop.f32.mrb[15].mxu0  ;;  %v5095_v52 = vpop.f32.mrb[15].mxu1 }
 0x2c8   :  { %v5207_v25 = vmul.f32 %v4789_v32, %v4789_v32  ;;  %v5209_v42 = vmul.f32 %v5095_v52, %v5095_v52 }
 0x2c9   :  { %v5286_v30 = vpack.c.bf16 %v5206_v44, %v5202_v45  ;;  %v5288_v14 = vpack.c.bf16 %v5208_v46, %v5204_v5 }
 0x2ca   :  { %v5287_v3 = vpack.c.bf16 %v5207_v25, %v5203_v37  ;;  %v5289_v58 = vpack.c.bf16 %v5209_v42, %v5205_v6 }
 0x2cc   :  { %v4793_v63 = vpop.f32.mrb[16].mxu0  ;;  %v5099_v26 = vpop.f32.mrb[16].mxu1  ;;  %5634 = vmatprep.mubr.bf16.mxu0 %v5287_v3  ;;  %5763 = vmatprep.mubr.bf16.mxu1 %v5289_v58 }
 0x2cd   :  { %v4795_v48 = vpop.f32.mrb[17].mxu0  ;;  %v5101_v62 = vpop.f32.mrb[17].mxu1  ;;  %5635 = vmatmul.mubr.bf16.gmra.mrb[60].mxu0 %v5286_v30  ;;  %5764 = vmatmul.mubr.bf16.gmra.mrb[60].mxu1 %v5288_v14  ;;  %v5210_v57 = vmul.f32 %v4793_v63, %v4793_v63  ;;  %v5212_v31 = vmul.f32 %v5099_v26, %v5099_v26 }
 0x2ce   :  { %v4797_v40 = vpop.f32.mrb[18].mxu0  ;;  %v5103_v61 = vpop.f32.mrb[18].mxu1  ;;  %v5211_v50 = vmul.f32 %v4795_v48, %v4795_v48  ;;  %v5213_v38 = vmul.f32 %v5101_v62, %v5101_v62 }
 0x2cf   :  { %v5214_v17 = vmul.f32 %v4797_v40, %v4797_v40  ;;  %v5216_v24 = vmul.f32 %v5103_v61, %v5103_v61  ;;  %v4799_v28 = vpop.f32.mrb[19].mxu0  ;;  %v5105_v51 = vpop.f32.mrb[19].mxu1 }
 0x2d0   :  { %v5215_v11 = vmul.f32 %v4799_v28, %v4799_v28  ;;  %v5217_v27 = vmul.f32 %v5105_v51, %v5105_v51 }
 0x2d1   :  { %v5290_v47 = vpack.c.bf16 %v5214_v17, %v5210_v57  ;;  %v5292_v16 = vpack.c.bf16 %v5216_v24, %v5212_v31 }
 0x2d2   :  { %v5291_v41 = vpack.c.bf16 %v5215_v11, %v5211_v50  ;;  %v5293_v59 = vpack.c.bf16 %v5217_v27, %v5213_v38 }
 0x2d4   :  { %v4803_v13 = vpop.f32.mrb[20].mxu0  ;;  %v5109_v55 = vpop.f32.mrb[20].mxu1  ;;  %5642 = vmatprep.mubr.bf16.mxu0 %v5291_v41  ;;  %5771 = vmatprep.mubr.bf16.mxu1 %v5293_v59 }
 0x2d5   :  { %v4805_v49 = vpop.f32.mrb[21].mxu0  ;;  %v5111_v23 = vpop.f32.mrb[21].mxu1  ;;  %5643 = vmatmul.mubr.bf16.gmra.mrb[64].mxu0 %v5290_v47  ;;  %5772 = vmatmul.mubr.bf16.gmra.mrb[64].mxu1 %v5292_v16  ;;  %v5218_v19 = vmul.f32 %v4803_v13, %v4803_v13  ;;  %v5220_v20 = vmul.f32 %v5109_v55, %v5109_v55 }
 0x2d6   :  { %v4807_v4 = vpop.f32.mrb[22].mxu0  ;;  %v5113_v1 = vpop.f32.mrb[22].mxu1  ;;  %v5219_v2 = vmul.f32 %v4805_v49, %v4805_v49  ;;  %v5221_v53 = vmul.f32 %v5111_v23, %v5111_v23 }
 0x2d7   :  { %v5222_v56 = vmul.f32 %v4807_v4, %v4807_v4  ;;  %v5224_v10 = vmul.f32 %v5113_v1, %v5113_v1  ;;  %v4809_v35 = vpop.f32.mrb[23].mxu0  ;;  %v5115_v9 = vpop.f32.mrb[23].mxu1 }
 0x2d8   :  { %v5223_v0 = vmul.f32 %v4809_v35, %v4809_v35  ;;  %v5225_v54 = vmul.f32 %v5115_v9, %v5115_v9 }
 0x2d9   :  { %v5294_v29 = vpack.c.bf16 %v5222_v56, %v5218_v19  ;;  %v5296_v21 = vpack.c.bf16 %v5224_v10, %v5220_v20 }
 0x2da   :  { %v5295_v15 = vpack.c.bf16 %v5223_v0, %v5219_v2  ;;  %v5297_v39 = vpack.c.bf16 %v5225_v54, %v5221_v53 }
 0x2dc   :  { %v4813_v12 = vpop.f32.mrb[24].mxu0  ;;  %v5119_v33 = vpop.f32.mrb[24].mxu1  ;;  %5650 = vmatprep.mubr.bf16.mxu0 %v5295_v15  ;;  %5779 = vmatprep.mubr.bf16.mxu1 %v5297_v39 }
 0x2dd   :  { %v4815_v22 = vpop.f32.mrb[25].mxu0  ;;  %v5121_v18 = vpop.f32.mrb[25].mxu1  ;;  %5651 = vmatmul.mubr.bf16.gmra.mrb[68].mxu0 %v5294_v29  ;;  %5780 = vmatmul.mubr.bf16.gmra.mrb[68].mxu1 %v5296_v21  ;;  %v5226_v8 = vmul.f32 %v4813_v12, %v4813_v12  ;;  %v5228_v36 = vmul.f32 %v5119_v33, %v5119_v33 }
 0x2de   :  { %v4817_v34 = vpop.f32.mrb[26].mxu0  ;;  %v5123_v7 = vpop.f32.mrb[26].mxu1  ;;  %v5227_v44 = vmul.f32 %v4815_v22, %v4815_v22  ;;  %v5229_v46 = vmul.f32 %v5121_v18, %v5121_v18 }
 0x2df   :  { %v5230_v60 = vmul.f32 %v4817_v34, %v4817_v34  ;;  %v5232_v43 = vmul.f32 %v5123_v7, %v5123_v7  ;;  %v4819_v45 = vpop.f32.mrb[27].mxu0  ;;  %v5125_v5 = vpop.f32.mrb[27].mxu1 }
 0x2e0   :  { %v5231_v32 = vmul.f32 %v4819_v45, %v4819_v45  ;;  %v5233_v52 = vmul.f32 %v5125_v5, %v5125_v5 }
 0x2e1   :  { %v5298_v37 = vpack.c.bf16 %v5230_v60, %v5226_v8  ;;  %v5300_v6 = vpack.c.bf16 %v5232_v43, %v5228_v36 }
 0x2e2   :  { %v5299_v25 = vpack.c.bf16 %v5231_v32, %v5227_v44  ;;  %v5301_v42 = vpack.c.bf16 %v5233_v52, %v5229_v46 }
 0x2e4   :  { %v4823_v30 = vpop.f32.mrb[28].mxu0  ;;  %v5129_v14 = vpop.f32.mrb[28].mxu1  ;;  %5658 = vmatprep.mubr.bf16.mxu0 %v5299_v25  ;;  %5787 = vmatprep.mubr.bf16.mxu1 %v5301_v42 }
 0x2e5   :  { %v4825_v3 = vpop.f32.mrb[29].mxu0  ;;  %v5131_v58 = vpop.f32.mrb[29].mxu1  ;;  %5659 = vmatmul.mubr.bf16.gmra.mrb[72].mxu0 %v5298_v37  ;;  %5788 = vmatmul.mubr.bf16.gmra.mrb[72].mxu1 %v5300_v6  ;;  %v5234_v48 = vmul.f32 %v4823_v30, %v4823_v30  ;;  %v5236_v62 = vmul.f32 %v5129_v14, %v5129_v14 }
 0x2e6   :  { %v4827_v63 = vpop.f32.mrb[30].mxu0  ;;  %v5133_v26 = vpop.f32.mrb[30].mxu1  ;;  %v5235_v17 = vmul.f32 %v4825_v3, %v4825_v3  ;;  %v5237_v24 = vmul.f32 %v5131_v58, %v5131_v58 }
 0x2e7   :  { %v5238_v40 = vmul.f32 %v4827_v63, %v4827_v63  ;;  %v5240_v61 = vmul.f32 %v5133_v26, %v5133_v26  ;;  %v4829_v57 = vpop.f32.mrb[31].mxu0  ;;  %v5135_v31 = vpop.f32.mrb[31].mxu1 }
 0x2e8   :  { %v5239_v28 = vmul.f32 %v4829_v57, %v4829_v57  ;;  %v5241_v51 = vmul.f32 %v5135_v31, %v5135_v31 }
 0x2e9   :  { %v5302_v50 = vpack.c.bf16 %v5238_v40, %v5234_v48  ;;  %v5304_v38 = vpack.c.bf16 %v5240_v61, %v5236_v62 }
 0x2ea   :  { %v5303_v11 = vpack.c.bf16 %v5239_v28, %v5235_v17  ;;  %v5305_v27 = vpack.c.bf16 %v5241_v51, %v5237_v24 }
 0x2ec   :  { %v4833_v47 = vpop.f32.mrb[32].mxu0  ;;  %v5139_v16 = vpop.f32.mrb[32].mxu1  ;;  %5666 = vmatprep.mubr.bf16.mxu0 %v5303_v11  ;;  %5795 = vmatprep.mubr.bf16.mxu1 %v5305_v27 }
 0x2ed   :  { %v4835_v41 = vpop.f32.mrb[33].mxu0  ;;  %v5141_v59 = vpop.f32.mrb[33].mxu1  ;;  %5667 = vmatmul.mubr.bf16.gmra.mrb[76].mxu0 %v5302_v50  ;;  %5796 = vmatmul.mubr.bf16.gmra.mrb[76].mxu1 %v5304_v38  ;;  %v5242_v49 = vmul.f32 %v4833_v47, %v4833_v47  ;;  %v5244_v23 = vmul.f32 %v5139_v16, %v5139_v16 }
 0x2ee   :  { %v4837_v13 = vpop.f32.mrb[34].mxu0  ;;  %v5143_v55 = vpop.f32.mrb[34].mxu1  ;;  %v5243_v56 = vmul.f32 %v4835_v41, %v4835_v41  ;;  %v5245_v10 = vmul.f32 %v5141_v59, %v5141_v59 }
 0x2ef   :  { %v5246_v4 = vmul.f32 %v4837_v13, %v4837_v13  ;;  %v5248_v1 = vmul.f32 %v5143_v55, %v5143_v55  ;;  %v4839_v19 = vpop.f32.mrb[35].mxu0  ;;  %v5145_v20 = vpop.f32.mrb[35].mxu1 }
 0x2f0   :  { %v5247_v35 = vmul.f32 %v4839_v19, %v4839_v19  ;;  %v5249_v9 = vmul.f32 %v5145_v20, %v5145_v20 }
 0x2f1   :  { %v5306_v2 = vpack.c.bf16 %v5246_v4, %v5242_v49  ;;  %v5308_v53 = vpack.c.bf16 %v5248_v1, %v5244_v23 }
 0x2f2   :  { %v5307_v0 = vpack.c.bf16 %v5247_v35, %v5243_v56  ;;  %v5309_v54 = vpack.c.bf16 %v5249_v9, %v5245_v10 }
 0x2f4   :  { %v4843_v29 = vpop.f32.mrb[36].mxu0  ;;  %v5149_v21 = vpop.f32.mrb[36].mxu1  ;;  %5674 = vmatprep.mubr.bf16.mxu0 %v5307_v0  ;;  %5803 = vmatprep.mubr.bf16.mxu1 %v5309_v54 }
 0x2f5   :  { %v4845_v15 = vpop.f32.mrb[37].mxu0  ;;  %v5151_v39 = vpop.f32.mrb[37].mxu1  ;;  %5675 = vmatmul.mubr.bf16.gmra.mrb[80].mxu0 %v5306_v2  ;;  %5804 = vmatmul.mubr.bf16.gmra.mrb[80].mxu1 %v5308_v53  ;;  %v5250_v22 = vmul.f32 %v4843_v29, %v4843_v29  ;;  %v5252_v18 = vmul.f32 %v5149_v21, %v5149_v21 }
 0x2f6   :  { %v4847_v12 = vpop.f32.mrb[38].mxu0  ;;  %v5153_v33 = vpop.f32.mrb[38].mxu1  ;;  %v5251_v60 = vmul.f32 %v4845_v15, %v4845_v15  ;;  %v5253_v43 = vmul.f32 %v5151_v39, %v5151_v39 }
 0x2f7   :  { %v5254_v34 = vmul.f32 %v4847_v12, %v4847_v12  ;;  %v5256_v7 = vmul.f32 %v5153_v33, %v5153_v33  ;;  %v4849_v8 = vpop.f32.mrb[39].mxu0  ;;  %v5155_v36 = vpop.f32.mrb[39].mxu1 }
 0x2f8   :  { %v5255_v45 = vmul.f32 %v4849_v8, %v4849_v8  ;;  %v5257_v5 = vmul.f32 %v5155_v36, %v5155_v36 }
 0x2f9   :  { %v5310_v44 = vpack.c.bf16 %v5254_v34, %v5250_v22  ;;  %v5312_v46 = vpack.c.bf16 %v5256_v7, %v5252_v18 }
 0x2fa   :  { %v5311_v32 = vpack.c.bf16 %v5255_v45, %v5251_v60  ;;  %v5313_v52 = vpack.c.bf16 %v5257_v5, %v5253_v43 }
 0x2fc   :  { %v4853_v37 = vpop.f32.mrb[40].mxu0  ;;  %v5159_v6 = vpop.f32.mrb[40].mxu1  ;;  %5682 = vmatprep.mubr.bf16.mxu0 %v5311_v32  ;;  %5811 = vmatprep.mubr.bf16.mxu1 %v5313_v52 }
 0x2fd   :  { %v4855_v25 = vpop.f32.mrb[41].mxu0  ;;  %v5161_v42 = vpop.f32.mrb[41].mxu1  ;;  %5683 = vmatmul.mubr.bf16.gmra.mrb[84].mxu0 %v5310_v44  ;;  %5812 = vmatmul.mubr.bf16.gmra.mrb[84].mxu1 %v5312_v46  ;;  %v5258_v3 = vmul.f32 %v4853_v37, %v4853_v37  ;;  %v5260_v58 = vmul.f32 %v5159_v6, %v5159_v6 }
 0x2fe   :  { %v4857_v30 = vpop.f32.mrb[42].mxu0  ;;  %v5163_v14 = vpop.f32.mrb[42].mxu1  ;;  %v5259_v40 = vmul.f32 %v4855_v25, %v4855_v25  ;;  %v5261_v61 = vmul.f32 %v5161_v42, %v5161_v42 }
 0x2ff   :  { %v5262_v63 = vmul.f32 %v4857_v30, %v4857_v30  ;;  %v5264_v26 = vmul.f32 %v5163_v14, %v5163_v14  ;;  %v4859_v48 = vpop.f32.mrb[43].mxu0  ;;  %v5165_v62 = vpop.f32.mrb[43].mxu1 }
 0x300   :  { %v5263_v57 = vmul.f32 %v4859_v48, %v4859_v48  ;;  %v5265_v31 = vmul.f32 %v5165_v62, %v5165_v62 }
 0x301   :  { %v5314_v17 = vpack.c.bf16 %v5262_v63, %v5258_v3  ;;  %v5316_v24 = vpack.c.bf16 %v5264_v26, %v5260_v58 }
 0x302   :  { %v5315_v28 = vpack.c.bf16 %v5263_v57, %v5259_v40  ;;  %v5317_v51 = vpack.c.bf16 %v5265_v31, %v5261_v61 }
 0x304   :  { %v4863_v50 = vpop.f32.mrb[44].mxu0  ;;  %v5169_v38 = vpop.f32.mrb[44].mxu1  ;;  %5690 = vmatprep.mubr.bf16.mxu0 %v5315_v28  ;;  %5819 = vmatprep.mubr.bf16.mxu1 %v5317_v51 }
 0x305   :  { %v4865_v11 = vpop.f32.mrb[45].mxu0  ;;  %v5171_v27 = vpop.f32.mrb[45].mxu1  ;;  %5691 = vmatmul.mubr.bf16.gmra.mrb[88].mxu0 %v5314_v17  ;;  %5820 = vmatmul.mubr.bf16.gmra.mrb[88].mxu1 %v5316_v24  ;;  %v5266_v41 = vmul.f32 %v4863_v50, %v4863_v50  ;;  %v5268_v59 = vmul.f32 %v5169_v38, %v5169_v38 }
 0x306   :  { %v4867_v47 = vpop.f32.mrb[46].mxu0  ;;  %v5173_v16 = vpop.f32.mrb[46].mxu1  ;;  %v5267_v4 = vmul.f32 %v4865_v11, %v4865_v11  ;;  %v5269_v1 = vmul.f32 %v5171_v27, %v5171_v27 }
 0x307   :  { %v5270_v13 = vmul.f32 %v4867_v47, %v4867_v47  ;;  %v5272_v55 = vmul.f32 %v5173_v16, %v5173_v16  ;;  %v4869_v49 = vpop.f32.mrb[47].mxu0  ;;  %v5175_v23 = vpop.f32.mrb[47].mxu1 }
 0x308   :  { %v5271_v19 = vmul.f32 %v4869_v49, %v4869_v49  ;;  %v5273_v20 = vmul.f32 %v5175_v23, %v5175_v23 }
 0x309   :  { %v5318_v56 = vpack.c.bf16 %v5270_v13, %v5266_v41  ;;  %v5320_v10 = vpack.c.bf16 %v5272_v55, %v5268_v59 }
 0x30a   :  { %v5319_v35 = vpack.c.bf16 %v5271_v19, %v5267_v4  ;;  %v5321_v9 = vpack.c.bf16 %v5273_v20, %v5269_v1 }
 0x30c   :  { %5698 = vmatprep.mubr.bf16.mxu0 %v5319_v35  ;;  %5827 = vmatprep.mubr.bf16.mxu1 %v5321_v9 }
 0x30d   :  { %5699 = vmatmul.mubr.bf16.gmra.mrb[92].mxu0 %v5318_v56  ;;  %5828 = vmatmul.mubr.bf16.gmra.mrb[92].mxu1 %v5320_v10 }
 0x388   :  { %v6174_v2 = vpop.f32.mrb[48].mxu0  ;;  %v6262_v53 = vpop.f32.mrb[48].mxu1 }
 0x389   :  { %v6175_v0 = vpop.f32.mrb[49].mxu0  ;;  %v6263_v54 = vpop.f32.mrb[49].mxu1 }
 0x38a   :  { %v6176_v29 = vadd.f32 %v6175_v0, %v6174_v2  ;;  %v6264_v21 = vadd.f32 %v6263_v54, %v6262_v53  ;;  %v6177_v15 = vpop.f32.mrb[50].mxu0  ;;  %v6265_v39 = vpop.f32.mrb[50].mxu1 }
 0x38b   :  { %v6178_v12 = vpop.f32.mrb[51].mxu0  ;;  %v6266_v33 = vpop.f32.mrb[51].mxu1 }
 0x38c   :  { %v5742_v22 = vadd.f32 %v6264_v21, %v6176_v29  ;;  %v6179_v18 = vadd.f32 %v6178_v12, %v6177_v15  ;;  %v6267_v34 = vadd.f32 %v6266_v33, %v6265_v39 }
 0x38e   :  { %5837 = vst.msk [vmem:[%s8088_s5] sm:$0xff] %vm5836_vm1, %v5742_v22  ;;  %v5745_v7 = vadd.f32 %v6267_v34, %v6179_v18 }
 0x390   :  { %5838 = vst.msk [vmem:[%s8088_s5 + $0x8] sm:$0xff] %vm5836_vm1, %v5745_v7  ;;  %v6180_v8 = vpop.f32.mrb[52].mxu0  ;;  %v6268_v36 = vpop.f32.mrb[52].mxu1 }
 0x391   :  { %v6181_v60 = vpop.f32.mrb[53].mxu0  ;;  %v6269_v43 = vpop.f32.mrb[53].mxu1 }
 0x392   :  { %v6182_v45 = vadd.f32 %v6181_v60, %v6180_v8  ;;  %v6270_v5 = vadd.f32 %v6269_v43, %v6268_v36  ;;  %v6183_v44 = vpop.f32.mrb[54].mxu0  ;;  %v6271_v46 = vpop.f32.mrb[54].mxu1 }
 0x393   :  { %v6184_v32 = vpop.f32.mrb[55].mxu0  ;;  %v6272_v52 = vpop.f32.mrb[55].mxu1 }
 0x394   :  { %v5750_v37 = vadd.f32 %v6270_v5, %v6182_v45  ;;  %v6185_v6 = vadd.f32 %v6184_v32, %v6183_v44  ;;  %v6273_v25 = vadd.f32 %v6272_v52, %v6271_v46 }
 0x396   :  { %5839 = vst.msk [vmem:[%s8088_s5 + $0x10] sm:$0xff] %vm5836_vm1, %v5750_v37  ;;  %v5753_v42 = vadd.f32 %v6273_v25, %v6185_v6 }
 0x398   :  { %5840 = vst.msk [vmem:[%s8088_s5 + $0x18] sm:$0xff] %vm5836_vm1, %v5753_v42  ;;  %v6186_v30 = vpop.f32.mrb[56].mxu0  ;;  %v6274_v14 = vpop.f32.mrb[56].mxu1 }
 0x399   :  { %v6187_v3 = vpop.f32.mrb[57].mxu0  ;;  %v6275_v58 = vpop.f32.mrb[57].mxu1 }
 0x39a   :  { %v6188_v63 = vadd.f32 %v6187_v3, %v6186_v30  ;;  %v6276_v26 = vadd.f32 %v6275_v58, %v6274_v14  ;;  %v6189_v48 = vpop.f32.mrb[58].mxu0  ;;  %v6277_v62 = vpop.f32.mrb[58].mxu1 }
 0x39b   :  { %v6190_v40 = vpop.f32.mrb[59].mxu0  ;;  %v6278_v61 = vpop.f32.mrb[59].mxu1 }
 0x39c   :  { %v5758_v57 = vadd.f32 %v6276_v26, %v6188_v63  ;;  %v6191_v31 = vadd.f32 %v6190_v40, %v6189_v48  ;;  %v6279_v17 = vadd.f32 %v6278_v61, %v6277_v62 }
 0x39e   :  { %5841 = vst.msk [vmem:[%s8088_s5 + $0x20] sm:$0xff] %vm5836_vm1, %v5758_v57  ;;  %v5761_v24 = vadd.f32 %v6279_v17, %v6191_v31 }
 0x3a0   :  { %5842 = vst.msk [vmem:[%s8088_s5 + $0x28] sm:$0xff] %vm5836_vm1, %v5761_v24  ;;  %v6192_v28 = vpop.f32.mrb[60].mxu0  ;;  %v6280_v51 = vpop.f32.mrb[60].mxu1 }
 0x3a1   :  { %v6193_v50 = vpop.f32.mrb[61].mxu0  ;;  %v6281_v38 = vpop.f32.mrb[61].mxu1 }
 0x3a2   :  { %v6194_v11 = vadd.f32 %v6193_v50, %v6192_v28  ;;  %v6282_v27 = vadd.f32 %v6281_v38, %v6280_v51  ;;  %v6195_v47 = vpop.f32.mrb[62].mxu0  ;;  %v6283_v16 = vpop.f32.mrb[62].mxu1 }
 0x3a3   :  { %v6196_v41 = vpop.f32.mrb[63].mxu0  ;;  %v6284_v59 = vpop.f32.mrb[63].mxu1 }
 0x3a4   :  { %v5766_v13 = vadd.f32 %v6282_v27, %v6194_v11  ;;  %v6197_v55 = vadd.f32 %v6196_v41, %v6195_v47  ;;  %v6285_v49 = vadd.f32 %v6284_v59, %v6283_v16 }
 0x3a6   :  { %5843 = vst.msk [vmem:[%s8088_s5 + $0x30] sm:$0xff] %vm5836_vm1, %v5766_v13  ;;  %v5769_v23 = vadd.f32 %v6285_v49, %v6197_v55 }
 0x3a8   :  { %5844 = vst.msk [vmem:[%s8088_s5 + $0x38] sm:$0xff] %vm5836_vm1, %v5769_v23  ;;  %v6198_v4 = vpop.f32.mrb[64].mxu0  ;;  %v6286_v1 = vpop.f32.mrb[64].mxu1 }
 0x3a9   :  { %v6199_v19 = vpop.f32.mrb[65].mxu0  ;;  %v6287_v20 = vpop.f32.mrb[65].mxu1 }
 0x3aa   :  { %v6200_v56 = vadd.f32 %v6199_v19, %v6198_v4  ;;  %v6288_v10 = vadd.f32 %v6287_v20, %v6286_v1  ;;  %v6201_v35 = vpop.f32.mrb[66].mxu0  ;;  %v6289_v9 = vpop.f32.mrb[66].mxu1 }
 0x3ab   :  { %v6202_v2 = vpop.f32.mrb[67].mxu0  ;;  %v6290_v53 = vpop.f32.mrb[67].mxu1 }
 0x3ac   :  { %v5774_v0 = vadd.f32 %v6288_v10, %v6200_v56  ;;  %v6203_v54 = vadd.f32 %v6202_v2, %v6201_v35  ;;  %v6291_v29 = vadd.f32 %v6290_v53, %v6289_v9 }
 0x3ae   :  { %5845 = vst.msk [vmem:[%s8088_s5 + $0x40] sm:$0xff] %vm5836_vm1, %v5774_v0  ;;  %v5777_v21 = vadd.f32 %v6291_v29, %v6203_v54 }
 0x3b0   :  { %5846 = vst.msk [vmem:[%s8088_s5 + $0x48] sm:$0xff] %vm5836_vm1, %v5777_v21  ;;  %v6204_v15 = vpop.f32.mrb[68].mxu0  ;;  %v6292_v39 = vpop.f32.mrb[68].mxu1 }
 0x3b1   :  { %v6205_v12 = vpop.f32.mrb[69].mxu0  ;;  %v6293_v33 = vpop.f32.mrb[69].mxu1 }
 0x3b2   :  { %v6206_v22 = vadd.f32 %v6205_v12, %v6204_v15  ;;  %v6294_v18 = vadd.f32 %v6293_v33, %v6292_v39  ;;  %v6207_v34 = vpop.f32.mrb[70].mxu0  ;;  %v6295_v7 = vpop.f32.mrb[70].mxu1 }
 0x3b3   :  { %v6208_v8 = vpop.f32.mrb[71].mxu0  ;;  %v6296_v36 = vpop.f32.mrb[71].mxu1 }
 0x3b4   :  { %v5782_v60 = vadd.f32 %v6294_v18, %v6206_v22  ;;  %v6209_v43 = vadd.f32 %v6208_v8, %v6207_v34  ;;  %v6297_v45 = vadd.f32 %v6296_v36, %v6295_v7 }
 0x3b6   :  { %5847 = vst.msk [vmem:[%s8088_s5 + $0x50] sm:$0xff] %vm5836_vm1, %v5782_v60  ;;  %v5785_v5 = vadd.f32 %v6297_v45, %v6209_v43 }
 0x3b8   :  { %5848 = vst.msk [vmem:[%s8088_s5 + $0x58] sm:$0xff] %vm5836_vm1, %v5785_v5  ;;  %v6210_v44 = vpop.f32.mrb[72].mxu0  ;;  %v6298_v46 = vpop.f32.mrb[72].mxu1 }
 0x3b9   :  { %v6211_v32 = vpop.f32.mrb[73].mxu0  ;;  %v6299_v52 = vpop.f32.mrb[73].mxu1 }
 0x3ba   :  { %v6212_v37 = vadd.f32 %v6211_v32, %v6210_v44  ;;  %v6300_v6 = vadd.f32 %v6299_v52, %v6298_v46  ;;  %v6213_v25 = vpop.f32.mrb[74].mxu0  ;;  %v6301_v42 = vpop.f32.mrb[74].mxu1 }
 0x3bb   :  { %v6214_v30 = vpop.f32.mrb[75].mxu0  ;;  %v6302_v14 = vpop.f32.mrb[75].mxu1 }
 0x3bc   :  { %v5790_v3 = vadd.f32 %v6300_v6, %v6212_v37  ;;  %v6215_v58 = vadd.f32 %v6214_v30, %v6213_v25  ;;  %v6303_v63 = vadd.f32 %v6302_v14, %v6301_v42 }
 0x3be   :  { %5849 = vst.msk [vmem:[%s8088_s5 + $0x60] sm:$0xff] %vm5836_vm1, %v5790_v3  ;;  %v5793_v26 = vadd.f32 %v6303_v63, %v6215_v58 }
 0x3c0   :  { %5850 = vst.msk [vmem:[%s8088_s5 + $0x68] sm:$0xff] %vm5836_vm1, %v5793_v26  ;;  %v6216_v48 = vpop.f32.mrb[76].mxu0  ;;  %v6304_v62 = vpop.f32.mrb[76].mxu1 }
 0x3c1   :  { %v6217_v40 = vpop.f32.mrb[77].mxu0  ;;  %v6305_v61 = vpop.f32.mrb[77].mxu1 }
 0x3c2   :  { %v6218_v57 = vadd.f32 %v6217_v40, %v6216_v48  ;;  %v6306_v31 = vadd.f32 %v6305_v61, %v6304_v62  ;;  %v6219_v17 = vpop.f32.mrb[78].mxu0  ;;  %v6307_v24 = vpop.f32.mrb[78].mxu1 }
 0x3c3   :  { %v6220_v28 = vpop.f32.mrb[79].mxu0  ;;  %v6308_v51 = vpop.f32.mrb[79].mxu1 }
 0x3c4   :  { %v5798_v50 = vadd.f32 %v6306_v31, %v6218_v57  ;;  %v6221_v38 = vadd.f32 %v6220_v28, %v6219_v17  ;;  %v6309_v11 = vadd.f32 %v6308_v51, %v6307_v24 }
 0x3c6   :  { %5851 = vst.msk [vmem:[%s8088_s5 + $0x70] sm:$0xff] %vm5836_vm1, %v5798_v50  ;;  %v5801_v27 = vadd.f32 %v6309_v11, %v6221_v38 }
 0x3c8   :  { %5852 = vst.msk [vmem:[%s8088_s5 + $0x78] sm:$0xff] %vm5836_vm1, %v5801_v27  ;;  %v6222_v47 = vpop.f32.mrb[80].mxu0  ;;  %v6310_v16 = vpop.f32.mrb[80].mxu1 }
 0x3c9   :  { %v6223_v41 = vpop.f32.mrb[81].mxu0  ;;  %v6311_v59 = vpop.f32.mrb[81].mxu1 }
 0x3ca   :  { %v6224_v13 = vadd.f32 %v6223_v41, %v6222_v47  ;;  %v6312_v55 = vadd.f32 %v6311_v59, %v6310_v16  ;;  %v6225_v49 = vpop.f32.mrb[82].mxu0  ;;  %v6313_v23 = vpop.f32.mrb[82].mxu1 }
 0x3cb   :  { %v6226_v4 = vpop.f32.mrb[83].mxu0  ;;  %v6314_v1 = vpop.f32.mrb[83].mxu1 }
 0x3cc   :  { %v5806_v19 = vadd.f32 %v6312_v55, %v6224_v13  ;;  %v6227_v20 = vadd.f32 %v6226_v4, %v6225_v49  ;;  %v6315_v56 = vadd.f32 %v6314_v1, %v6313_v23 }
 0x3ce   :  { %5853 = vst.msk [vmem:[%s8088_s5 + $0x80] sm:$0xff] %vm5836_vm1, %v5806_v19  ;;  %v5809_v10 = vadd.f32 %v6315_v56, %v6227_v20 }
 0x3d0   :  { %5854 = vst.msk [vmem:[%s8088_s5 + $0x88] sm:$0xff] %vm5836_vm1, %v5809_v10  ;;  %v6228_v35 = vpop.f32.mrb[84].mxu0  ;;  %v6316_v9 = vpop.f32.mrb[84].mxu1 }
 0x3d1   :  { %v6229_v2 = vpop.f32.mrb[85].mxu0  ;;  %v6317_v53 = vpop.f32.mrb[85].mxu1 }
 0x3d2   :  { %v6230_v0 = vadd.f32 %v6229_v2, %v6228_v35  ;;  %v6318_v54 = vadd.f32 %v6317_v53, %v6316_v9  ;;  %v6231_v29 = vpop.f32.mrb[86].mxu0  ;;  %v6319_v21 = vpop.f32.mrb[86].mxu1 }
 0x3d3   :  { %v6232_v15 = vpop.f32.mrb[87].mxu0  ;;  %v6320_v39 = vpop.f32.mrb[87].mxu1 }
 0x3d4   :  { %v5814_v12 = vadd.f32 %v6318_v54, %v6230_v0  ;;  %v6233_v33 = vadd.f32 %v6232_v15, %v6231_v29  ;;  %v6321_v22 = vadd.f32 %v6320_v39, %v6319_v21 }
 0x3d6   :  { %5855 = vst.msk [vmem:[%s8088_s5 + $0x90] sm:$0xff] %vm5836_vm1, %v5814_v12  ;;  %v5817_v18 = vadd.f32 %v6321_v22, %v6233_v33 }
 0x3d8   :  { %5856 = vst.msk [vmem:[%s8088_s5 + $0x98] sm:$0xff] %vm5836_vm1, %v5817_v18  ;;  %v6234_v34 = vpop.f32.mrb[88].mxu0  ;;  %v6322_v7 = vpop.f32.mrb[88].mxu1 }
 0x3d9   :  { %v6235_v8 = vpop.f32.mrb[89].mxu0  ;;  %v6323_v36 = vpop.f32.mrb[89].mxu1 }
 0x3da   :  { %v6236_v60 = vadd.f32 %v6235_v8, %v6234_v34  ;;  %v6324_v43 = vadd.f32 %v6323_v36, %v6322_v7  ;;  %v6237_v45 = vpop.f32.mrb[90].mxu0  ;;  %v6325_v5 = vpop.f32.mrb[90].mxu1 }
 0x3db   :  { %v6238_v44 = vpop.f32.mrb[91].mxu0  ;;  %v6326_v46 = vpop.f32.mrb[91].mxu1 }
 0x3dc   :  { %v5822_v32 = vadd.f32 %v6324_v43, %v6236_v60  ;;  %v6239_v52 = vadd.f32 %v6238_v44, %v6237_v45  ;;  %v6327_v37 = vadd.f32 %v6326_v46, %v6325_v5 }
 0x3de   :  { %5857 = vst.msk [vmem:[%s8088_s5 + $0xa0] sm:$0xff] %vm5836_vm1, %v5822_v32  ;;  %v5825_v6 = vadd.f32 %v6327_v37, %v6239_v52 }
 0x3e0   :  { %5858 = vst.msk [vmem:[%s8088_s5 + $0xa8] sm:$0xff] %vm5836_vm1, %v5825_v6  ;;  %v6240_v25 = vpop.f32.mrb[92].mxu0  ;;  %v6328_v42 = vpop.f32.mrb[92].mxu1 }
 0x3e1   :  { %v6241_v30 = vpop.f32.mrb[93].mxu0  ;;  %v6329_v14 = vpop.f32.mrb[93].mxu1 }
 0x3e2   :  { %v6242_v3 = vadd.f32 %v6241_v30, %v6240_v25  ;;  %v6330_v58 = vadd.f32 %v6329_v14, %v6328_v42  ;;  %v6243_v63 = vpop.f32.mrb[94].mxu0  ;;  %v6331_v26 = vpop.f32.mrb[94].mxu1 }
 0x3e3   :  { %v6244_v48 = vpop.f32.mrb[95].mxu0  ;;  %v6332_v62 = vpop.f32.mrb[95].mxu1 }
 0x3e4   :  { %v5830_v40 = vadd.f32 %v6330_v58, %v6242_v3  ;;  %v6245_v61 = vadd.f32 %v6244_v48, %v6243_v63  ;;  %v6333_v57 = vadd.f32 %v6332_v62, %v6331_v26 }
 0x3e6   :  { %5859 = vst.msk [vmem:[%s8088_s5 + $0xb0] sm:$0xff] %vm5836_vm1, %v5830_v40  ;;  %v5833_v31 = vadd.f32 %v6333_v57, %v6245_v61 }
 0x3e8   :  { %5860 = vst.msk [vmem:[%s8088_s5 + $0xb8] sm:$0xff] %vm5836_vm1, %v5833_v31 }
 0x3e9   :  { %5865 = vsyncpa [#allocation5], 1 }
 0x3ea   :  { %5866 = vsyncpa [#allocation7], 1 }
 0x3eb   :  { %5867 = vsyncpa [#allocation10], 1 }

</bundles_post_ra>
